<compile_context>
chip_gen: v6e
topology: v6e:2x2x1
jax: 0.10.0
libtpu: 0.0.40
codegen_flags: <defaults>
</compile_context>

<pallas_src>
import jax
import jax.numpy as jnp
from jax.experimental import pallas as pl
from jax.experimental.pallas import tpu as pltpu

LANE = 128    # vreg lane width
CHUNK = 128   # hidden-dim rows processed per fused chunk (multiple of 8 sublanes)


def mlp_kernel(x_ref, p_ref, b2_ref, o_ref):
    # x_ref : [2, tb]    transposed input tile (batch along lanes)
    # p_ref : [Hp, 4]    packed params: col0=w1[:,0], col1=w1[:,1], col2=b1, col3=w2^T
    # b2_ref: SMEM (1,)  fc2.bias scalar
    # o_ref : [1, tb]    lane-dense output tile
    tb = x_ref.shape[1]
    Hp = p_ref.shape[0]
    x0 = x_ref[0:1, :]                                   # [1, tb]
    x1 = x_ref[1:2, :]                                   # [1, tb]

    acc = jnp.zeros((1, tb), jnp.float32)
    # Static (trace-time) loop over hidden chunks: fc1 MACs + ReLU on the VPU,
    # fc2 as an elementwise scale + sublane reduce on the XLU (no MXU, no
    # materialized [Hp, tb] intermediate in VMEM).
    for c in range(Hp // CHUNK):
        s = c * CHUNK
        w1c0 = p_ref[s:s + CHUNK, 0:1]                   # [CHUNK, 1]
        w1c1 = p_ref[s:s + CHUNK, 1:2]
        b1c = p_ref[s:s + CHUNK, 2:3]
        w2c = p_ref[s:s + CHUNK, 3:4]
        h = jnp.maximum(w1c0 * x0 + w1c1 * x1 + b1c, 0.0)        # [CHUNK, tb]
        acc = acc + jnp.sum(h * w2c, axis=0, keepdims=True)      # [1, tb]
    o_ref[...] = acc + b2_ref[0]                         # scalar bias from SMEM


def net_forward(x, w1, b1, w2, b2, *, max_tb=8192):
    """Forward pass of Net (default branch): fc2(relu(fc1(x))).

    Native PyTorch layouts:
      x : [B, 2] f32
      w1: [H, 2] (fc1.weight),  b1: [H] (fc1.bias)
      w2: [1, H] (fc2.weight),  b2: [1] (fc2.bias)
    Returns [B, 1] f32.
    """
    B, in_dim = x.shape
    H = w1.shape[0]
    assert in_dim == 2 and w2.shape == (1, H) and b1.shape == (H,) and b2.shape == (1,)

    # Pack all parameters into one [Hp, 4] block (hidden dim padded to a CHUNK
    # multiple; zero rows are killed by ReLU / zero w2 entries).
    Hp = pl.cdiv(H, CHUNK) * CHUNK
    params = jnp.concatenate([w1, b1.reshape(H, 1), w2.T], axis=1)   # [H, 4]
    if Hp != H:
        params = jnp.pad(params, ((0, Hp - H), (0, 0)))

    # Batch tiling: single grid step when the lane-padded batch fits the tile
    # budget (best for 1-TC v5e/v6e); otherwise an even number of equal tiles
    # (balanced work for a 2-TC v7x).
    Bp0 = pl.cdiv(B, LANE) * LANE
    if Bp0 <= max_tb:
        tb, n_tiles = Bp0, 1
    else:
        n_tiles = pl.cdiv(Bp0, max_tb)
        if n_tiles % 2 == 1:
            n_tiles += 1
        tb = pl.cdiv(pl.cdiv(Bp0, n_tiles), LANE) * LANE
    Bp = tb * n_tiles

    # Layout plumbing (fuses into the surrounding jit): transpose + pad batch.
    x_t = x.T                                            # [2, B]
    if Bp != B:
        x_t = jnp.pad(x_t, ((0, 0), (0, Bp - B)))

    cost = pl.CostEstimate(
        flops=int(7 * B * H),            # fc1 MACs + relu + fc2 MACs (approx)
        transcendentals=0,
        bytes_accessed=int(4 * (2 * B + 4 * Hp + B)),
    )

    out_t = pl.pallas_call(
        mlp_kernel,
        out_shape=jax.ShapeDtypeStruct((1, Bp), jnp.float32),
        grid_spec=pltpu.PrefetchScalarGridSpec(
            num_scalar_prefetch=0,
            grid=(n_tiles,),
            in_specs=[
                pl.BlockSpec((2, tb), lambda i: (0, i)),             # x^T tile (lane-dense)
                pl.BlockSpec((Hp, 4), lambda i: (0, 0)),             # packed params (constant)
                pl.BlockSpec(memory_space=pltpu.MemorySpace.SMEM),   # b2 scalar in SMEM
            ],
            out_specs=pl.BlockSpec((1, tb), lambda i: (0, i)),       # lane-dense output
        ),
        compiler_params=pltpu.CompilerParams(
            dimension_semantics=("parallel",)),
        cost_estimate=cost,
    )(x_t, params, b2)

    return out_t[:, :B].T                                # [B, 1]


if __name__ == "__main__":
    # Real model dims (hidden_dim = 500, padded to 512 inside) at a small batch.
    B, IN, H, OUT = 256, 2, 500, 1

    key = jax.random.PRNGKey(0)
    kx, k1, k2, k3, k4 = jax.random.split(key, 5)
    x = jax.random.normal(kx, (B, IN), jnp.float32)

    # PyTorch nn.Linear-style init: U(-1/sqrt(fan_in), +1/sqrt(fan_in)).
    bound1 = 1.0 / (IN ** 0.5)
    bound2 = 1.0 / (H ** 0.5)
    w1 = jax.random.uniform(k1, (H, IN), jnp.float32, -bound1, bound1)    # fc1.weight
    b1 = jax.random.uniform(k2, (H,), jnp.float32, -bound1, bound1)       # fc1.bias
    w2 = jax.random.uniform(k3, (OUT, H), jnp.float32, -bound2, bound2)   # fc2.weight
    b2 = jax.random.uniform(k4, (OUT,), jnp.float32, -bound2, bound2)     # fc2.bias

    fwd = jax.jit(net_forward)
    out = jax.block_until_ready(fwd(x, w1, b1, w2, b2))

    # Pure-JAX reference (torch-layout math).
    ref = jnp.maximum(x @ w1.T + b1, 0.0) @ w2.T + b2
    assert out.shape == (B, OUT)
    err = float(jnp.max(jnp.abs(out - ref)))
    assert jnp.allclose(out, ref, atol=1e-4, rtol=1e-4), err

    print("KERNEL_OK")
</pallas_src>

<mosaic_0001>
module attributes {stable_mosaic.version = 11 : i64} {
  func.func @mlp_kernel(%arg0: i32, %arg1: memref<2x256xf32, #tpu.memory_space<vmem>>, %arg2: memref<512x4xf32, #tpu.memory_space<vmem>>, %arg3: memref<1xf32, #tpu.memory_space<smem>>, %arg4: memref<1x256xf32, #tpu.memory_space<vmem>>) attributes {dimension_semantics = [#tpu.dimension_semantics<parallel>], iteration_bounds = array<i64: 1>, scalar_prefetch = 0 : i64, scratch_operands = 0 : i64, tpu.core_type = #tpu.core_type<tc>, window_params = [{transform_indices = @transform_0, window_bounds = array<i64: 2, 256>}, {pipeline_mode = #tpu.pipeline_mode<synchronous>, transform_indices = @transform_1, window_bounds = array<i64: 512, 4>}, {transform_indices = @transform_2, window_bounds = array<i64: 1>}, {transform_indices = @transform_3, window_bounds = array<i64: 1, 256>}]} {
    %c0 = arith.constant 0 : index
    %c0_0 = arith.constant 0 : index
    %0 = vector.load %arg1[%c0, %c0_0] : memref<2x256xf32, #tpu.memory_space<vmem>>, vector<1x256xf32>
    %c1 = arith.constant 1 : index
    %c0_1 = arith.constant 0 : index
    %1 = vector.load %arg1[%c1, %c0_1] : memref<2x256xf32, #tpu.memory_space<vmem>>, vector<1x256xf32>
    %cst = arith.constant 0.000000e+00 : f32
    %2 = vector.broadcast %cst : f32 to vector<1x256xf32>
    %c0_2 = arith.constant 0 : index
    %c0_3 = arith.constant 0 : index
    %3 = vector.load %arg2[%c0_2, %c0_3] : memref<512x4xf32, #tpu.memory_space<vmem>>, vector<128x1xf32>
    %c0_4 = arith.constant 0 : index
    %c1_5 = arith.constant 1 : index
    %4 = vector.load %arg2[%c0_4, %c1_5] : memref<512x4xf32, #tpu.memory_space<vmem>>, vector<128x1xf32>
    %c0_6 = arith.constant 0 : index
    %c2 = arith.constant 2 : index
    %5 = vector.load %arg2[%c0_6, %c2] : memref<512x4xf32, #tpu.memory_space<vmem>>, vector<128x1xf32>
    %c0_7 = arith.constant 0 : index
    %c3 = arith.constant 3 : index
    %6 = vector.load %arg2[%c0_7, %c3] : memref<512x4xf32, #tpu.memory_space<vmem>>, vector<128x1xf32>
    %7 = vector.broadcast %3 : vector<128x1xf32> to vector<128x256xf32>
    %8 = vector.broadcast %0 : vector<1x256xf32> to vector<128x256xf32>
    %9 = arith.mulf %7, %8 : vector<128x256xf32>
    %10 = vector.broadcast %4 : vector<128x1xf32> to vector<128x256xf32>
    %11 = vector.broadcast %1 : vector<1x256xf32> to vector<128x256xf32>
    %12 = arith.mulf %10, %11 : vector<128x256xf32>
    %13 = arith.addf %9, %12 : vector<128x256xf32>
    %14 = vector.broadcast %5 : vector<128x1xf32> to vector<128x256xf32>
    %15 = arith.addf %13, %14 : vector<128x256xf32>
    %cst_8 = arith.constant 0.000000e+00 : f32
    %16 = vector.broadcast %cst_8 : f32 to vector<128x256xf32>
    %17 = arith.maximumf %15, %16 : vector<128x256xf32>
    %18 = vector.broadcast %6 : vector<128x1xf32> to vector<128x256xf32>
    %19 = arith.mulf %17, %18 : vector<128x256xf32>
    %cst_9 = arith.constant dense<0.000000e+00> : vector<256xf32>
    %20 = vector.multi_reduction <add>, %19, %cst_9 [0] : vector<128x256xf32> to vector<256xf32>
    %21 = vector.shape_cast %20 : vector<256xf32> to vector<1x256xf32>
    %22 = arith.addf %2, %21 : vector<1x256xf32>
    %c128 = arith.constant 128 : index
    %c0_10 = arith.constant 0 : index
    %23 = vector.load %arg2[%c128, %c0_10] : memref<512x4xf32, #tpu.memory_space<vmem>>, vector<128x1xf32>
    %c128_11 = arith.constant 128 : index
    %c1_12 = arith.constant 1 : index
    %24 = vector.load %arg2[%c128_11, %c1_12] : memref<512x4xf32, #tpu.memory_space<vmem>>, vector<128x1xf32>
    %c128_13 = arith.constant 128 : index
    %c2_14 = arith.constant 2 : index
    %25 = vector.load %arg2[%c128_13, %c2_14] : memref<512x4xf32, #tpu.memory_space<vmem>>, vector<128x1xf32>
    %c128_15 = arith.constant 128 : index
    %c3_16 = arith.constant 3 : index
    %26 = vector.load %arg2[%c128_15, %c3_16] : memref<512x4xf32, #tpu.memory_space<vmem>>, vector<128x1xf32>
    %27 = vector.broadcast %23 : vector<128x1xf32> to vector<128x256xf32>
    %28 = vector.broadcast %0 : vector<1x256xf32> to vector<128x256xf32>
    %29 = arith.mulf %27, %28 : vector<128x256xf32>
    %30 = vector.broadcast %24 : vector<128x1xf32> to vector<128x256xf32>
    %31 = vector.broadcast %1 : vector<1x256xf32> to vector<128x256xf32>
    %32 = arith.mulf %30, %31 : vector<128x256xf32>
    %33 = arith.addf %29, %32 : vector<128x256xf32>
    %34 = vector.broadcast %25 : vector<128x1xf32> to vector<128x256xf32>
    %35 = arith.addf %33, %34 : vector<128x256xf32>
    %cst_17 = arith.constant 0.000000e+00 : f32
    %36 = vector.broadcast %cst_17 : f32 to vector<128x256xf32>
    %37 = arith.maximumf %35, %36 : vector<128x256xf32>
    %38 = vector.broadcast %26 : vector<128x1xf32> to vector<128x256xf32>
    %39 = arith.mulf %37, %38 : vector<128x256xf32>
    %cst_18 = arith.constant dense<0.000000e+00> : vector<256xf32>
    %40 = vector.multi_reduction <add>, %39, %cst_18 [0] : vector<128x256xf32> to vector<256xf32>
    %41 = vector.shape_cast %40 : vector<256xf32> to vector<1x256xf32>
    %42 = arith.addf %22, %41 : vector<1x256xf32>
    %c256 = arith.constant 256 : index
    %c0_19 = arith.constant 0 : index
    %43 = vector.load %arg2[%c256, %c0_19] : memref<512x4xf32, #tpu.memory_space<vmem>>, vector<128x1xf32>
    %c256_20 = arith.constant 256 : index
    %c1_21 = arith.constant 1 : index
    %44 = vector.load %arg2[%c256_20, %c1_21] : memref<512x4xf32, #tpu.memory_space<vmem>>, vector<128x1xf32>
    %c256_22 = arith.constant 256 : index
    %c2_23 = arith.constant 2 : index
    %45 = vector.load %arg2[%c256_22, %c2_23] : memref<512x4xf32, #tpu.memory_space<vmem>>, vector<128x1xf32>
    %c256_24 = arith.constant 256 : index
    %c3_25 = arith.constant 3 : index
    %46 = vector.load %arg2[%c256_24, %c3_25] : memref<512x4xf32, #tpu.memory_space<vmem>>, vector<128x1xf32>
    %47 = vector.broadcast %43 : vector<128x1xf32> to vector<128x256xf32>
    %48 = vector.broadcast %0 : vector<1x256xf32> to vector<128x256xf32>
    %49 = arith.mulf %47, %48 : vector<128x256xf32>
    %50 = vector.broadcast %44 : vector<128x1xf32> to vector<128x256xf32>
    %51 = vector.broadcast %1 : vector<1x256xf32> to vector<128x256xf32>
    %52 = arith.mulf %50, %51 : vector<128x256xf32>
    %53 = arith.addf %49, %52 : vector<128x256xf32>
    %54 = vector.broadcast %45 : vector<128x1xf32> to vector<128x256xf32>
    %55 = arith.addf %53, %54 : vector<128x256xf32>
    %cst_26 = arith.constant 0.000000e+00 : f32
    %56 = vector.broadcast %cst_26 : f32 to vector<128x256xf32>
    %57 = arith.maximumf %55, %56 : vector<128x256xf32>
    %58 = vector.broadcast %46 : vector<128x1xf32> to vector<128x256xf32>
    %59 = arith.mulf %57, %58 : vector<128x256xf32>
    %cst_27 = arith.constant dense<0.000000e+00> : vector<256xf32>
    %60 = vector.multi_reduction <add>, %59, %cst_27 [0] : vector<128x256xf32> to vector<256xf32>
    %61 = vector.shape_cast %60 : vector<256xf32> to vector<1x256xf32>
    %62 = arith.addf %42, %61 : vector<1x256xf32>
    %c384 = arith.constant 384 : index
    %c0_28 = arith.constant 0 : index
    %63 = vector.load %arg2[%c384, %c0_28] : memref<512x4xf32, #tpu.memory_space<vmem>>, vector<128x1xf32>
    %c384_29 = arith.constant 384 : index
    %c1_30 = arith.constant 1 : index
    %64 = vector.load %arg2[%c384_29, %c1_30] : memref<512x4xf32, #tpu.memory_space<vmem>>, vector<128x1xf32>
    %c384_31 = arith.constant 384 : index
    %c2_32 = arith.constant 2 : index
    %65 = vector.load %arg2[%c384_31, %c2_32] : memref<512x4xf32, #tpu.memory_space<vmem>>, vector<128x1xf32>
    %c384_33 = arith.constant 384 : index
    %c3_34 = arith.constant 3 : index
    %66 = vector.load %arg2[%c384_33, %c3_34] : memref<512x4xf32, #tpu.memory_space<vmem>>, vector<128x1xf32>
    %67 = vector.broadcast %63 : vector<128x1xf32> to vector<128x256xf32>
    %68 = vector.broadcast %0 : vector<1x256xf32> to vector<128x256xf32>
    %69 = arith.mulf %67, %68 : vector<128x256xf32>
    %70 = vector.broadcast %64 : vector<128x1xf32> to vector<128x256xf32>
    %71 = vector.broadcast %1 : vector<1x256xf32> to vector<128x256xf32>
    %72 = arith.mulf %70, %71 : vector<128x256xf32>
    %73 = arith.addf %69, %72 : vector<128x256xf32>
    %74 = vector.broadcast %65 : vector<128x1xf32> to vector<128x256xf32>
    %75 = arith.addf %73, %74 : vector<128x256xf32>
    %cst_35 = arith.constant 0.000000e+00 : f32
    %76 = vector.broadcast %cst_35 : f32 to vector<128x256xf32>
    %77 = arith.maximumf %75, %76 : vector<128x256xf32>
    %78 = vector.broadcast %66 : vector<128x1xf32> to vector<128x256xf32>
    %79 = arith.mulf %77, %78 : vector<128x256xf32>
    %cst_36 = arith.constant dense<0.000000e+00> : vector<256xf32>
    %80 = vector.multi_reduction <add>, %79, %cst_36 [0] : vector<128x256xf32> to vector<256xf32>
    %81 = vector.shape_cast %80 : vector<256xf32> to vector<1x256xf32>
    %82 = arith.addf %62, %81 : vector<1x256xf32>
    %c0_37 = arith.constant 0 : index
    %83 = memref.load %arg3[%c0_37] : memref<1xf32, #tpu.memory_space<smem>>
    %84 = vector.broadcast %83 : f32 to vector<1x256xf32>
    %85 = arith.addf %82, %84 : vector<1x256xf32>
    %c0_38 = arith.constant 0 : index
    %c0_39 = arith.constant 0 : index
    %86 = vector.load %arg4[%c0_38, %c0_39] : memref<1x256xf32, #tpu.memory_space<vmem>>, vector<1x256xf32>
    tpu.vector_store %arg4[%c0_38, %c0_39], %85 {strides = array<i32>} : memref<1x256xf32, #tpu.memory_space<vmem>>, vector<1x256xf32>,
    return
  }
  func.func @transform_0(%arg0: i32) -> (i32, i32) {
    %c0_i32 = arith.constant 0 : i32
    %c0_i32_0 = arith.constant 0 : i32
    return %c0_i32, %arg0 : i32, i32
  }
  func.func @transform_1(%arg0: i32) -> (i32, i32) {
    %c0_i32 = arith.constant 0 : i32
    %c0_i32_0 = arith.constant 0 : i32
    %c0_i32_1 = arith.constant 0 : i32
    return %c0_i32, %c0_i32_0 : i32, i32
  }
  func.func @transform_2(%arg0: i32) -> i32 {
    %c0_i32 = arith.constant 0 : i32
    %c0_i32_0 = arith.constant 0 : i32
    return %c0_i32 : i32
  }
  func.func @transform_3(%arg0: i32) -> (i32, i32) {
    %c0_i32 = arith.constant 0 : i32
    %c0_i32_0 = arith.constant 0 : i32
    return %c0_i32, %arg0 : i32, i32
  }
}

</mosaic_0001>

<bundles_post_ra>
// kernel: net_forward.1
= control target key start
LH: loop header
LB: loop body
LE: loop exit
PB: predicated region body
PF: predicated region fallthrough
CT: control target
= control target key end

     0   :  { %v4745_v2 = vmov 0   ;;  %s4741_s0 = inlined_call_operand.vmem [shape: f32[2,256], index: 0, kind: input, shape index: {}]   ;;  %s4742_s1 = inlined_call_operand.vmem [shape: f32[512,4], index: 1, kind: input, shape index: {}]   ;;  %s4743_s2 = inlined_call_operand.<no memory space> [shape: f32[1], index: 2, kind: input, shape index: {}]   ;;  %s4744_s3 = inlined_call_operand.hbm [shape: f32[1,256], index: 3, kind: output, shape index: {}]  }
   0x1   :  { %v2273_v0 = vld [vmem:[%s4742_s1 + $0x10] sm:$0xff]  ;;  %v2278_v1 = vld [vmem:[%s4742_s1] sm:$0xff]  ;;  %2186 = vset.pattern.permute.xlu1 %v4745_v2  ;;  %2185 = vset.pattern.permute.xlu0 %v4745_v2  ;;  %v2287_v3 = vld [vmem:[%s4742_s1 + $0x18] sm:$0xff] }
   0x2   :  { %47 = vperm.xlu1 %2186, %v2273_v0   ;;  %37 = vperm.xlu0 %2185, %v2278_v1   ;;  %v2292_v4 = vld [vmem:[%s4742_s1 + $0x8] sm:$0xff]  ;;  %v2304_v6 = vld [vmem:[%s4742_s1 + $0x20] sm:$0xff]  ;;  %v2311_v7 = vld [vmem:[%s4742_s1 + $0x38] sm:$0xff] }
   0x3   :  { %v2299_v5 = vld [vmem:[%s4742_s1 + $0x28] sm:$0xff]  ;;  %v2316_v8 = vld [vmem:[%s4742_s1 + $0x30] sm:$0xff] }
   0x6   :  { %52 = vperm.xlu1 %2186, %v2287_v3   ;;  %42 = vperm.xlu0 %2185, %v2292_v4  }
   0xa   :  { %62 = vperm.xlu1 %2186, %v2299_v5   ;;  %57 = vperm.xlu0 %2185, %v2304_v6  }
   0xb   :  { %9 = vsyncpa [#allocation4], 0  ;;  %v2323_v9 = vld [vmem:[%s4742_s1 + $0x48] sm:$0xff]  ;;  %v2328_v10 = vld [vmem:[%s4742_s1 + $0x40] sm:$0xff]  ;;  %v4751_v18 = vmov 1   ;;  %v4749_v27 = vmov 2  }
   0xc   :  { %v2335_v11 = vld [vmem:[%s4742_s1 + $0x58] sm:$0xff]  ;;  %v2340_v12 = vld [vmem:[%s4742_s1 + $0x50] sm:$0xff]  ;;  %v2347_v13 = vld [vmem:[%s4742_s1 + $0x68] sm:$0xff]  ;;  %v4747_v38 = vmov 3   ;;  %s2249_s11 = smov [#allocation3]  }
   0xd   :  { %v2352_v14 = vld [vmem:[%s4742_s1 + $0x60] sm:$0xff]  ;;  %v2359_v15 = vld [vmem:[%s4742_s1 + $0x78] sm:$0xff]  ;;  %v2364_v16 = vld [vmem:[%s4742_s1 + $0x70] sm:$0xff]  ;;  %s2170_s12 = sshll.u32 %s2249_s11, 4  ;;  %s2171_s12 = int_to_ptr.vmem [resolvable:$true] %s2170_s12 }
   0xe   :  { %72 = vperm.xlu1 %2186, %v2311_v7   ;;  %67 = vperm.xlu0 %2185, %v2316_v8   ;;  %v2371_v17 = vld [vmem:[%s4742_s1 + $0x88] sm:$0xff]  ;;  %v2379_v19 = vld [vmem:[%s4742_s1 + $0xa0] sm:$0xff]  ;;  %v2386_v20 = vld [vmem:[%s4742_s1 + $0xb0] sm:$0xff]  ;;  %s2222_s13 = scalar_lea.vmem %s2171_s12, 32  ;;  %p2227_p1 = scmp.lt.s32.totalorder %s2171_s12, %s2171_s12 }
   0xf   :  { %v2393_v21 = vld [vmem:[%s4742_s1 + $0xc0] sm:$0xff]  ;;  %v2400_v22 = vld [vmem:[%s4742_s1 + $0xd0] sm:$0xff]  ;;  %v2421_v25 = vld [vmem:[%s4742_s1 + $0x108] sm:$0xff]  ;;  %p2223_p0 = scmp.ne.s32.totalorder %s2171_s12, %s2222_s13  ;;  %p2228_p2 = scmp.lt.s32.totalorder %s2222_s13, %s2222_s13 }
  0x10   :  { %v2407_v23 = vld [vmem:[%s4742_s1 + $0xe0] sm:$0xff]  ;;  %v2414_v24 = vld [vmem:[%s4742_s1 + $0xf0] sm:$0xff]  ;;  %v2470_v33 = vld [vmem:[%s4742_s1 + $0x188] sm:$0xff] }
  0x11   :  { %v2428_v26 = vld [vmem:[%s4742_s1 + $0x120] sm:$0xff]  ;;  %v2435_v28 = vld [vmem:[%s4742_s1 + $0x130] sm:$0xff]  ;;  %v2548_v53 = vld [vmem:[%s4742_s1 + $0x98] sm:$0xff]  ;;  %p2229_p3 = por %p2228_p2, %p2227_p1 }
  0x12   :  { %82 = vperm.xlu1 %2186, %v2323_v9   ;;  %77 = vperm.xlu0 %2185, %v2328_v10   ;;  %v2442_v29 = vld [vmem:[%s4742_s1 + $0x140] sm:$0xff]  ;;  %v2449_v30 = vld [vmem:[%s4742_s1 + $0x150] sm:$0xff]  ;;  %v2559_v56 = vld [vmem:[%s4742_s1 + $0xa8] sm:$0xff] }
  0x13   :  { %v2456_v31 = vld [vmem:[%s4742_s1 + $0x160] sm:$0xff]  ;;  %v2463_v32 = vld [vmem:[%s4742_s1 + $0x170] sm:$0xff]  ;;  %v2570_v59 = vld [vmem:[%s4742_s1 + $0xb8] sm:$0xff]  ;;  %p2230_p4 = pnand %p2229_p3, %p2223_p0 }
  0x14   :  { %4977 = vst [vmem:[#allocation6_spill] sm:$0xff] %v2463_v32  ;;  %v1617_v34 = vld [vmem:[%s4742_s1 + $0x1a0] sm:$0xff]  ;;  %v1619_v35 = vld [vmem:[%s4742_s1 + $0x1b0] sm:$0xff]  ;;  %v2581_v62 = vld [vmem:[%s4742_s1 + $0xc8] sm:$0xff] }
  0x15   :  { %v1621_v36 = vld [vmem:[%s4742_s1 + $0x1c0] sm:$0xff]  ;;  %v1623_v37 = vld [vmem:[%s4742_s1 + $0x1d0] sm:$0xff] }
  0x16   :  { %92 = vperm.xlu1 %2186, %v2335_v11   ;;  %87 = vperm.xlu0 %2185, %v2340_v12   ;;  %v1625_v39 = vld [vmem:[%s4742_s1 + $0x1e0] sm:$0xff]  ;;  %v1627_v40 = vld [vmem:[%s4742_s1 + $0x1f0] sm:$0xff] }
  0x17   :  { %v2525_v47 = vld [vmem:[%s4742_s1 + $0x80] sm:$0xff]  ;;  %v2537_v50 = vld [vmem:[%s4742_s1 + $0x90] sm:$0xff] }
  0x1a   :  { %102 = vperm.xlu1 %2186, %v2347_v13   ;;  %97 = vperm.xlu0 %2185, %v2352_v14  }
  0x1e   :  { %112 = vperm.xlu1 %2186, %v2359_v15   ;;  %107 = vperm.xlu0 %2185, %v2364_v16  }
  0x22   :  { %2187 = vset.pattern.permute.xlu1 %v4751_v18  ;;  %588 = vperm.xlu0 %2185, %v2371_v17  }
  0x23   :  { %163 = vperm.xlu1 %2187, %v2292_v4  }
  0x26   :  { %603 = vperm.xlu0 %2185, %v2379_v19  }
  0x27   :  { %167 = vperm.xlu1 %2187, %v2273_v0  }
  0x2a   :  { %613 = vperm.xlu0 %2185, %v2386_v20  }
  0x2b   :  { %175 = vperm.xlu1 %2187, %v2304_v6  }
  0x2e   :  { %623 = vperm.xlu0 %2185, %v2393_v21  }
  0x2f   :  { %183 = vperm.xlu1 %2187, %v2316_v8  }
  0x32   :  { %633 = vperm.xlu0 %2185, %v2400_v22  }
  0x33   :  { %191 = vperm.xlu1 %2187, %v2328_v10  }
  0x36   :  { %643 = vperm.xlu0 %2185, %v2407_v23  }
  0x37   :  { %199 = vperm.xlu1 %2187, %v2340_v12  }
  0x3a   :  { %653 = vperm.xlu0 %2185, %v2414_v24  }
  0x3b   :  { %207 = vperm.xlu1 %2187, %v2352_v14  }
  0x3e   :  { %1112 = vperm.xlu0 %2185, %v2421_v25  }
  0x3f   :  { %215 = vperm.xlu1 %2187, %v2364_v16  }
  0x42   :  { %1127 = vperm.xlu0 %2185, %v2428_v26  }
  0x43   :  { %2188 = vset.pattern.permute.xlu1 %v4749_v27 }
  0x44   :  { %298 = vperm.xlu1 %2188, %v2278_v1  }
  0x46   :  { %1137 = vperm.xlu0 %2185, %v2435_v28  }
  0x48   :  { %306 = vperm.xlu1 %2188, %v2273_v0  }
  0x4a   :  { %1147 = vperm.xlu0 %2185, %v2442_v29  }
  0x4c   :  { %310 = vperm.xlu1 %2188, %v2287_v3  }
  0x4e   :  { %1157 = vperm.xlu0 %2185, %v2449_v30  }
  0x50   :  { %318 = vperm.xlu1 %2188, %v2299_v5  }
  0x52   :  { %1167 = vperm.xlu0 %2185, %v2456_v31  }
  0x54   :  { %326 = vperm.xlu1 %2188, %v2311_v7  }
  0x56   :  { %1177 = vperm.xlu0 %2185, %v2463_v32  }
  0x58   :  { %334 = vperm.xlu1 %2188, %v2323_v9  }
  0x5a   :  { %1636 = vperm.xlu0 %2185, %v2470_v33  }
  0x5c   :  { %342 = vperm.xlu1 %2188, %v2335_v11  }
  0x5e   :  { %1651 = vperm.xlu0 %2185, %v1617_v34   ;;  %v2592_v34 = vld [vmem:[%s4742_s1 + $0xd8] sm:$0xff] }
  0x60   :  { %350 = vperm.xlu1 %2188, %v2347_v13  }
  0x62   :  { %1661 = vperm.xlu0 %2185, %v1619_v35  }
  0x64   :  { %358 = vperm.xlu1 %2188, %v2359_v15  }
  0x66   :  { %1671 = vperm.xlu0 %2185, %v1621_v36  }
  0x68   :  { %2189 = vset.pattern.permute.xlu1 %v4747_v38 }
  0x69   :  { %430 = vperm.xlu1 %2189, %v2292_v4  }
  0x6a   :  { %1681 = vperm.xlu0 %2185, %v1623_v37   ;;  %v2603_v37 = vld [vmem:[%s4742_s1 + $0xe8] sm:$0xff] }
  0x6b   :  { %4989 = vst [vmem:[#allocation18_spill] sm:$0xff] %v2603_v37 }
  0x6d   :  { %434 = vperm.xlu1 %2189, %v2273_v0  }
  0x6e   :  { %1691 = vperm.xlu0 %2185, %v1625_v39  }
  0x71   :  { %442 = vperm.xlu1 %2189, %v2304_v6  }
  0x72   :  { %1701 = vperm.xlu0 %2185, %v1627_v40  }
  0x75   :  { %450 = vperm.xlu1 %2189, %v2316_v8  }
  0x76   :  { %2199 = vset.pattern.permute.xlu0 %v4751_v18 }
  0x77   :  { %159 = vperm.xlu0 %2199, %v2278_v1  }
  0x79   :  { %458 = vperm.xlu1 %2189, %v2328_v10  }
  0x7b   :  { %171 = vperm.xlu0 %2199, %v2287_v3  }
  0x7d   :  { %v2504_v41 = vpop.permute.xlu1 %47  ;;  %466 = vperm.xlu1 %2189, %v2340_v12   ;;  %v2507_v42 = vpop.permute.xlu0 %37 }
  0x7f   :  { %179 = vperm.xlu0 %2199, %v2299_v5  }
  0x81   :  { %v2510_v43 = vpop.permute.xlu1 %52  ;;  %474 = vperm.xlu1 %2189, %v2352_v14   ;;  %v2513_v44 = vpop.permute.xlu0 %42 }
  0x83   :  { %187 = vperm.xlu0 %2199, %v2311_v7  }
  0x85   :  { %v2516_v45 = vpop.permute.xlu1 %62  ;;  %482 = vperm.xlu1 %2189, %v2364_v16   ;;  %v2519_v46 = vpop.permute.xlu0 %57 }
  0x87   :  { %195 = vperm.xlu0 %2199, %v2323_v9  }
  0x89   :  { %v2527_v48 = vpop.permute.xlu1 %72  ;;  %2190 = vset.pattern.permute.xlu1 %v4745_v2  ;;  %v2530_v49 = vpop.permute.xlu0 %67  ;;  %v2614_v2 = vld [vmem:[%s4742_s1 + $0xf8] sm:$0xff] }
  0x8a   :  { %583 = vperm.xlu1 %2190, %v2525_v47  }
  0x8b   :  { %203 = vperm.xlu0 %2199, %v2335_v11  }
  0x8d   :  { %v2539_v51 = vpop.permute.xlu1 %82  ;;  %v2541_v52 = vpop.permute.xlu0 %77 }
  0x8e   :  { %4978 = vst [vmem:[#allocation7_spill] sm:$0xff] %v2541_v52  ;;  %593 = vperm.xlu1 %2190, %v2537_v50  }
  0x8f   :  { %211 = vperm.xlu0 %2199, %v2347_v13  }
  0x91   :  { %v2550_v54 = vpop.permute.xlu1 %92  ;;  %v2552_v55 = vpop.permute.xlu0 %87 }
  0x92   :  { %4979 = vst [vmem:[#allocation8_spill] sm:$0xff] %v2550_v54  ;;  %4980 = vst [vmem:[#allocation9_spill] sm:$0xff] %v2552_v55  ;;  %598 = vperm.xlu1 %2190, %v2548_v53  }
  0x93   :  { %219 = vperm.xlu0 %2199, %v2359_v15  }
  0x95   :  { %v2561_v57 = vpop.permute.xlu1 %102  ;;  %v2563_v58 = vpop.permute.xlu0 %97 }
  0x96   :  { %4981 = vst [vmem:[#allocation10_spill] sm:$0xff] %v2561_v57  ;;  %4982 = vst [vmem:[#allocation11_spill] sm:$0xff] %v2563_v58  ;;  %608 = vperm.xlu1 %2190, %v2559_v56  }
  0x97   :  { %694 = vperm.xlu0 %2199, %v2525_v47  }
  0x99   :  { %v2572_v60 = vpop.permute.xlu1 %112  ;;  %v2574_v61 = vpop.permute.xlu0 %107 }
  0x9a   :  { %4983 = vst [vmem:[#allocation12_spill] sm:$0xff] %v2572_v60  ;;  %4984 = vst [vmem:[#allocation13_spill] sm:$0xff] %v2574_v61  ;;  %618 = vperm.xlu1 %2190, %v2570_v59  }
  0x9b   :  { %706 = vperm.xlu0 %2199, %v2548_v53  }
  0x9d   :  { %v2583_v63 = vpop.permute.xlu0 %588 }
  0x9e   :  { %4985 = vst [vmem:[#allocation14_spill] sm:$0xff] %v2583_v63  ;;  %v2585_v0 = vpop.permute.xlu1 %163  ;;  %628 = vperm.xlu1 %2190, %v2581_v62  }
  0x9f   :  { %4986 = vst [vmem:[#allocation15_spill] sm:$0xff] %v2585_v0  ;;  %714 = vperm.xlu0 %2199, %v2559_v56   ;;  %v5016_v0 = vmov 2  }
  0xa1   :  { %v2594_v35 = vpop.permute.xlu0 %603 }
  0xa2   :  { %4987 = vst [vmem:[#allocation16_spill] sm:$0xff] %v2594_v35  ;;  %v2596_v36 = vpop.permute.xlu1 %167  ;;  %638 = vperm.xlu1 %2190, %v2592_v34   ;;  %v4996_v35 = vmov 1  }
  0xa3   :  { %4988 = vst [vmem:[#allocation17_spill] sm:$0xff] %v2596_v36  ;;  %722 = vperm.xlu0 %2199, %v2570_v59  }
  0xa5   :  { %v2605_v39 = vpop.permute.xlu0 %613 }
  0xa6   :  { %4990 = vst [vmem:[#allocation19_spill] sm:$0xff] %v2605_v39  ;;  %v2607_v40 = vpop.permute.xlu1 %175  ;;  %648 = vperm.xlu1 %2190, %v2603_v37  }
  0xa7   :  { %4991 = vst [vmem:[#allocation20_spill] sm:$0xff] %v2607_v40  ;;  %730 = vperm.xlu0 %2199, %v2581_v62  }
  0xa9   :  { %v2616_v38 = vpop.permute.xlu0 %623 }
  0xaa   :  { %4992 = vst [vmem:[#allocation21_spill] sm:$0xff] %v2616_v38  ;;  %v2618_v27 = vpop.permute.xlu1 %183  ;;  %658 = vperm.xlu1 %2190, %v2614_v2  }
  0xab   :  { %4993 = vst [vmem:[#allocation22_spill] sm:$0xff] %v2618_v27  ;;  %738 = vperm.xlu0 %2199, %v2592_v34  }
  0xad   :  { %v2622_v18 = vpop.permute.xlu0 %633 }
  0xae   :  { %4994 = vst [vmem:[#allocation23_spill] sm:$0xff] %v2622_v18  ;;  %v2624_v39 = vpop.permute.xlu1 %191  ;;  %2191 = vset.pattern.permute.xlu1 %v4996_v35  ;;  %v2638_v18 = vld [vmem:[%s4742_s1 + $0x100] sm:$0xff] }
  0xaf   :  { %4995 = vst [vmem:[#allocation24_spill] sm:$0xff] %v2624_v39  ;;  %698 = vperm.xlu1 %2191, %v2371_v17   ;;  %746 = vperm.xlu0 %2199, %v2603_v37  }
  0xb1   :  { %v2629_v63 = vpop.permute.xlu0 %643 }
  0xb2   :  { %4997 = vst [vmem:[#allocation25_spill] sm:$0xff] %v2629_v63  ;;  %v2631_v40 = vpop.permute.xlu1 %199  ;;  %v2649_v63 = vld [vmem:[%s4742_s1 + $0x118] sm:$0xff] }
  0xb3   :  { %4998 = vst [vmem:[#allocation26_spill] sm:$0xff] %v2631_v40  ;;  %702 = vperm.xlu1 %2191, %v2537_v50   ;;  %754 = vperm.xlu0 %2199, %v2614_v2  }
  0xb5   :  { %v2640_v38 = vpop.permute.xlu0 %653 }
  0xb6   :  { %4999 = vst [vmem:[#allocation27_spill] sm:$0xff] %v2640_v38  ;;  %v2642_v39 = vpop.permute.xlu1 %207  ;;  %v2660_v38 = vld [vmem:[%s4742_s1 + $0x128] sm:$0xff] }
  0xb7   :  { %5000 = vst [vmem:[#allocation28_spill] sm:$0xff] %v2642_v39  ;;  %710 = vperm.xlu1 %2191, %v2379_v19   ;;  %1218 = vperm.xlu0 %2199, %v2638_v18  }
  0xb9   :  { %v2651_v40 = vpop.permute.xlu0 %1112 }
  0xba   :  { %5001 = vst [vmem:[#allocation29_spill] sm:$0xff] %v2651_v40  ;;  %v2653_v27 = vpop.permute.xlu1 %215  ;;  %v2671_v40 = vld [vmem:[%s4742_s1 + $0x138] sm:$0xff] }
  0xbb   :  { %5002 = vst [vmem:[#allocation30_spill] sm:$0xff] %v2653_v27  ;;  %718 = vperm.xlu1 %2191, %v2386_v20   ;;  %1230 = vperm.xlu0 %2199, %v2649_v63   ;;  %5005 = vst [vmem:[#allocation33_spill] sm:$0xff] %v2671_v40 }
  0xbd   :  { %v2662_v39 = vpop.permute.xlu0 %1127 }
  0xbe   :  { %5003 = vst [vmem:[#allocation31_spill] sm:$0xff] %v2662_v39  ;;  %v2682_v39 = vld [vmem:[%s4742_s1 + $0x148] sm:$0xff] }
  0xbf   :  { %726 = vperm.xlu1 %2191, %v2393_v21   ;;  %v2665_v61 = vpop.permute.xlu1 %298  ;;  %1238 = vperm.xlu0 %2199, %v2660_v38   ;;  %5008 = vst [vmem:[#allocation36_spill] sm:$0xff] %v2682_v39 }
  0xc0   :  { %5004 = vst [vmem:[#allocation32_spill] sm:$0xff] %v2665_v61 }
  0xc1   :  { %v2673_v27 = vpop.permute.xlu0 %1137 }
  0xc2   :  { %5006 = vst [vmem:[#allocation34_spill] sm:$0xff] %v2673_v27  ;;  %v2693_v27 = vld [vmem:[%s4742_s1 + $0x158] sm:$0xff] }
  0xc3   :  { %734 = vperm.xlu1 %2191, %v2400_v22   ;;  %v2676_v36 = vpop.permute.xlu1 %306  ;;  %1246 = vperm.xlu0 %2199, %v2671_v40   ;;  %5011 = vst [vmem:[#allocation39_spill] sm:$0xff] %v2693_v27 }
  0xc4   :  { %5007 = vst [vmem:[#allocation35_spill] sm:$0xff] %v2676_v36 }
  0xc5   :  { %v2684_v61 = vpop.permute.xlu0 %1147 }
  0xc6   :  { %5009 = vst [vmem:[#allocation37_spill] sm:$0xff] %v2684_v61  ;;  %v2704_v61 = vld [vmem:[%s4742_s1 + $0x168] sm:$0xff] }
  0xc7   :  { %742 = vperm.xlu1 %2191, %v2407_v23   ;;  %v2687_v60 = vpop.permute.xlu1 %310  ;;  %1254 = vperm.xlu0 %2199, %v2682_v39   ;;  %5014 = vst [vmem:[#allocation42_spill] sm:$0xff] %v2704_v61 }
  0xc8   :  { %5010 = vst [vmem:[#allocation38_spill] sm:$0xff] %v2687_v60 }
  0xc9   :  { %v2695_v36 = vpop.permute.xlu0 %1157 }
  0xca   :  { %5012 = vst [vmem:[#allocation40_spill] sm:$0xff] %v2695_v36 }
  0xcb   :  { %750 = vperm.xlu1 %2191, %v2414_v24   ;;  %v2698_v58 = vpop.permute.xlu1 %318  ;;  %1262 = vperm.xlu0 %2199, %v2693_v27  }
  0xcc   :  { %5013 = vst [vmem:[#allocation41_spill] sm:$0xff] %v2698_v58  ;;  %v2716_v58 = vld [vmem:[%s4742_s1 + $0x178] sm:$0xff] }
  0xcd   :  { %v2706_v60 = vpop.permute.xlu0 %1167  ;;  %5018 = vst [vmem:[#allocation45_spill] sm:$0xff] %v2716_v58 }
  0xce   :  { %5015 = vst [vmem:[#allocation43_spill] sm:$0xff] %v2706_v60 }
  0xcf   :  { %2192 = vset.pattern.permute.xlu1 %v5016_v0  ;;  %v2709_v57 = vpop.permute.xlu1 %326  ;;  %1270 = vperm.xlu0 %2199, %v2704_v61  }
  0xd0   :  { %5017 = vst [vmem:[#allocation44_spill] sm:$0xff] %v2709_v57  ;;  %822 = vperm.xlu1 %2192, %v2525_v47   ;;  %v2727_v57 = vld [vmem:[%s4742_s1 + $0x180] sm:$0xff] }
  0xd1   :  { %v2718_v36 = vpop.permute.xlu0 %1177  ;;  %5021 = vst [vmem:[#allocation48_spill] sm:$0xff] %v2727_v57 }
  0xd2   :  { %5019 = vst [vmem:[#allocation46_spill] sm:$0xff] %v2718_v36 }
  0xd3   :  { %v2720_v55 = vpop.permute.xlu1 %334  ;;  %1278 = vperm.xlu0 %2199, %v2716_v58  }
  0xd4   :  { %5020 = vst [vmem:[#allocation47_spill] sm:$0xff] %v2720_v55  ;;  %830 = vperm.xlu1 %2192, %v2537_v50   ;;  %v2738_v55 = vld [vmem:[%s4742_s1 + $0x198] sm:$0xff] }
  0xd5   :  { %v2729_v60 = vpop.permute.xlu0 %1636  ;;  %5024 = vst [vmem:[#allocation51_spill] sm:$0xff] %v2738_v55 }
  0xd6   :  { %5022 = vst [vmem:[#allocation49_spill] sm:$0xff] %v2729_v60  ;;  %v2749_v60 = vld [vmem:[%s4742_s1 + $0x1a8] sm:$0xff] }
  0xd7   :  { %v2731_v54 = vpop.permute.xlu1 %342  ;;  %1742 = vperm.xlu0 %2199, %v2727_v57   ;;  %5027 = vst [vmem:[#allocation54_spill] sm:$0xff] %v2749_v60 }
  0xd8   :  { %5023 = vst [vmem:[#allocation50_spill] sm:$0xff] %v2731_v54  ;;  %834 = vperm.xlu1 %2192, %v2548_v53  }
  0xd9   :  { %v2740_v36 = vpop.permute.xlu0 %1651 }
  0xda   :  { %5025 = vst [vmem:[#allocation52_spill] sm:$0xff] %v2740_v36  ;;  %v2760_v36 = vld [vmem:[%s4742_s1 + $0x1b8] sm:$0xff] }
  0xdb   :  { %v2742_v52 = vpop.permute.xlu1 %350  ;;  %1754 = vperm.xlu0 %2199, %v2738_v55   ;;  %5030 = vst [vmem:[#allocation57_spill] sm:$0xff] %v2760_v36 }
  0xdc   :  { %5026 = vst [vmem:[#allocation53_spill] sm:$0xff] %v2742_v52  ;;  %842 = vperm.xlu1 %2192, %v2559_v56  }
  0xdd   :  { %v2751_v57 = vpop.permute.xlu0 %1661 }
  0xde   :  { %5028 = vst [vmem:[#allocation55_spill] sm:$0xff] %v2751_v57  ;;  %v2771_v57 = vld [vmem:[%s4742_s1 + $0x1c8] sm:$0xff] }
  0xdf   :  { %v2753_v54 = vpop.permute.xlu1 %358  ;;  %1762 = vperm.xlu0 %2199, %v2749_v60   ;;  %5033 = vst [vmem:[#allocation60_spill] sm:$0xff] %v2771_v57 }
  0xe0   :  { %5029 = vst [vmem:[#allocation56_spill] sm:$0xff] %v2753_v54  ;;  %850 = vperm.xlu1 %2192, %v2570_v59  }
  0xe1   :  { %v2762_v55 = vpop.permute.xlu0 %1671 }
  0xe2   :  { %5031 = vst [vmem:[#allocation58_spill] sm:$0xff] %v2762_v55  ;;  %v2782_v55 = vld [vmem:[%s4742_s1 + $0x1d8] sm:$0xff] }
  0xe3   :  { %1770 = vperm.xlu0 %2199, %v2760_v36   ;;  %5036 = vst [vmem:[#allocation63_spill] sm:$0xff] %v2782_v55 }
  0xe4   :  { %858 = vperm.xlu1 %2192, %v2581_v62   ;;  %v2766_v52 = vpop.permute.xlu1 %430 }
  0xe5   :  { %5032 = vst [vmem:[#allocation59_spill] sm:$0xff] %v2766_v52  ;;  %v2773_v60 = vpop.permute.xlu0 %1681 }
  0xe6   :  { %5034 = vst [vmem:[#allocation61_spill] sm:$0xff] %v2773_v60  ;;  %v2793_v60 = vld [vmem:[%s4742_s1 + $0x1e8] sm:$0xff] }
  0xe7   :  { %1778 = vperm.xlu0 %2199, %v2771_v57   ;;  %5039 = vst [vmem:[#allocation66_spill] sm:$0xff] %v2793_v60 }
  0xe8   :  { %866 = vperm.xlu1 %2192, %v2592_v34   ;;  %v2777_v54 = vpop.permute.xlu1 %434 }
  0xe9   :  { %5035 = vst [vmem:[#allocation62_spill] sm:$0xff] %v2777_v54  ;;  %v2784_v36 = vpop.permute.xlu0 %1691 }
  0xea   :  { %5037 = vst [vmem:[#allocation64_spill] sm:$0xff] %v2784_v36  ;;  %v1628_v36 = vld [vmem:[%s4742_s1 + $0x1f8] sm:$0xff] }
  0xeb   :  { %1786 = vperm.xlu0 %2199, %v2782_v55  }
  0xec   :  { %874 = vperm.xlu1 %2192, %v2603_v37   ;;  %v2788_v52 = vpop.permute.xlu1 %442 }
  0xed   :  { %5038 = vst [vmem:[#allocation65_spill] sm:$0xff] %v2788_v52  ;;  %v2795_v57 = vpop.permute.xlu0 %1701  ;;  %v5043_v52 = vmov 3  }
  0xee   :  { %5040 = vst [vmem:[#allocation67_spill] sm:$0xff] %v2795_v57 }
  0xef   :  { %1794 = vperm.xlu0 %2199, %v2793_v60  }
  0xf0   :  { %882 = vperm.xlu1 %2192, %v2614_v2   ;;  %v2799_v54 = vpop.permute.xlu1 %450 }
  0xf1   :  { %5041 = vst [vmem:[#allocation68_spill] sm:$0xff] %v2799_v54 }
  0xf2   :  { %v2804_v55 = vpop.permute.xlu0 %159 }
  0xf3   :  { %5042 = vst [vmem:[#allocation69_spill] sm:$0xff] %v2804_v55  ;;  %1802 = vperm.xlu0 %2199, %v1628_v36  }
  0xf4   :  { %2193 = vset.pattern.permute.xlu1 %v5043_v52  ;;  %v2807_v37 = vpop.permute.xlu1 %458 }
  0xf5   :  { %5044 = vst [vmem:[#allocation70_spill] sm:$0xff] %v2807_v37  ;;  %954 = vperm.xlu1 %2193, %v2371_v17  }
  0xf6   :  { %v2810_v57 = vpop.permute.xlu0 %171 }
  0xf7   :  { %2201 = vset.pattern.permute.xlu0 %v5016_v0 }
  0xf8   :  { %v2813_v60 = vpop.permute.xlu1 %466  ;;  %302 = vperm.xlu0 %2201, %v2292_v4  }
  0xf9   :  { %5045 = vst [vmem:[#allocation71_spill] sm:$0xff] %v2813_v60  ;;  %958 = vperm.xlu1 %2193, %v2537_v50  }
  0xfa   :  { %v2817_v54 = vpop.permute.xlu0 %179 }
  0xfc   :  { %v2819_v55 = vpop.permute.xlu1 %474  ;;  %314 = vperm.xlu0 %2201, %v2304_v6  }
  0xfd   :  { %5046 = vst [vmem:[#allocation72_spill] sm:$0xff] %v2819_v55  ;;  %966 = vperm.xlu1 %2193, %v2379_v19  }
  0xfe   :  { %v2823_v36 = vpop.permute.xlu0 %187 }
 0x100   :  { %v2825_v37 = vpop.permute.xlu1 %482  ;;  %322 = vperm.xlu0 %2201, %v2316_v8  }
 0x101   :  { %5047 = vst [vmem:[#allocation73_spill] sm:$0xff] %v2825_v37  ;;  %974 = vperm.xlu1 %2193, %v2386_v20  }
 0x102   :  { %v2829_v60 = vpop.permute.xlu0 %195 }
 0x104   :  { %330 = vperm.xlu0 %2201, %v2328_v10  }
 0x105   :  { %982 = vperm.xlu1 %2193, %v2393_v21   ;;  %v2833_v4 = vpop.permute.xlu1 %583 }
 0x106   :  { %5048 = vst [vmem:[#allocation74_spill] sm:$0xff] %v2833_v4  ;;  %v2835_v50 = vpop.permute.xlu0 %203 }
 0x108   :  { %338 = vperm.xlu0 %2201, %v2340_v12  }
 0x109   :  { %990 = vperm.xlu1 %2193, %v2400_v22   ;;  %v2839_v6 = vpop.permute.xlu1 %593 }
 0x10a   :  { %5049 = vst [vmem:[#allocation75_spill] sm:$0xff] %v2839_v6  ;;  %v2841_v37 = vpop.permute.xlu0 %211  ;;  %v5054_v6 = vmov 0  }
 0x10c   :  { %346 = vperm.xlu0 %2201, %v2352_v14  }
 0x10d   :  { %998 = vperm.xlu1 %2193, %v2407_v23   ;;  %v2845_v8 = vpop.permute.xlu1 %598 }
 0x10e   :  { %5050 = vst [vmem:[#allocation76_spill] sm:$0xff] %v2845_v8  ;;  %v2847_v10 = vpop.permute.xlu0 %219 }
 0x10f   :  { %5051 = vst [vmem:[#allocation77_spill] sm:$0xff] %v2847_v10 }
 0x110   :  { %354 = vperm.xlu0 %2201, %v2364_v16   ;;  %v2865_v16 = vld [vmem:[%s4742_s1 + $0x110] sm:$0xff] }
 0x111   :  { %1006 = vperm.xlu1 %2193, %v2414_v24   ;;  %v2851_v55 = vpop.permute.xlu1 %608 }
 0x112   :  { %5052 = vst [vmem:[#allocation78_spill] sm:$0xff] %v2851_v55  ;;  %v2853_v12 = vpop.permute.xlu0 %694 }
 0x113   :  { %5053 = vst [vmem:[#allocation79_spill] sm:$0xff] %v2853_v12  ;;  %v5125_v12 = vld [vmem:[#allocation17_spill] sm:$0xff] }
 0x114   :  { %826 = vperm.xlu0 %2201, %v2371_v17  }
 0x115   :  { %2194 = vset.pattern.permute.xlu1 %v5054_v6  ;;  %v2857_v4 = vpop.permute.xlu1 %618 }
 0x116   :  { %5055 = vst [vmem:[#allocation80_spill] sm:$0xff] %v2857_v4  ;;  %1107 = vperm.xlu1 %2194, %v2638_v18   ;;  %v2860_v14 = vpop.permute.xlu0 %706 }
 0x117   :  { %5056 = vst [vmem:[#allocation81_spill] sm:$0xff] %v2860_v14 }
 0x118   :  { %838 = vperm.xlu0 %2201, %v2379_v19  }
 0x119   :  { %v2868_v55 = vpop.permute.xlu1 %628 }
 0x11a   :  { %5057 = vst [vmem:[#allocation82_spill] sm:$0xff] %v2868_v55  ;;  %1117 = vperm.xlu1 %2194, %v2865_v16   ;;  %v2871_v17 = vpop.permute.xlu0 %714 }
 0x11b   :  { %5058 = vst [vmem:[#allocation83_spill] sm:$0xff] %v2871_v17 }
 0x11c   :  { %846 = vperm.xlu0 %2201, %v2386_v20  }
 0x11d   :  { %v2874_v4 = vpop.permute.xlu1 %638 }
 0x11e   :  { %5059 = vst [vmem:[#allocation84_spill] sm:$0xff] %v2874_v4  ;;  %1122 = vperm.xlu1 %2194, %v2649_v63   ;;  %v2877_v14 = vpop.permute.xlu0 %722 }
 0x11f   :  { %5060 = vst [vmem:[#allocation85_spill] sm:$0xff] %v2877_v14  ;;  %v5120_v14 = vld [vmem:[#allocation11_spill] sm:$0xff] }
 0x120   :  { %854 = vperm.xlu0 %2201, %v2393_v21  }
 0x121   :  { %v2880_v8 = vpop.permute.xlu1 %648 }
 0x122   :  { %5061 = vst [vmem:[#allocation86_spill] sm:$0xff] %v2880_v8  ;;  %1132 = vperm.xlu1 %2194, %v2660_v38   ;;  %v2883_v19 = vpop.permute.xlu0 %730 }
 0x123   :  { %5062 = vst [vmem:[#allocation87_spill] sm:$0xff] %v2883_v19 }
 0x124   :  { %862 = vperm.xlu0 %2201, %v2400_v22  }
 0x125   :  { %v2886_v55 = vpop.permute.xlu1 %658 }
 0x126   :  { %5063 = vst [vmem:[#allocation88_spill] sm:$0xff] %v2886_v55  ;;  %1142 = vperm.xlu1 %2194, %v2671_v40   ;;  %v2889_v20 = vpop.permute.xlu0 %738 }
 0x127   :  { %5064 = vst [vmem:[#allocation89_spill] sm:$0xff] %v2889_v20  ;;  %v5116_v20 = vld [vmem:[#allocation10_spill] sm:$0xff] }
 0x128   :  { %870 = vperm.xlu0 %2201, %v2407_v23  }
 0x12a   :  { %1152 = vperm.xlu1 %2194, %v2682_v39   ;;  %v2893_v4 = vpop.permute.xlu1 %698  ;;  %v2895_v21 = vpop.permute.xlu0 %746 }
 0x12b   :  { %5065 = vst [vmem:[#allocation90_spill] sm:$0xff] %v2893_v4  ;;  %5066 = vst [vmem:[#allocation91_spill] sm:$0xff] %v2895_v21 }
 0x12c   :  { %878 = vperm.xlu0 %2201, %v2414_v24  }
 0x12e   :  { %1162 = vperm.xlu1 %2194, %v2693_v27   ;;  %v2899_v8 = vpop.permute.xlu1 %702  ;;  %v2901_v22 = vpop.permute.xlu0 %754 }
 0x12f   :  { %5067 = vst [vmem:[#allocation92_spill] sm:$0xff] %v2899_v8  ;;  %5068 = vst [vmem:[#allocation93_spill] sm:$0xff] %v2901_v22 }
 0x130   :  { %1350 = vperm.xlu0 %2201, %v2421_v25  }
 0x132   :  { %1172 = vperm.xlu1 %2194, %v2704_v61   ;;  %v2905_v55 = vpop.permute.xlu1 %710  ;;  %v2907_v23 = vpop.permute.xlu0 %1218 }
 0x133   :  { %5069 = vst [vmem:[#allocation94_spill] sm:$0xff] %v2905_v55  ;;  %5070 = vst [vmem:[#allocation95_spill] sm:$0xff] %v2907_v23 }
 0x134   :  { %1362 = vperm.xlu0 %2201, %v2428_v26  }
 0x136   :  { %1182 = vperm.xlu1 %2194, %v2716_v58   ;;  %v2911_v4 = vpop.permute.xlu1 %718  ;;  %v2913_v24 = vpop.permute.xlu0 %1230 }
 0x137   :  { %5071 = vst [vmem:[#allocation96_spill] sm:$0xff] %v2911_v4  ;;  %5072 = vst [vmem:[#allocation97_spill] sm:$0xff] %v2913_v24 }
 0x138   :  { %1370 = vperm.xlu0 %2201, %v2435_v28  }
 0x13a   :  { %2195 = vset.pattern.permute.xlu1 %v4996_v35  ;;  %v2917_v22 = vpop.permute.xlu1 %726  ;;  %v2919_v8 = vpop.permute.xlu0 %1238 }
 0x13b   :  { %5073 = vst [vmem:[#allocation98_spill] sm:$0xff] %v2917_v22  ;;  %5074 = vst [vmem:[#allocation99_spill] sm:$0xff] %v2919_v8  ;;  %1222 = vperm.xlu1 %2195, %v2421_v25  }
 0x13c   :  { %1378 = vperm.xlu0 %2201, %v2442_v29  }
 0x13e   :  { %v2923_v23 = vpop.permute.xlu1 %734  ;;  %v2925_v55 = vpop.permute.xlu0 %1246 }
 0x13f   :  { %5075 = vst [vmem:[#allocation100_spill] sm:$0xff] %v2923_v23  ;;  %5076 = vst [vmem:[#allocation101_spill] sm:$0xff] %v2925_v55  ;;  %1226 = vperm.xlu1 %2195, %v2865_v16  }
 0x140   :  { %1386 = vperm.xlu0 %2201, %v2449_v30  }
 0x142   :  { %v2929_v24 = vpop.permute.xlu1 %742  ;;  %v2931_v4 = vpop.permute.xlu0 %1254 }
 0x143   :  { %5077 = vst [vmem:[#allocation102_spill] sm:$0xff] %v2929_v24  ;;  %5078 = vst [vmem:[#allocation103_spill] sm:$0xff] %v2931_v4  ;;  %1234 = vperm.xlu1 %2195, %v2428_v26  }
 0x144   :  { %1394 = vperm.xlu0 %2201, %v2456_v31  }
 0x146   :  { %v2935_v35 = vpop.permute.xlu1 %750  ;;  %v2937_v8 = vpop.permute.xlu0 %1262 }
 0x147   :  { %5079 = vst [vmem:[#allocation104_spill] sm:$0xff] %v2935_v35  ;;  %5080 = vst [vmem:[#allocation105_spill] sm:$0xff] %v2937_v8  ;;  %1242 = vperm.xlu1 %2195, %v2435_v28  }
 0x148   :  { %1402 = vperm.xlu0 %2201, %v2463_v32  }
 0x14a   :  { %v2941_v55 = vpop.permute.xlu0 %1270 }
 0x14b   :  { %5081 = vst [vmem:[#allocation106_spill] sm:$0xff] %v2941_v55  ;;  %1250 = vperm.xlu1 %2195, %v2442_v29   ;;  %v2944_v23 = vpop.permute.xlu1 %822 }
 0x14c   :  { %5082 = vst [vmem:[#allocation107_spill] sm:$0xff] %v2944_v23  ;;  %1874 = vperm.xlu0 %2201, %v2470_v33  }
 0x14e   :  { %v2947_v4 = vpop.permute.xlu0 %1278 }
 0x14f   :  { %5083 = vst [vmem:[#allocation108_spill] sm:$0xff] %v2947_v4  ;;  %1258 = vperm.xlu1 %2195, %v2449_v30   ;;  %v2950_v24 = vpop.permute.xlu1 %830 }
 0x150   :  { %5084 = vst [vmem:[#allocation109_spill] sm:$0xff] %v2950_v24  ;;  %2203 = vset.pattern.permute.xlu0 %v5043_v52  ;;  %v5111_v24 = vld [vmem:[#allocation7_spill] sm:$0xff] }
 0x151   :  { %426 = vperm.xlu0 %2203, %v2278_v1  }
 0x152   :  { %v2954_v8 = vpop.permute.xlu0 %1742 }
 0x153   :  { %5085 = vst [vmem:[#allocation110_spill] sm:$0xff] %v2954_v8  ;;  %1266 = vperm.xlu1 %2195, %v2456_v31   ;;  %v2957_v55 = vpop.permute.xlu1 %834 }
 0x154   :  { %5086 = vst [vmem:[#allocation111_spill] sm:$0xff] %v2957_v55 }
 0x155   :  { %438 = vperm.xlu0 %2203, %v2287_v3  }
 0x156   :  { %v2960_v23 = vpop.permute.xlu0 %1754 }
 0x157   :  { %5087 = vst [vmem:[#allocation112_spill] sm:$0xff] %v2960_v23  ;;  %1274 = vperm.xlu1 %2195, %v2463_v32   ;;  %v2963_v33 = vpop.permute.xlu1 %842 }
 0x158   :  { %5088 = vst [vmem:[#allocation113_spill] sm:$0xff] %v2963_v33 }
 0x159   :  { %446 = vperm.xlu0 %2203, %v2299_v5  }
 0x15a   :  { %v2966_v4 = vpop.permute.xlu0 %1762 }
 0x15b   :  { %5089 = vst [vmem:[#allocation114_spill] sm:$0xff] %v2966_v4  ;;  %2196 = vset.pattern.permute.xlu1 %v5016_v0  ;;  %v2969_v1 = vpop.permute.xlu1 %850 }
 0x15c   :  { %5090 = vst [vmem:[#allocation115_spill] sm:$0xff] %v2969_v1  ;;  %1346 = vperm.xlu1 %2196, %v2638_v18  }
 0x15d   :  { %454 = vperm.xlu0 %2203, %v2311_v7   ;;  %v4853_v7 = vlaneseq }
 0x15e   :  { %v2973_v8 = vpop.permute.xlu0 %1770 }
 0x15f   :  { %5091 = vst [vmem:[#allocation116_spill] sm:$0xff] %v2973_v8  ;;  %v2975_v3 = vpop.permute.xlu1 %858 }
 0x160   :  { %5092 = vst [vmem:[#allocation117_spill] sm:$0xff] %v2975_v3  ;;  %1354 = vperm.xlu1 %2196, %v2865_v16  }
 0x161   :  { %462 = vperm.xlu0 %2203, %v2323_v9  }
 0x162   :  { %v2979_v23 = vpop.permute.xlu0 %1778 }
 0x163   :  { %5093 = vst [vmem:[#allocation118_spill] sm:$0xff] %v2979_v23  ;;  %v2981_v5 = vpop.permute.xlu1 %866  ;;  %v2996_v23 = vshrl.u32 %v4853_v7, 7 }
 0x164   :  { %5094 = vst [vmem:[#allocation119_spill] sm:$0xff] %v2981_v5  ;;  %1358 = vperm.xlu1 %2196, %v2649_v63  }
 0x165   :  { %470 = vperm.xlu0 %2203, %v2335_v11   ;;  %5099 = vst [vmem:[#allocation124_spill] sm:$0xff] %v2996_v23 }
 0x166   :  { %v2985_v4 = vpop.permute.xlu0 %1786 }
 0x167   :  { %5095 = vst [vmem:[#allocation120_spill] sm:$0xff] %v2985_v4  ;;  %v2987_v0 = vpop.permute.xlu1 %874  ;;  %v118_v4 = vsub.s32 0, %v2996_v23 }
 0x168   :  { %5096 = vst [vmem:[#allocation121_spill] sm:$0xff] %v2987_v0  ;;  %1366 = vperm.xlu1 %2196, %v2660_v38   ;;  %v122_v0 = vsub.s32 1, %v2996_v23  ;;  %v2178_v23 = vld [vmem:[%s4741_s0 + $0x1] ss:$2 sm:$0x3] }
 0x169   :  { %478 = vperm.xlu0 %2203, %v2347_v13  }
 0x16a   :  { %v2991_v8 = vpop.permute.xlu0 %1794  ;;  %v3032_v5 = vrot.slane %v2178_v23, %v122_v0 }
 0x16b   :  { %5097 = vst [vmem:[#allocation122_spill] sm:$0xff] %v2991_v8  ;;  %v2993_v9 = vpop.permute.xlu1 %882  ;;  %v16_v8 = vld [vmem:[%s4741_s0] ss:$2 sm:$0x3] }
 0x16c   :  { %5098 = vst [vmem:[#allocation123_spill] sm:$0xff] %v2993_v9  ;;  %1374 = vperm.xlu1 %2196, %v2671_v40   ;;  %v3013_v9 = vrot.slane %v16_v8, %v118_v4 }
 0x16d   :  { %486 = vperm.xlu0 %2203, %v2359_v15   ;;  %v3015_v15 = vrot.slane %v16_v8, %v122_v0  ;;  %v3030_v8 = vrot.slane %v2178_v23, %v118_v4 }
 0x16e   :  { %v3000_v11 = vpop.permute.xlu0 %1802  ;;  %5103 = vst [vmem:[#allocation128_spill] sm:$0xff] %v3013_v9  ;;  %v3039_v3 = vmul.f32 %v3013_v9, %v2507_v42  ;;  %v128_v0 = vmul.f32 %v3013_v9, %v2513_v44  ;;  %v3086_v55 = vmul.f32 %v3013_v9, %v2539_v51 }
 0x16f   :  { %5100 = vst [vmem:[#allocation125_spill] sm:$0xff] %v3000_v11  ;;  %5104 = vst [vmem:[#allocation129_spill] sm:$0xff] %v3015_v15  ;;  %v129_v4 = vmul.f32 %v3015_v15, %v2513_v44  ;;  %v3064_v23 = vmul.f32 %v3015_v15, %v2516_v45  ;;  %v3076_v44 = vmul.f32 %v3015_v15, %v2527_v48 }
 0x170   :  { %1382 = vperm.xlu1 %2196, %v2682_v39   ;;  %v3005_v13 = vpop.permute.xlu1 %954  ;;  %5107 = vst [vmem:[#allocation132_spill] sm:$0xff] %v3030_v8  ;;  %v139_v33 = vmul.f32 %v3015_v15, %v2530_v49  ;;  %v3099_v35 = vmul.f32 %v3015_v15, %v5111_v24  ;;  %v5122_v39 = vld [vmem:[#allocation12_spill] sm:$0xff]  ;;  %v237_v40 = vmul.f32 %v3030_v8, %v5125_v12 }
 0x171   :  { %5101 = vst [vmem:[#allocation126_spill] sm:$0xff] %v3005_v13  ;;  %950 = vperm.xlu0 %2203, %v2525_v47   ;;  %v130_v47 = vmul.f32 %v3013_v9, %v2504_v41  ;;  %v3140_v6 = vmul.f32 %v3013_v9, %v5122_v39 }
 0x173   :  { %v3011_v7 = vpop.permute.xlu0 %302  ;;  %5123 = vst [vmem:[#allocation11_spill] sm:$0xff] %v3140_v6 }
 0x174   :  { %5102 = vst [vmem:[#allocation127_spill] sm:$0xff] %v3011_v7  ;;  %1390 = vperm.xlu1 %2196, %v2693_v27   ;;  %v3018_v11 = vpop.permute.xlu1 %958  ;;  %v131_v7 = vmul.f32 %v3015_v15, %v2504_v41  ;;  %v3051_v41 = vmul.f32 %v3015_v15, %v2510_v43  ;;  %v3132_v27 = vmul.f32 %v3015_v15, %v5120_v14 }
 0x175   :  { %5105 = vst [vmem:[#allocation130_spill] sm:$0xff] %v3018_v11  ;;  %962 = vperm.xlu0 %2203, %v2548_v53   ;;  %v3043_v53 = vmul.f32 %v3015_v15, %v2507_v42  ;;  %v3060_v42 = vmul.f32 %v3013_v9, %v2516_v45  ;;  %v138_v45 = vmul.f32 %v3013_v9, %v2530_v49  ;;  %v5112_v49 = vld [vmem:[#allocation8_spill] sm:$0xff] }
 0x176   :  { %v3103_v22 = vmul.f32 %v3013_v9, %v5112_v49  ;;  %v3107_v21 = vmul.f32 %v3015_v15, %v5112_v49  ;;  %v3124_v49 = vmul.f32 %v3015_v15, %v5116_v20 }
 0x177   :  { %v3024_v13 = vpop.permute.xlu0 %314 }
 0x178   :  { %5106 = vst [vmem:[#allocation131_spill] sm:$0xff] %v3024_v13  ;;  %1398 = vperm.xlu1 %2196, %v2704_v61   ;;  %v3035_v11 = vpop.permute.xlu1 %966  ;;  %v3047_v13 = vmul.f32 %v3013_v9, %v2510_v43  ;;  %v134_v43 = vmul.f32 %v3013_v9, %v2519_v46  ;;  %5113 = vst [vmem:[#allocation7_spill] sm:$0xff] %v3103_v22  ;;  %v5118_v61 = vld [vmem:[#allocation15_spill] sm:$0xff] }
 0x179   :  { %5108 = vst [vmem:[#allocation133_spill] sm:$0xff] %v3035_v11  ;;  %970 = vperm.xlu0 %2203, %v2559_v56   ;;  %v135_v56 = vmul.f32 %v3015_v15, %v2519_v46  ;;  %v3072_v11 = vmul.f32 %v3013_v9, %v2527_v48  ;;  %v3090_v46 = vmul.f32 %v3015_v15, %v2539_v51  ;;  %5114 = vst [vmem:[#allocation8_spill] sm:$0xff] %v3107_v21  ;;  %v5115_v51 = vld [vmem:[#allocation9_spill] sm:$0xff] }
 0x17a   :  { %v235_v19 = vmul.f32 %v3030_v8, %v5118_v61  ;;  %5119 = vst [vmem:[#allocation10_spill] sm:$0xff] %v3124_v49  ;;  %v5128_v49 = vld [vmem:[#allocation20_spill] sm:$0xff] }
 0x17b   :  { %v3078_v1 = vpop.permute.xlu0 %322 }
 0x17c   :  { %5109 = vst [vmem:[#allocation134_spill] sm:$0xff] %v3078_v1  ;;  %1406 = vperm.xlu1 %2196, %v2716_v58   ;;  %v3093_v48 = vpop.permute.xlu1 %974  ;;  %v142_v1 = vmul.f32 %v3013_v9, %v5111_v24  ;;  %v3114_v58 = vmul.f32 %v3015_v15, %v5115_v51  ;;  %v3118_v24 = vmul.f32 %v3013_v9, %v5116_v20 }
 0x17d   :  { %5110 = vst [vmem:[#allocation135_spill] sm:$0xff] %v3093_v48  ;;  %978 = vperm.xlu0 %2203, %v2570_v59   ;;  %v146_v48 = vmul.f32 %v3013_v9, %v5115_v51  ;;  %v3128_v59 = vmul.f32 %v3013_v9, %v5120_v14  ;;  %v236_v51 = vmul.f32 %v3032_v5, %v5118_v61  ;;  %v5127_v61 = vld [vmem:[#allocation13_spill] sm:$0xff] }
 0x17e   :  { %5117 = vst [vmem:[#allocation9_spill] sm:$0xff] %v3118_v24  ;;  %v3144_v20 = vmul.f32 %v3015_v15, %v5122_v39  ;;  %v238_v14 = vmul.f32 %v3032_v5, %v5125_v12  ;;  %v155_v6 = vmul.f32 %v3015_v15, %v5127_v61  ;;  %v241_v39 = vmul.f32 %v3030_v8, %v5128_v49 }
 0x17f   :  { %v3136_v17 = vpop.permute.xlu0 %330  ;;  %v3171_v24 = vadd.f32 %v235_v19, %v128_v0  ;;  %v5137_v19 = vld [vmem:[#allocation19_spill] sm:$0xff] }
 0x180   :  { %5121 = vst [vmem:[#allocation15_spill] sm:$0xff] %v3136_v17  ;;  %5124 = vst [vmem:[#allocation12_spill] sm:$0xff] %v3144_v20  ;;  %2197 = vset.pattern.permute.xlu1 %v5043_v52  ;;  %v3151_v32 = vpop.permute.xlu1 %982  ;;  %v154_v17 = vmul.f32 %v3013_v9, %v5127_v61  ;;  %v5129_v20 = vld [vmem:[#allocation14_spill] sm:$0xff]  ;;  %v5133_v61 = vld [vmem:[#allocation16_spill] sm:$0xff]  ;;  %v3191_v0 = vmul.f32 %v5137_v19, %v3013_v9 }
 0x181   :  { %5126 = vst [vmem:[#allocation17_spill] sm:$0xff] %v3151_v32  ;;  %1478 = vperm.xlu1 %2197, %v2421_v25   ;;  %986 = vperm.xlu0 %2203, %v2581_v62   ;;  %v3163_v12 = vmul.f32 %v5129_v20, %v3013_v9  ;;  %v3167_v52 = vmul.f32 %v5129_v20, %v3015_v15  ;;  %5132 = vst [vmem:[#allocation14_spill] sm:$0xff] %v3171_v24  ;;  %v5135_v25 = vld [vmem:[#allocation22_spill] sm:$0xff] }
 0x182   :  { %v242_v32 = vmul.f32 %v3032_v5, %v5128_v49  ;;  %v3175_v10 = vmul.f32 %v5133_v61, %v3013_v9  ;;  %v245_v62 = vmul.f32 %v3030_v8, %v5135_v25  ;;  %v246_v21 = vmul.f32 %v3032_v5, %v5135_v25 }
 0x183   :  { %5130 = vst [vmem:[#allocation13_spill] sm:$0xff] %v3163_v12  ;;  %5131 = vst [vmem:[#allocation20_spill] sm:$0xff] %v3167_v52  ;;  %v3181_v12 = vadd.f32 %v236_v51, %v129_v4  ;;  %v3183_v22 = vpop.permute.xlu0 %338  ;;  %v3187_v20 = vmul.f32 %v5133_v61, %v3015_v15  ;;  %v269_v49 = vadd.f32 %v237_v40, %v130_v47  ;;  %v5139_v4 = vld [vmem:[#allocation24_spill] sm:$0xff]  ;;  %v5140_v61 = vld [vmem:[#allocation21_spill] sm:$0xff] }
 0x184   :  { %5134 = vst [vmem:[#allocation16_spill] sm:$0xff] %v3175_v10  ;;  %5136 = vst [vmem:[#allocation22_spill] sm:$0xff] %v3183_v22  ;;  %v270_v24 = vadd.f32 %v238_v14, %v131_v7  ;;  %v3193_v10 = vpop.permute.xlu1 %990  ;;  %v3197_v52 = vmul.f32 %v5137_v19, %v3015_v15  ;;  %v249_v51 = vmul.f32 %v3030_v8, %v5139_v4  ;;  %v5141_v7 = vld [vmem:[#allocation26_spill] sm:$0xff] }
 0x185   :  { %5138 = vst [vmem:[#allocation19_spill] sm:$0xff] %v3193_v10  ;;  %v3201_v25 = vadd.f32 %v241_v39, %v134_v43  ;;  %1482 = vperm.xlu1 %2197, %v2865_v16   ;;  %994 = vperm.xlu0 %2203, %v2592_v34   ;;  %v3207_v22 = vmul.f32 %v5140_v61, %v3013_v9 }
 0x186   :  { %v250_v40 = vmul.f32 %v3032_v5, %v5139_v4  ;;  %v253_v47 = vmul.f32 %v3030_v8, %v5141_v7  ;;  %v3213_v14 = vadd.f32 %v242_v32, %v135_v56  ;;  %v3217_v43 = vmul.f32 %v5140_v61, %v3015_v15  ;;  %v5146_v4 = vld [vmem:[#allocation23_spill] sm:$0xff]  ;;  %v5147_v56 = vld [vmem:[#allocation28_spill] sm:$0xff] }
 0x187   :  { %v254_v16 = vmul.f32 %v3032_v5, %v5141_v7  ;;  %v3221_v34 = vadd.f32 %v245_v62, %v138_v45  ;;  %v3223_v39 = vadd.f32 %v246_v21, %v139_v33  ;;  %v3225_v19 = vpop.permute.xlu0 %346  ;;  %v3229_v10 = vmul.f32 %v5146_v4, %v3013_v9  ;;  %v5149_v21 = vld [vmem:[#allocation30_spill] sm:$0xff] }
 0x188   :  { %5142 = vst [vmem:[#allocation24_spill] sm:$0xff] %v3213_v14  ;;  %5145 = vst [vmem:[#allocation136_spill] sm:$0xff] %v3225_v19  ;;  %v3233_v32 = vmul.f32 %v5146_v4, %v3015_v15  ;;  %v257_v61 = vmul.f32 %v3030_v8, %v5147_v56  ;;  %v258_v7 = vmul.f32 %v3032_v5, %v5147_v56  ;;  %v3239_v45 = vpop.permute.xlu1 %998  ;;  %v5151_v4 = vld [vmem:[#allocation18_spill] sm:$0xff] }
 0x189   :  { %5143 = vst [vmem:[#allocation21_spill] sm:$0xff] %v3221_v34  ;;  %5144 = vst [vmem:[#allocation26_spill] sm:$0xff] %v3223_v39  ;;  %v261_v33 = vmul.f32 %v3030_v8, %v5149_v21  ;;  %v262_v62 = vmul.f32 %v3032_v5, %v5149_v21  ;;  %v3245_v19 = vadd.f32 %v249_v51, %v142_v1  ;;  %1490 = vperm.xlu1 %2197, %v2428_v26   ;;  %v5152_v39 = vld [vmem:[#allocation25_spill] sm:$0xff]  ;;  %v5153_v1 = vld [vmem:[#allocation27_spill] sm:$0xff] }
 0x18a   :  { %5148 = vst [vmem:[#allocation23_spill] sm:$0xff] %v3239_v45  ;;  %1002 = vperm.xlu0 %2203, %v5151_v4   ;;  %v3251_v34 = vmul.f32 %v5152_v39, %v3013_v9  ;;  %v3255_v56 = vmul.f32 %v5152_v39, %v3015_v15  ;;  %v3258_v45 = vadd.f32 %v250_v40, %v3099_v35  ;;  %v5154_v21 = vld [vmem:[#allocation35_spill] sm:$0xff]  ;;  %v5156_v35 = vld [vmem:[#allocation29_spill] sm:$0xff] }
 0x18b   :  { %5150 = vst [vmem:[#allocation28_spill] sm:$0xff] %v3245_v19  ;;  %v3260_v14 = vadd.f32 %v253_v47, %v146_v48  ;;  %v3264_v51 = vmul.f32 %v5153_v1, %v3013_v9  ;;  %v3268_v26 = vmul.f32 %v5153_v1, %v3015_v15  ;;  %v365_v4 = vadd.f32 %v5154_v21, %v269_v49  ;;  %v3274_v39 = vpop.permute.xlu0 %354 }
 0x18c   :  { %v3272_v19 = vadd.f32 %v254_v16, %v3114_v58  ;;  %5155 = vst [vmem:[#allocation30_spill] sm:$0xff] %v3274_v39  ;;  %v3278_v40 = vmul.f32 %v5156_v35, %v3013_v9  ;;  %v3282_v48 = vmul.f32 %v5156_v35, %v3015_v15  ;;  %v3285_v47 = vadd.f32 %v257_v61, %v3128_v59  ;;  %v3290_v49 = vpop.permute.xlu1 %1006  ;;  %v5162_v35 = vld [vmem:[#allocation31_spill] sm:$0xff]  ;;  %v5165_v59 = vld [vmem:[#allocation34_spill] sm:$0xff] }
 0x18d   :  { %v3288_v1 = vadd.f32 %v258_v7, %v3132_v27  ;;  %5159 = vst [vmem:[#allocation27_spill] sm:$0xff] %v3290_v49  ;;  %v366_v58 = vadd.f32 %v5154_v21, %v270_v24  ;;  %v3293_v16 = vadd.f32 %v261_v33, %v154_v17  ;;  %v3295_v39 = vadd.f32 %v262_v62, %v155_v6  ;;  %v5167_v17 = vld [vmem:[#allocation69_spill] sm:$0xff] }
 0x18e   :  { %5157 = vst [vmem:[#allocation18_spill] sm:$0xff] %v3278_v40  ;;  %5158 = vst [vmem:[#allocation25_spill] sm:$0xff] %v3282_v48  ;;  %1498 = vperm.xlu1 %2197, %v2435_v28   ;;  %1010 = vperm.xlu0 %2203, %v2614_v2   ;;  %v3301_v48 = vmul.f32 %v5162_v35, %v3013_v9  ;;  %v3305_v27 = vmul.f32 %v5162_v35, %v3015_v15  ;;  %v397_v2 = vmax.f32 %v365_v4, 0.0  ;;  %v5170_v62 = vld [vmem:[#allocation37_spill] sm:$0xff]  ;;  %v5226_v40 = vmov 0  }
 0x18f   :  { %5160 = vst [vmem:[#allocation35_spill] sm:$0xff] %v3293_v16  ;;  %5161 = vst [vmem:[#allocation29_spill] sm:$0xff] %v3295_v39  ;;  %v3309_v61 = vmul.f32 %v5165_v59, %v3013_v9  ;;  %v233_v6 = vmul.f32 %v3030_v8, %v5167_v17  ;;  %v3315_v28 = vmul.f32 %v5165_v59, %v3015_v15  ;;  %v3321_v33 = vpop.permute.xlu0 %826  ;;  %v5173_v59 = vld [vmem:[#allocation40_spill] sm:$0xff]  ;;  %v5259_v16 = vld [vmem:[#allocation54_spill] sm:$0xff] }
 0x190   :  { %5163 = vst [vmem:[#allocation31_spill] sm:$0xff] %v3301_v48  ;;  %5164 = vst [vmem:[#allocation137_spill] sm:$0xff] %v3305_v27  ;;  %v234_v24 = vmul.f32 %v3032_v5, %v5167_v17  ;;  %v239_v7 = vmul.f32 %v3030_v8, %v2810_v57  ;;  %v3325_v21 = vmul.f32 %v5170_v62, %v3013_v9  ;;  %v398_v17 = vmax.f32 %v366_v58, 0.0 }
 0x191   :  { %5166 = vst [vmem:[#allocation34_spill] sm:$0xff] %v3309_v61  ;;  %5168 = vst [vmem:[#allocation69_spill] sm:$0xff] %v3315_v28  ;;  %v3329_v35 = vmul.f32 %v5170_v62, %v3015_v15  ;;  %v3333_v28 = vmul.f32 %v5173_v59, %v3013_v9  ;;  %v240_v4 = vmul.f32 %v3032_v5, %v2810_v57  ;;  %v3346_v62 = vpop.permute.xlu1 %1107 }
 0x192   :  { %5169 = vst [vmem:[#allocation138_spill] sm:$0xff] %v3321_v33  ;;  %5171 = vst [vmem:[#allocation37_spill] sm:$0xff] %v3325_v21  ;;  %v3339_v61 = vmul.f32 %v5173_v59, %v3015_v15  ;;  %v243_v27 = vmul.f32 %v3030_v8, %v2817_v54  ;;  %v244_v21 = vmul.f32 %v3032_v5, %v2817_v54  ;;  %1506 = vperm.xlu1 %2197, %v2442_v29   ;;  %v5180_v59 = vld [vmem:[#allocation46_spill] sm:$0xff] }
 0x193   :  { %5172 = vst [vmem:[#allocation139_spill] sm:$0xff] %v3329_v35  ;;  %5174 = vst [vmem:[#allocation40_spill] sm:$0xff] %v3333_v28  ;;  %1474 = vperm.xlu0 %2203, %v2638_v18   ;;  %v5177_v28 = vld [vmem:[#allocation43_spill] sm:$0xff]  ;;  %v265_v54 = vadd.f32 %v233_v6, %v3039_v3  ;;  %v266_v29 = vadd.f32 %v234_v24, %v3043_v53  ;;  %v271_v35 = vadd.f32 %v239_v7, %v3047_v13  ;;  %v3368_v48 = vpop.permute.xlu0 %838 }
 0x194   :  { %5175 = vst [vmem:[#allocation140_spill] sm:$0xff] %v3339_v61  ;;  %5176 = vst [vmem:[#allocation141_spill] sm:$0xff] %v3346_v62  ;;  %v3351_v57 = vmul.f32 %v5177_v28, %v3013_v9  ;;  %v3355_v58 = vmul.f32 %v5177_v28, %v3015_v15  ;;  %v3359_v61 = vmul.f32 %v5180_v59, %v3013_v9 }
 0x195   :  { %v247_v18 = vmul.f32 %v3030_v8, %v2823_v36  ;;  %5182 = vst [vmem:[#allocation143_spill] sm:$0xff] %v3368_v48  ;;  %v3372_v28 = vmul.f32 %v5180_v59, %v3015_v15  ;;  %v272_v3 = vadd.f32 %v240_v4, %v3051_v41  ;;  %v251_v13 = vmul.f32 %v3030_v8, %v2829_v60  ;;  %v3385_v24 = vpop.permute.xlu1 %1117 }
 0x196   :  { %5178 = vst [vmem:[#allocation43_spill] sm:$0xff] %v3351_v57  ;;  %5179 = vst [vmem:[#allocation142_spill] sm:$0xff] %v3355_v58  ;;  %v248_v57 = vmul.f32 %v3032_v5, %v2823_v36  ;;  %v5184_v58 = vld [vmem:[#allocation62_spill] sm:$0xff]  ;;  %v275_v53 = vadd.f32 %v243_v27, %v3060_v42  ;;  %v276_v6 = vadd.f32 %v244_v21, %v3064_v23  ;;  %1514 = vperm.xlu1 %2197, %v2449_v30   ;;  %v5188_v27 = vld [vmem:[#allocation32_spill] sm:$0xff] }
 0x197   :  { %5181 = vst [vmem:[#allocation46_spill] sm:$0xff] %v3359_v61  ;;  %5183 = vst [vmem:[#allocation144_spill] sm:$0xff] %v3372_v28  ;;  %v3375_v61 = vmul.f32 %v5184_v58, %v397_v2  ;;  %v252_v36 = vmul.f32 %v3032_v5, %v2829_v60  ;;  %1486 = vperm.xlu0 %2203, %v2649_v63   ;;  %v3389_v2 = vmul.f32 %v5184_v58, %v398_v17  ;;  %v3400_v7 = vpop.permute.xlu0 %846  ;;  %v5192_v21 = vld [vmem:[#allocation38_spill] sm:$0xff] }
 0x198   :  { %5186 = vst [vmem:[#allocation145_spill] sm:$0xff] %v3385_v24  ;;  %v255_v41 = vmul.f32 %v3030_v8, %v2835_v50  ;;  %v256_v42 = vmul.f32 %v3032_v5, %v2835_v50  ;;  %v3396_v23 = vadd.f32 %v5188_v27, %v265_v54  ;;  %v279_v60 = vadd.f32 %v247_v18, %v3072_v11  ;;  %v5199_v54 = vld [vmem:[#allocation7_spill] sm:$0xff]  ;;  %v5210_v28 = vld [vmem:[#allocation6_spill] sm:$0xff] }
 0x199   :  { %5185 = vst [vmem:[#allocation62_spill] sm:$0xff] %v3375_v61  ;;  %5187 = vst [vmem:[#allocation146_spill] sm:$0xff] %v3389_v2  ;;  %v280_v30 = vadd.f32 %v248_v57, %v3076_v44  ;;  %v3403_v63 = vadd.f32 %v5188_v27, %v266_v29  ;;  %v3406_v4 = vadd.f32 %v5192_v21, %v271_v35  ;;  %v3418_v57 = vpop.permute.xlu1 %1122  ;;  %v5196_v35 = vld [vmem:[#allocation41_spill] sm:$0xff]  ;;  %v5239_v24 = vld [vmem:[#allocation39_spill] sm:$0xff] }
 0x19a   :  { %5189 = vst [vmem:[#allocation32_spill] sm:$0xff] %v3396_v23  ;;  %5190 = vst [vmem:[#allocation147_spill] sm:$0xff] %v3400_v7  ;;  %v283_v17 = vadd.f32 %v251_v13, %v3086_v55  ;;  %v259_v50 = vmul.f32 %v3030_v8, %v2841_v37  ;;  %v260_v58 = vmul.f32 %v3032_v5, %v2841_v37  ;;  %1522 = vperm.xlu1 %2197, %v2456_v31   ;;  %v5200_v37 = vld [vmem:[#allocation8_spill] sm:$0xff] }
 0x19b   :  { %5191 = vst [vmem:[#allocation148_spill] sm:$0xff] %v3403_v63  ;;  %5193 = vst [vmem:[#allocation38_spill] sm:$0xff] %v3406_v4  ;;  %v3414_v11 = vadd.f32 %v5192_v21, %v272_v3  ;;  %v284_v44 = vadd.f32 %v252_v36, %v3090_v46  ;;  %1494 = vperm.xlu0 %2203, %v2660_v38   ;;  %v3422_v59 = vadd.f32 %v5196_v35, %v275_v53  ;;  %v5201_v3 = vld [vmem:[#allocation77_spill] sm:$0xff]  ;;  %v3433_v46 = vpop.permute.xlu0 %854  ;;  %v5203_v36 = vld [vmem:[#allocation44_spill] sm:$0xff] }
 0x19c   :  { %5195 = vst [vmem:[#allocation150_spill] sm:$0xff] %v3418_v57  ;;  %v3425_v55 = vadd.f32 %v5196_v35, %v276_v6  ;;  %v287_v29 = vadd.f32 %v255_v41, %v5199_v54  ;;  %v288_v18 = vadd.f32 %v256_v42, %v5200_v37  ;;  %v263_v13 = vmul.f32 %v3030_v8, %v5201_v3  ;;  %v5206_v41 = vld [vmem:[#allocation9_spill] sm:$0xff]  ;;  %v5207_v21 = vld [vmem:[#allocation10_spill] sm:$0xff]  ;;  %v5208_v37 = vld [vmem:[#allocation47_spill] sm:$0xff] }
 0x19d   :  { %5194 = vst [vmem:[#allocation149_spill] sm:$0xff] %v3414_v11  ;;  %5197 = vst [vmem:[#allocation41_spill] sm:$0xff] %v3422_v59  ;;  %v264_v31 = vmul.f32 %v3032_v5, %v5201_v3  ;;  %v3438_v27 = vadd.f32 %v5203_v36, %v279_v60  ;;  %v3441_v6 = vadd.f32 %v5203_v36, %v280_v30  ;;  %v3450_v38 = vpop.permute.xlu1 %1132  ;;  %v5212_v53 = vld [vmem:[#allocation33_spill] sm:$0xff]  ;;  %v5216_v54 = vld [vmem:[#allocation50_spill] sm:$0xff] }
 0x19e   :  { %5198 = vst [vmem:[#allocation151_spill] sm:$0xff] %v3425_v55  ;;  %5202 = vst [vmem:[#allocation7_spill] sm:$0xff] %v3433_v46  ;;  %v291_v42 = vadd.f32 %v259_v50, %v5206_v41  ;;  %v292_v35 = vadd.f32 %v260_v58, %v5207_v21  ;;  %v3447_v3 = vadd.f32 %v5208_v37, %v283_v17  ;;  %1530 = vperm.xlu1 %2197, %v5210_v28   ;;  %v5214_v58 = vld [vmem:[#allocation11_spill] sm:$0xff]  ;;  %v5215_v21 = vld [vmem:[#allocation12_spill] sm:$0xff] }
 0x19f   :  { %5204 = vst [vmem:[#allocation8_spill] sm:$0xff] %v3438_v27  ;;  %5205 = vst [vmem:[#allocation77_spill] sm:$0xff] %v3441_v6  ;;  %1502 = vperm.xlu0 %2203, %v5212_v53   ;;  %v3457_v50 = vadd.f32 %v5208_v37, %v284_v44  ;;  %v295_v41 = vadd.f32 %v263_v13, %v5214_v58  ;;  %v296_v17 = vadd.f32 %v264_v31, %v5215_v21  ;;  %v5219_v53 = vld [vmem:[#allocation74_spill] sm:$0xff]  ;;  %v3471_v36 = vpop.permute.xlu0 %862  ;;  %v5221_v31 = vld [vmem:[#allocation75_spill] sm:$0xff] }
 0x1a0   :  { %5209 = vst [vmem:[#allocation44_spill] sm:$0xff] %v3447_v3  ;;  %5211 = vst [vmem:[#allocation9_spill] sm:$0xff] %v3450_v38  ;;  %v3462_v49 = vadd.f32 %v5216_v54, %v287_v29  ;;  %v3465_v28 = vadd.f32 %v5216_v54, %v288_v18  ;;  %v661_v60 = vmul.f32 %v5219_v53, %v3013_v9  ;;  %v5222_v18 = vld [vmem:[#allocation53_spill] sm:$0xff]  ;;  %v5228_v29 = vld [vmem:[#allocation36_spill] sm:$0xff] }
 0x1a1   :  { %5213 = vst [vmem:[#allocation10_spill] sm:$0xff] %v3457_v50  ;;  %v662_v30 = vmul.f32 %v5219_v53, %v3015_v15  ;;  %5220 = vst [vmem:[#allocation33_spill] sm:$0xff] %v3471_v36  ;;  %v3477_v37 = vmul.f32 %v5221_v31, %v3013_v9  ;;  %v3481_v54 = vadd.f32 %v5222_v18, %v291_v42  ;;  %v5225_v53 = vld [vmem:[#allocation79_spill] sm:$0xff]  ;;  %v3495_v38 = vpop.permute.xlu1 %1142  ;;  %v5230_v3 = vld [vmem:[#allocation56_spill] sm:$0xff] }
 0x1a2   :  { %5217 = vst [vmem:[#allocation47_spill] sm:$0xff] %v3462_v49  ;;  %5218 = vst [vmem:[#allocation6_spill] sm:$0xff] %v3465_v28  ;;  %v3484_v58 = vadd.f32 %v5222_v18, %v292_v35  ;;  %v3488_v21 = vmul.f32 %v5221_v31, %v3015_v15  ;;  %v757_v44 = vmul.f32 %v5225_v53, %v3030_v8  ;;  %2198 = vset.pattern.permute.xlu1 %v5226_v40  ;;  %v5229_v35 = vld [vmem:[#allocation48_spill] sm:$0xff]  ;;  %v5234_v42 = vld [vmem:[#allocation81_spill] sm:$0xff] }
 0x1a3   :  { %5223 = vst [vmem:[#allocation11_spill] sm:$0xff] %v3481_v54  ;;  %v758_v13 = vmul.f32 %v5225_v53, %v3032_v5  ;;  %5227 = vst [vmem:[#allocation50_spill] sm:$0xff] %v3495_v38  ;;  %1510 = vperm.xlu0 %2203, %v5228_v29   ;;  %1631 = vperm.xlu1 %2198, %v5229_v35   ;;  %v3503_v36 = vadd.f32 %v5230_v3, %v295_v41  ;;  %v5233_v40 = vld [vmem:[#allocation76_spill] sm:$0xff]  ;;  %v3516_v49 = vpop.permute.xlu0 %870  ;;  %v5237_v50 = vld [vmem:[#allocation78_spill] sm:$0xff] }
 0x1a4   :  { %5224 = vst [vmem:[#allocation12_spill] sm:$0xff] %v3484_v58  ;;  %v3506_v6 = vadd.f32 %v5230_v3, %v296_v17  ;;  %v667_v53 = vmul.f32 %v5233_v40, %v3013_v9  ;;  %v668_v29 = vmul.f32 %v5233_v40, %v3015_v15  ;;  %v763_v38 = vmul.f32 %v5234_v42, %v3030_v8  ;;  %v3521_v41 = vld [vmem:[%s4742_s1 + $0x190] sm:$0xff]  ;;  %v5250_v59 = vld [vmem:[#allocation86_spill] sm:$0xff]  ;;  %v5255_v4 = vld [vmem:[#allocation93_spill] sm:$0xff] }
 0x1a5   :  { %5231 = vst [vmem:[#allocation74_spill] sm:$0xff] %v3503_v36  ;;  %v764_v18 = vmul.f32 %v5234_v42, %v3032_v5  ;;  %5235 = vst [vmem:[#allocation53_spill] sm:$0xff] %v3516_v49  ;;  %v5236_v3 = vld [vmem:[#allocation83_spill] sm:$0xff]  ;;  %v671_v42 = vmul.f32 %v5237_v50, %v3013_v9  ;;  %v672_v49 = vmul.f32 %v5237_v50, %v3015_v15  ;;  %v3537_v46 = vpop.permute.xlu1 %1152  ;;  %v5257_v63 = vld [vmem:[#allocation45_spill] sm:$0xff] }
 0x1a6   :  { %5232 = vst [vmem:[#allocation75_spill] sm:$0xff] %v3506_v6  ;;  %v767_v17 = vmul.f32 %v5236_v3, %v3030_v8  ;;  %v768_v31 = vmul.f32 %v5236_v3, %v3032_v5  ;;  %v3533_v27 = vadd.f32 %v757_v44, %v661_v60  ;;  %v3535_v57 = vadd.f32 %v758_v13, %v662_v30  ;;  %v5240_v3 = vld [vmem:[#allocation85_spill] sm:$0xff]  ;;  %v5241_v60 = vld [vmem:[#allocation80_spill] sm:$0xff] }
 0x1a7   :  { %5238 = vst [vmem:[#allocation79_spill] sm:$0xff] %v3537_v46  ;;  %1518 = vperm.xlu0 %2203, %v5239_v24   ;;  %v771_v55 = vmul.f32 %v5240_v3, %v3030_v8  ;;  %v772_v28 = vmul.f32 %v5240_v3, %v3032_v5  ;;  %1641 = vperm.xlu1 %2198, %v3521_v41   ;;  %v3555_v58 = vpop.permute.xlu0 %878  ;;  %v5243_v3 = vld [vmem:[#allocation82_spill] sm:$0xff]  ;;  %v5244_v6 = vld [vmem:[#allocation84_spill] sm:$0xff] }
 0x1a8   :  { %v675_v30 = vmul.f32 %v5241_v60, %v3013_v9  ;;  %v676_v44 = vmul.f32 %v5241_v60, %v3015_v15  ;;  %v3551_v13 = vadd.f32 %v763_v38, %v667_v53  ;;  %v3553_v24 = vadd.f32 %v764_v18, %v668_v29  ;;  %5242 = vst [vmem:[#allocation36_spill] sm:$0xff] %v3555_v58  ;;  %v5245_v18 = vld [vmem:[#allocation87_spill] sm:$0xff]  ;;  %v5247_v58 = vld [vmem:[#allocation42_spill] sm:$0xff] }
 0x1a9   :  { %v679_v54 = vmul.f32 %v5243_v3, %v3013_v9  ;;  %v680_v40 = vmul.f32 %v5243_v3, %v3015_v15  ;;  %v3561_v36 = vadd.f32 %v767_v17, %v671_v42  ;;  %v3563_v50 = vadd.f32 %v768_v31, %v672_v49  ;;  %v3573_v60 = vpop.permute.xlu1 %1162  ;;  %v5248_v17 = vld [vmem:[#allocation89_spill] sm:$0xff] }
 0x1aa   :  { %v683_v46 = vmul.f32 %v5244_v6, %v3013_v9  ;;  %v684_v38 = vmul.f32 %v5244_v6, %v3015_v15  ;;  %v775_v53 = vmul.f32 %v5245_v18, %v3030_v8  ;;  %v776_v29 = vmul.f32 %v5245_v18, %v3032_v5  ;;  %5246 = vst [vmem:[#allocation48_spill] sm:$0xff] %v3573_v60  ;;  %v5249_v6 = vld [vmem:[#allocation51_spill] sm:$0xff] }
 0x1ab   :  { %1526 = vperm.xlu0 %2203, %v5247_v58   ;;  %v779_v49 = vmul.f32 %v5248_v17, %v3030_v8  ;;  %v780_v31 = vmul.f32 %v5248_v17, %v3032_v5  ;;  %v3580_v42 = vadd.f32 %v771_v55, %v675_v30  ;;  %v3582_v3 = vadd.f32 %v772_v28, %v676_v44  ;;  %v5251_v58 = vld [vmem:[#allocation91_spill] sm:$0xff]  ;;  %v3593_v11 = vpop.permute.xlu0 %1350  ;;  %v5253_v55 = vld [vmem:[#allocation90_spill] sm:$0xff]  ;;  %v5254_v44 = vld [vmem:[#allocation92_spill] sm:$0xff] }
 0x1ac   :  { %1646 = vperm.xlu1 %2198, %v5249_v6   ;;  %v687_v2 = vmul.f32 %v5250_v59, %v3013_v9  ;;  %v688_v18 = vmul.f32 %v5250_v59, %v3015_v15  ;;  %v783_v60 = vmul.f32 %v5251_v58, %v3030_v8  ;;  %v784_v61 = vmul.f32 %v5251_v58, %v3032_v5 }
 0x1ad   :  { %5252 = vst [vmem:[#allocation56_spill] sm:$0xff] %v3593_v11  ;;  %v759_v28 = vmul.f32 %v5253_v55, %v3030_v8  ;;  %v760_v30 = vmul.f32 %v5253_v55, %v3032_v5  ;;  %v761_v17 = vmul.f32 %v5254_v44, %v3030_v8  ;;  %v762_v59 = vmul.f32 %v5254_v44, %v3032_v5  ;;  %v3611_v62 = vpop.permute.xlu1 %1172  ;;  %v5258_v55 = vld [vmem:[#allocation88_spill] sm:$0xff] }
 0x1ae   :  { %v787_v7 = vmul.f32 %v5255_v4, %v3030_v8  ;;  %v788_v58 = vmul.f32 %v5255_v4, %v3032_v5  ;;  %v3607_v48 = vadd.f32 %v775_v53, %v679_v54  ;;  %v3609_v11 = vadd.f32 %v776_v29, %v680_v40  ;;  %5256 = vst [vmem:[#allocation76_spill] sm:$0xff] %v3611_v62  ;;  %v5260_v4 = vld [vmem:[#allocation94_spill] sm:$0xff]  ;;  %v5264_v62 = vld [vmem:[#allocation96_spill] sm:$0xff] }
 0x1af   :  { %1534 = vperm.xlu0 %2203, %v5257_v63   ;;  %v691_v23 = vmul.f32 %v5258_v55, %v3013_v9  ;;  %v692_v44 = vmul.f32 %v5258_v55, %v3015_v15  ;;  %v3618_v33 = vadd.f32 %v779_v49, %v683_v46  ;;  %v3620_v39 = vadd.f32 %v780_v31, %v684_v38  ;;  %v3631_v29 = vpop.permute.xlu0 %1362  ;;  %v5262_v38 = vld [vmem:[#allocation13_spill] sm:$0xff] }
 0x1b0   :  { %1656 = vperm.xlu1 %2198, %v5259_v16   ;;  %v765_v54 = vmul.f32 %v5260_v4, %v3030_v8  ;;  %v766_v40 = vmul.f32 %v5260_v4, %v3032_v5  ;;  %v3627_v53 = vadd.f32 %v783_v60, %v687_v2  ;;  %v3629_v63 = vadd.f32 %v784_v61, %v688_v18  ;;  %v5263_v16 = vld [vmem:[#allocation20_spill] sm:$0xff] }
 0x1b1   :  { %5261 = vst [vmem:[#allocation81_spill] sm:$0xff] %v3631_v29  ;;  %v793_v55 = vadd.f32 %v761_v17, %v3477_v37  ;;  %v794_v46 = vadd.f32 %v762_v59, %v3488_v21  ;;  %v3636_v49 = vadd.f32 %v759_v28, %v5262_v38  ;;  %v3639_v31 = vadd.f32 %v760_v30, %v5263_v16  ;;  %v3649_v18 = vpop.permute.xlu1 %1182  ;;  %v5266_v37 = vld [vmem:[#allocation95_spill] sm:$0xff]  ;;  %v5267_v30 = vld [vmem:[#allocation98_spill] sm:$0xff]  ;;  %v5272_v16 = vld [vmem:[#allocation97_spill] sm:$0xff] }
 0x1b2   :  { %v769_v15 = vmul.f32 %v5264_v62, %v3030_v8  ;;  %v770_v2 = vmul.f32 %v5264_v62, %v3032_v5  ;;  %v3645_v61 = vadd.f32 %v787_v7, %v691_v23  ;;  %v3647_v60 = vadd.f32 %v788_v58, %v692_v44  ;;  %5265 = vst [vmem:[#allocation83_spill] sm:$0xff] %v3649_v18  ;;  %v5268_v23 = vld [vmem:[#allocation57_spill] sm:$0xff]  ;;  %v5269_v7 = vld [vmem:[#allocation100_spill] sm:$0xff] }
 0x1b3   :  { %1998 = vperm.xlu0 %2203, %v5229_v35   ;;  %v3654_v21 = vmul.f32 %v5266_v37, %v3030_v8  ;;  %v3658_v28 = vmul.f32 %v5266_v37, %v3032_v5  ;;  %v773_v17 = vmul.f32 %v5267_v30, %v3030_v8  ;;  %v774_v62 = vmul.f32 %v5267_v30, %v3032_v5  ;;  %v5270_v58 = vld [vmem:[#allocation16_spill] sm:$0xff]  ;;  %v3675_v38 = vpop.permute.xlu0 %1370 }
 0x1b4   :  { %1666 = vperm.xlu1 %2198, %v5268_v23   ;;  %v777_v59 = vmul.f32 %v5269_v7, %v3030_v8  ;;  %v778_v35 = vmul.f32 %v5269_v7, %v3032_v5  ;;  %v3670_v44 = vadd.f32 %v765_v54, %v5270_v58  ;;  %v3673_v4 = vadd.f32 %v766_v40, %v3187_v20  ;;  %v5273_v23 = vld [vmem:[#allocation102_spill] sm:$0xff]  ;;  %v5274_v7 = vld [vmem:[#allocation99_spill] sm:$0xff] }
 0x1b5   :  { %5271 = vst [vmem:[#allocation78_spill] sm:$0xff] %v3675_v38  ;;  %v3679_v37 = vmul.f32 %v5272_v16, %v3030_v8  ;;  %v3683_v30 = vmul.f32 %v5272_v16, %v3032_v5  ;;  %v781_v18 = vmul.f32 %v5273_v23, %v3030_v8  ;;  %v782_v54 = vmul.f32 %v5273_v23, %v3032_v5  ;;  %v5276_v38 = vld [vmem:[#allocation101_spill] sm:$0xff] }
 0x1b6   :  { %v3691_v20 = vmul.f32 %v5274_v7, %v3030_v8  ;;  %v3695_v40 = vmul.f32 %v5274_v7, %v3032_v5  ;;  %v3698_v58 = vadd.f32 %v769_v15, %v3191_v0  ;;  %v3701_v16 = vadd.f32 %v770_v2, %v3197_v52  ;;  %v5278_v15 = vld [vmem:[#allocation60_spill] sm:$0xff]  ;;  %v3719_v52 = vpop.permute.xlu1 %1222  ;;  %v5279_v0 = vld [vmem:[#allocation103_spill] sm:$0xff] }
 0x1b7   :  { %2006 = vperm.xlu0 %2203, %v3521_v41   ;;  %v3706_v29 = vmul.f32 %v5276_v38, %v3030_v8  ;;  %v3710_v23 = vmul.f32 %v5276_v38, %v3032_v5  ;;  %v3716_v7 = vadd.f32 %v774_v62, %v3217_v43  ;;  %v3723_v2 = vmul.f32 %v5279_v0, %v3030_v8  ;;  %v3735_v43 = vpop.permute.xlu0 %1378 }
 0x1b8   :  { %5275 = vst [vmem:[#allocation39_spill] sm:$0xff] %v3691_v20  ;;  %v3713_v20 = vadd.f32 %v773_v17, %v3207_v22  ;;  %1676 = vperm.xlu1 %2198, %v5278_v15   ;;  %v3730_v38 = vadd.f32 %v777_v59, %v3229_v10  ;;  %v3733_v22 = vadd.f32 %v778_v35, %v3233_v32  ;;  %5281 = vst [vmem:[#allocation82_spill] sm:$0xff] %v3735_v43  ;;  %v5282_v17 = vld [vmem:[#allocation104_spill] sm:$0xff]  ;;  %v5283_v10 = vld [vmem:[#allocation105_spill] sm:$0xff] }
 0x1b9   :  { %5277 = vst [vmem:[#allocation85_spill] sm:$0xff] %v3706_v29  ;;  %5280 = vst [vmem:[#allocation80_spill] sm:$0xff] %v3723_v2  ;;  %v3727_v29 = vmul.f32 %v5279_v0, %v3032_v5  ;;  %v785_v62 = vmul.f32 %v5282_v17, %v3030_v8  ;;  %v786_v15 = vmul.f32 %v5282_v17, %v3032_v5  ;;  %v5286_v35 = vld [vmem:[#allocation107_spill] sm:$0xff] }
 0x1ba   :  { %v3742_v2 = vadd.f32 %v781_v18, %v3251_v34  ;;  %v3745_v0 = vadd.f32 %v782_v54, %v3255_v56  ;;  %v3749_v59 = vmul.f32 %v5283_v10, %v3030_v8  ;;  %v3753_v32 = vmul.f32 %v5283_v10, %v3032_v5  ;;  %v5289_v34 = vld [vmem:[#allocation109_spill] sm:$0xff]  ;;  %v5290_v54 = vld [vmem:[#allocation111_spill] sm:$0xff] }
 0x1bb   :  { %v3757_v43 = vadd.f32 %v5286_v35, %v3533_v27  ;;  %v3761_v17 = vadd.f32 %v5286_v35, %v3535_v57  ;;  %2010 = vperm.xlu0 %2203, %v5249_v6   ;;  %v3765_v56 = vadd.f32 %v5289_v34, %v793_v55  ;;  %v3768_v18 = vadd.f32 %v5289_v34, %v794_v46  ;;  %v3779_v57 = vpop.permute.xlu1 %1226  ;;  %v5294_v6 = vld [vmem:[#allocation113_spill] sm:$0xff]  ;;  %v5297_v46 = vld [vmem:[#allocation115_spill] sm:$0xff]  ;;  %v3797_v34 = vpop.permute.xlu0 %1386 }
 0x1bc   :  { %5284 = vst [vmem:[#allocation84_spill] sm:$0xff] %v3749_v59  ;;  %5285 = vst [vmem:[#allocation87_spill] sm:$0xff] %v3753_v32  ;;  %v3772_v10 = vadd.f32 %v5290_v54, %v3551_v13  ;;  %v3776_v27 = vadd.f32 %v5290_v54, %v3553_v24  ;;  %v5293_v32 = vld [vmem:[#allocation63_spill] sm:$0xff]  ;;  %v3783_v35 = vadd.f32 %v5294_v6, %v3561_v36 }
 0x1bd   :  { %5287 = vst [vmem:[#allocation42_spill] sm:$0xff] %v3757_v43  ;;  %5288 = vst [vmem:[#allocation89_spill] sm:$0xff] %v3761_v17  ;;  %1686 = vperm.xlu1 %2198, %v5293_v32   ;;  %v3787_v55 = vadd.f32 %v5294_v6, %v3563_v50  ;;  %v3791_v13 = vadd.f32 %v5297_v46, %v3580_v42  ;;  %v3795_v24 = vadd.f32 %v5297_v46, %v3582_v3  ;;  %v5301_v32 = vld [vmem:[#allocation106_spill] sm:$0xff]  ;;  %v5304_v6 = vld [vmem:[#allocation117_spill] sm:$0xff] }
 0x1be   :  { %5291 = vst [vmem:[#allocation51_spill] sm:$0xff] %v3772_v10  ;;  %5292 = vst [vmem:[#allocation86_spill] sm:$0xff] %v3776_v27  ;;  %v3801_v54 = vmul.f32 %v5301_v32, %v3030_v8  ;;  %v3805_v36 = vmul.f32 %v5301_v32, %v3032_v5  ;;  %v3808_v50 = vadd.f32 %v785_v62, %v3264_v51  ;;  %v921_v62 = vmax.f32 %v3765_v56, 0.0  ;;  %v5316_v51 = vld [vmem:[#allocation14_spill] sm:$0xff] }
 0x1bf   :  { %5295 = vst [vmem:[#allocation91_spill] sm:$0xff] %v3783_v35  ;;  %5296 = vst [vmem:[#allocation90_spill] sm:$0xff] %v3787_v55  ;;  %v3811_v42 = vadd.f32 %v786_v15, %v3268_v26  ;;  %v3815_v3 = vadd.f32 %v5304_v6, %v3607_v48  ;;  %v3819_v46 = vadd.f32 %v5304_v6, %v3609_v11  ;;  %v922_v48 = vmax.f32 %v3768_v18, 0.0  ;;  %v5308_v15 = vld [vmem:[#allocation66_spill] sm:$0xff]  ;;  %v3832_v32 = vpop.permute.xlu1 %1234  ;;  %v5310_v18 = vld [vmem:[#allocation119_spill] sm:$0xff] }
 0x1c0   :  { %5298 = vst [vmem:[#allocation92_spill] sm:$0xff] %v3791_v13  ;;  %5299 = vst [vmem:[#allocation93_spill] sm:$0xff] %v3795_v24  ;;  %v3844_v59 = vadd.f32 %v5310_v18, %v3618_v33  ;;  %v5313_v6 = vld [vmem:[#allocation121_spill] sm:$0xff]  ;;  %v5317_v26 = vld [vmem:[#allocation127_spill] sm:$0xff]  ;;  %v5334_v27 = vmov 1  }
 0x1c1   :  { %5300 = vst [vmem:[#allocation45_spill] sm:$0xff] %v3797_v34  ;;  %5302 = vst [vmem:[#allocation88_spill] sm:$0xff] %v3801_v54  ;;  %v3824_v54 = vld [vmem:[%s4742_s1 + $0x1a0] sm:$0xff]  ;;  %1696 = vperm.xlu1 %2198, %v5308_v15   ;;  %v3848_v15 = vadd.f32 %v5310_v18, %v3620_v39  ;;  %v3852_v11 = vadd.f32 %v5313_v6, %v3627_v53  ;;  %v3856_v34 = vadd.f32 %v5313_v6, %v3629_v63  ;;  %v3865_v33 = vld [vmem:[%s4742_s1 + $0x1a8] sm:$0xff] }
 0x1c2   :  { %5303 = vst [vmem:[#allocation54_spill] sm:$0xff] %v3805_v36  ;;  %5305 = vst [vmem:[#allocation94_spill] sm:$0xff] %v3815_v3  ;;  %2014 = vperm.xlu0 %2203, %v3824_v54   ;;  %v3836_v36 = vpop.permute.xlu0 %1394  ;;  %v364_v56 = vadd.f32 %v5317_v26, %v3181_v12  ;;  %v5319_v63 = vld [vmem:[#allocation123_spill] sm:$0xff]  ;;  %v5323_v18 = vld [vmem:[#allocation24_spill] sm:$0xff] }
 0x1c3   :  { %5306 = vst [vmem:[#allocation13_spill] sm:$0xff] %v3819_v46  ;;  %5307 = vst [vmem:[#allocation20_spill] sm:$0xff] %v3824_v54  ;;  %v3872_v6 = vadd.f32 %v5319_v63, %v3645_v61  ;;  %v5322_v12 = vld [vmem:[#allocation131_spill] sm:$0xff]  ;;  %v3885_v39 = vld [vmem:[%s4742_s1 + $0x1f8] sm:$0xff]  ;;  %v3888_v53 = vpop.permute.xlu1 %1242 }
 0x1c4   :  { %5309 = vst [vmem:[#allocation96_spill] sm:$0xff] %v3836_v36  ;;  %5311 = vst [vmem:[#allocation95_spill] sm:$0xff] %v3844_v59  ;;  %v363_v36 = vadd.f32 %v5317_v26, %v5316_v51  ;;  %v3876_v51 = vadd.f32 %v5319_v63, %v3647_v60  ;;  %v369_v26 = vadd.f32 %v5322_v12, %v3201_v25  ;;  %v5326_v61 = vld [vmem:[#allocation21_spill] sm:$0xff]  ;;  %v5328_v60 = vld [vmem:[#allocation26_spill] sm:$0xff] }
 0x1c5   :  { %5312 = vst [vmem:[#allocation98_spill] sm:$0xff] %v3848_v15  ;;  %5314 = vst [vmem:[#allocation57_spill] sm:$0xff] %v3852_v11  ;;  %v370_v24 = vadd.f32 %v5322_v12, %v5323_v18  ;;  %1706 = vperm.xlu1 %2198, %v3885_v39   ;;  %v5329_v3 = vld [vmem:[#allocation28_spill] sm:$0xff]  ;;  %v5330_v25 = vld [vmem:[#allocation15_spill] sm:$0xff] }
 0x1c6   :  { %5315 = vst [vmem:[#allocation100_spill] sm:$0xff] %v3856_v34  ;;  %5318 = vst [vmem:[#allocation16_spill] sm:$0xff] %v3865_v33  ;;  %2018 = vperm.xlu0 %2203, %v3865_v33   ;;  %v5327_v33 = vld [vmem:[#allocation134_spill] sm:$0xff]  ;;  %v377_v13 = vadd.f32 %v5330_v25, %v5329_v3  ;;  %v378_v12 = vadd.f32 %v5330_v25, %v3258_v45  ;;  %v3898_v18 = vpop.permute.xlu0 %1402  ;;  %v3911_v45 = vld [vmem:[%s4742_s1 + $0x1b0] sm:$0xff]  ;;  %v401_v25 = vmax.f32 %v369_v26, 0.0 }
 0x1c7   :  { %5320 = vst [vmem:[#allocation97_spill] sm:$0xff] %v3872_v6  ;;  %5321 = vst [vmem:[#allocation102_spill] sm:$0xff] %v3876_v51  ;;  %v373_v46 = vadd.f32 %v5327_v33, %v5326_v61  ;;  %v374_v63 = vadd.f32 %v5327_v33, %v5328_v60  ;;  %v395_v61 = vmax.f32 %v363_v36, 0.0  ;;  %v5332_v33 = vld [vmem:[#allocation22_spill] sm:$0xff]  ;;  %v402_v35 = vmax.f32 %v370_v24, 0.0  ;;  %v3915_v10 = vpop.permute.xlu1 %1250  ;;  %v3940_v51 = vld [vmem:[%s4742_s1 + $0x1b8] sm:$0xff] }
 0x1c8   :  { %5324 = vst [vmem:[#allocation99_spill] sm:$0xff] %v3885_v39  ;;  %5325 = vst [vmem:[#allocation101_spill] sm:$0xff] %v3888_v53  ;;  %v396_v53 = vmax.f32 %v364_v56, 0.0  ;;  %v381_v60 = vadd.f32 %v5332_v33, %v3260_v14  ;;  %v382_v3 = vadd.f32 %v5332_v33, %v3272_v19  ;;  %v409_v19 = vmax.f32 %v377_v13, 0.0  ;;  %v3922_v34 = vld [vmem:[%s4742_s1 + $0x188] sm:$0xff]  ;;  %v5349_v59 = vld [vmem:[#allocation68_spill] sm:$0xff] }
 0x1c9   :  { %5331 = vst [vmem:[#allocation60_spill] sm:$0xff] %v3898_v18  ;;  %5333 = vst [vmem:[#allocation103_spill] sm:$0xff] %v3911_v45  ;;  %2200 = vset.pattern.permute.xlu1 %v5334_v27  ;;  %v405_v56 = vmax.f32 %v373_v46, 0.0  ;;  %v406_v55 = vmax.f32 %v374_v63, 0.0  ;;  %v410_v33 = vmax.f32 %v378_v12, 0.0  ;;  %v5338_v27 = vld [vmem:[#allocation130_spill] sm:$0xff] }
 0x1ca   :  { %2022 = vperm.xlu0 %2203, %v3911_v45   ;;  %5335 = vst [vmem:[#allocation104_spill] sm:$0xff] %v3915_v10  ;;  %5336 = vst [vmem:[#allocation105_spill] sm:$0xff] %v3922_v34  ;;  %1746 = vperm.xlu1 %2200, %v3922_v34   ;;  %v3925_v24 = vpop.permute.xlu0 %1874  ;;  %v3928_v26 = vmul.f32 %v5338_v27, %v921_v62  ;;  %v3931_v36 = vmul.f32 %v5338_v27, %v922_v48  ;;  %v5341_v46 = vld [vmem:[#allocation136_spill] sm:$0xff]  ;;  %v413_v12 = vmax.f32 %v381_v60, 0.0  ;;  %v5343_v62 = vld [vmem:[#allocation59_spill] sm:$0xff] }
 0x1cb   :  { %5337 = vst [vmem:[#allocation107_spill] sm:$0xff] %v3925_v24  ;;  %v385_v63 = vadd.f32 %v5341_v46, %v3285_v47  ;;  %v386_v13 = vadd.f32 %v5341_v46, %v3288_v1  ;;  %v414_v14 = vmax.f32 %v382_v3, 0.0  ;;  %5342 = vst [vmem:[#allocation63_spill] sm:$0xff] %v3940_v51  ;;  %v491_v24 = vmul.f32 %v5343_v62, %v395_v61  ;;  %v5344_v27 = vld [vmem:[#allocation65_spill] sm:$0xff]  ;;  %v5345_v1 = vld [vmem:[#allocation35_spill] sm:$0xff]  ;;  %v3955_v15 = vpop.permute.xlu1 %1258 }
 0x1cc   :  { %5339 = vst [vmem:[#allocation109_spill] sm:$0xff] %v3928_v26  ;;  %5340 = vst [vmem:[#allocation111_spill] sm:$0xff] %v3931_v36  ;;  %v492_v48 = vmul.f32 %v5343_v62, %v396_v53  ;;  %v3946_v6 = vmul.f32 %v5344_v27, %v401_v25  ;;  %v3949_v47 = vmul.f32 %v5344_v27, %v402_v35  ;;  %v5346_v60 = vld [vmem:[#allocation30_spill] sm:$0xff]  ;;  %v5347_v46 = vld [vmem:[#allocation29_spill] sm:$0xff] }
 0x1cd   :  { %v389_v3 = vadd.f32 %v5346_v60, %v5345_v1  ;;  %v390_v11 = vadd.f32 %v5346_v60, %v5347_v46  ;;  %5348 = vst [vmem:[#allocation113_spill] sm:$0xff] %v3955_v15  ;;  %v3961_v61 = vmul.f32 %v5349_v59, %v406_v55  ;;  %v5350_v53 = vld [vmem:[#allocation70_spill] sm:$0xff]  ;;  %v417_v62 = vmax.f32 %v385_v63, 0.0  ;;  %v5352_v18 = vld [vmem:[#allocation71_spill] sm:$0xff]  ;;  %v5355_v34 = vld [vmem:[#allocation148_spill] sm:$0xff] }
 0x1ce   :  { %2026 = vperm.xlu0 %2203, %v3940_v51   ;;  %v3958_v51 = vmul.f32 %v5349_v59, %v405_v56  ;;  %v3964_v25 = vmul.f32 %v5350_v53, %v409_v19  ;;  %v3967_v35 = vmul.f32 %v5350_v53, %v410_v33  ;;  %1750 = vperm.xlu1 %2200, %v3521_v41   ;;  %v418_v27 = vmax.f32 %v386_v13, 0.0  ;;  %v5351_v1 = vld [vmem:[#allocation138_spill] sm:$0xff]  ;;  %v427_v46 = vpop.permute.xlu0 %426  ;;  %v5353_v19 = vld [vmem:[#allocation32_spill] sm:$0xff] }
 0x1cf   :  { %v887_v60 = vadd.f32 %v5351_v1, %v3636_v49  ;;  %v888_v56 = vadd.f32 %v5351_v1, %v3639_v31  ;;  %v3975_v59 = vmul.f32 %v5352_v18, %v413_v12  ;;  %v3978_v55 = vmul.f32 %v5352_v18, %v414_v14  ;;  %v3987_v49 = vld [vmem:[%s4742_s1 + $0x1c0] sm:$0xff] }
 0x1d0   :  { %v5354_v33 = vmax.f32 %v5353_v19, 0.0  ;;  %v5356_v15 = vmax.f32 %v5355_v34, 0.0  ;;  %5357 = vst [vmem:[#allocation115_spill] sm:$0xff] %v3987_v49  ;;  %v421_v31 = vmax.f32 %v389_v3, 0.0  ;;  %v422_v13 = vmax.f32 %v390_v11, 0.0  ;;  %v5358_v12 = vld [vmem:[#allocation141_spill] sm:$0xff]  ;;  %v3994_v19 = vpop.permute.xlu1 %1266 }
 0x1d1   :  { %v1185_v1 = vmul.f32 %v5358_v12, %v3013_v9  ;;  %v5359_v18 = vld [vmem:[#allocation129_spill] sm:$0xff]  ;;  %5360 = vst [vmem:[#allocation106_spill] sm:$0xff] %v3994_v19  ;;  %v5361_v34 = vld [vmem:[#allocation143_spill] sm:$0xff]  ;;  %v5362_v3 = vld [vmem:[#allocation72_spill] sm:$0xff]  ;;  %v919_v26 = vmax.f32 %v887_v60, 0.0 }
 0x1d2   :  { %v489_v53 = vmul.f32 %v427_v46, %v5354_v33  ;;  %v490_v63 = vmul.f32 %v427_v46, %v5356_v15  ;;  %2030 = vperm.xlu0 %2203, %v3987_v49   ;;  %v1186_v14 = vmul.f32 %v5358_v12, %v5359_v18  ;;  %v893_v15 = vadd.f32 %v5361_v34, %v3670_v44  ;;  %v439_v17 = vpop.permute.xlu0 %438  ;;  %v5363_v19 = vld [vmem:[#allocation147_spill] sm:$0xff] }
 0x1d3   :  { %v894_v46 = vadd.f32 %v5361_v34, %v3673_v4  ;;  %1758 = vperm.xlu1 %2200, %v3824_v54   ;;  %v4002_v11 = vmul.f32 %v5362_v3, %v417_v62  ;;  %v4005_v36 = vmul.f32 %v5362_v3, %v418_v27  ;;  %v920_v12 = vmax.f32 %v888_v56, 0.0  ;;  %v5364_v4 = vld [vmem:[#allocation38_spill] sm:$0xff]  ;;  %v5369_v27 = vld [vmem:[#allocation73_spill] sm:$0xff] }
 0x1d4   :  { %v521_v33 = vadd.f32 %v491_v24, %v489_v53  ;;  %v542_v10 = vadd.f32 %v492_v48, %v490_v63  ;;  %v897_v43 = vadd.f32 %v5363_v19, %v3698_v58  ;;  %v898_v44 = vadd.f32 %v5363_v19, %v3701_v16  ;;  %v5366_v53 = vld [vmem:[#allocation149_spill] sm:$0xff]  ;;  %v4018_v62 = vld [vmem:[%s4742_s1 + $0x1c8] sm:$0xff] }
 0x1d5   :  { %v5365_v24 = vmax.f32 %v5364_v4, 0.0  ;;  %v5367_v63 = vmax.f32 %v5366_v53, 0.0  ;;  %5368 = vst [vmem:[#allocation117_spill] sm:$0xff] %v4018_v62  ;;  %v4022_v60 = vmul.f32 %v5369_v27, %v421_v31  ;;  %v4025_v58 = vmul.f32 %v5369_v27, %v422_v13  ;;  %v5370_v16 = vld [vmem:[#allocation62_spill] sm:$0xff]  ;;  %v4029_v4 = vpop.permute.xlu1 %1274 }
 0x1d6   :  { %2034 = vperm.xlu0 %2203, %v4018_v62   ;;  %v522_v56 = vadd.f32 %v521_v33, %v5370_v16  ;;  %v5371_v19 = vld [vmem:[#allocation146_spill] sm:$0xff]  ;;  %v4033_v53 = vadd.f32 %v3654_v21, %v1185_v1  ;;  %v447_v13 = vpop.permute.xlu0 %446  ;;  %v929_v33 = vmax.f32 %v897_v43, 0.0 }
 0x1d7   :  { %v495_v48 = vmul.f32 %v439_v17, %v5365_v24  ;;  %v496_v34 = vmul.f32 %v439_v17, %v5367_v63  ;;  %v543_v3 = vadd.f32 %v542_v10, %v5371_v19  ;;  %v925_v17 = vmax.f32 %v893_v15, 0.0  ;;  %1766 = vperm.xlu1 %2200, %v3911_v45   ;;  %v5373_v27 = vld [vmem:[#allocation126_spill] sm:$0xff]  ;;  %v5376_v45 = vld [vmem:[#allocation151_spill] sm:$0xff] }
 0x1d8   :  { %v926_v24 = vmax.f32 %v894_v46, 0.0  ;;  %v4036_v63 = vadd.f32 %v3658_v28, %v1186_v14  ;;  %v4039_v54 = vmul.f32 %v5373_v27, %v919_v26  ;;  %v4042_v10 = vmul.f32 %v5373_v27, %v920_v12  ;;  %v5374_v46 = vld [vmem:[#allocation41_spill] sm:$0xff]  ;;  %v4051_v28 = vld [vmem:[%s4742_s1 + $0x1d0] sm:$0xff] }
 0x1d9   :  { %v523_v31 = vadd.f32 %v522_v56, %v495_v48  ;;  %v544_v62 = vadd.f32 %v543_v3, %v496_v34  ;;  %v930_v15 = vmax.f32 %v898_v44, 0.0  ;;  %v5375_v16 = vmax.f32 %v5374_v46, 0.0  ;;  %v5378_v26 = vld [vmem:[#allocation145_spill] sm:$0xff]  ;;  %v5380_v56 = vld [vmem:[#allocation7_spill] sm:$0xff]  ;;  %v4075_v27 = vpop.permute.xlu1 %1346 }
 0x1da   :  { %5372 = vst [vmem:[#allocation66_spill] sm:$0xff] %v4036_v63  ;;  %v5377_v21 = vmax.f32 %v5376_v45, 0.0  ;;  %2038 = vperm.xlu0 %2203, %v4051_v28   ;;  %v4056_v14 = vmul.f32 %v5378_v26, %v3013_v9  ;;  %v4060_v43 = vmul.f32 %v5378_v26, %v5359_v18  ;;  %v5379_v44 = vld [vmem:[#allocation133_spill] sm:$0xff]  ;;  %v901_v3 = vadd.f32 %v5380_v56, %v3713_v20  ;;  %v5382_v46 = vld [vmem:[#allocation135_spill] sm:$0xff] }
 0x1db   :  { %v499_v19 = vmul.f32 %v447_v13, %v5375_v16  ;;  %v524_v12 = vadd.f32 %v523_v31, %v3946_v6  ;;  %v545_v45 = vadd.f32 %v544_v62, %v3949_v47  ;;  %v4065_v48 = vmul.f32 %v5379_v44, %v925_v17  ;;  %1774 = vperm.xlu1 %2200, %v3987_v49   ;;  %v5381_v6 = vld [vmem:[#allocation150_spill] sm:$0xff]  ;;  %v4094_v63 = vld [vmem:[%s4742_s1 + $0x1d8] sm:$0xff] }
 0x1dc   :  { %v500_v1 = vmul.f32 %v447_v13, %v5377_v21  ;;  %v4068_v34 = vmul.f32 %v5379_v44, %v926_v24  ;;  %v902_v13 = vadd.f32 %v5380_v56, %v3716_v7  ;;  %v1191_v31 = vmul.f32 %v5381_v6, %v3013_v9  ;;  %v455_v24 = vpop.permute.xlu0 %454  ;;  %v5383_v7 = vld [vmem:[#allocation8_spill] sm:$0xff]  ;;  %v5385_v44 = vld [vmem:[#allocation77_spill] sm:$0xff]  ;;  %5387 = vst [vmem:[#allocation119_spill] sm:$0xff] %v4094_v63 }
 0x1dd   :  { %v1192_v47 = vmul.f32 %v5381_v6, %v5359_v18  ;;  %v525_v62 = vadd.f32 %v524_v12, %v499_v19  ;;  %v4082_v16 = vmul.f32 %v5382_v46, %v929_v33  ;;  %v4085_v20 = vmul.f32 %v5382_v46, %v930_v15  ;;  %v5388_v19 = vld [vmem:[#allocation33_spill] sm:$0xff] }
 0x1de   :  { %v546_v17 = vadd.f32 %v545_v45, %v500_v1  ;;  %v5384_v21 = vmax.f32 %v5383_v7, 0.0  ;;  %v5386_v56 = vmax.f32 %v5385_v44, 0.0  ;;  %2042 = vperm.xlu0 %2203, %v4094_v63   ;;  %v905_v33 = vadd.f32 %v5388_v19, %v3730_v38 }
 0x1df   :  { %v906_v15 = vadd.f32 %v5388_v19, %v3733_v22  ;;  %v526_v1 = vadd.f32 %v525_v62, %v3958_v51  ;;  %v933_v45 = vmax.f32 %v901_v3, 0.0  ;;  %v934_v6 = vmax.f32 %v902_v13, 0.0  ;;  %1782 = vperm.xlu1 %2200, %v4051_v28   ;;  %v5391_v62 = vld [vmem:[#allocation44_spill] sm:$0xff] }
 0x1e0   :  { %v503_v26 = vmul.f32 %v455_v24, %v5384_v21  ;;  %v504_v49 = vmul.f32 %v455_v24, %v5386_v56  ;;  %v547_v12 = vadd.f32 %v546_v17, %v3961_v61  ;;  %v5389_v24 = vld [vmem:[#allocation9_spill] sm:$0xff]  ;;  %v4108_v21 = vpop.permute.xlu1 %1354  ;;  %v463_v56 = vpop.permute.xlu0 %462  ;;  %v4111_v22 = vadd.f32 %v3679_v37, %v1191_v31 }
 0x1e1   :  { %v1195_v46 = vmul.f32 %v5389_v24, %v3013_v9  ;;  %v1196_v7 = vmul.f32 %v5389_v24, %v5359_v18  ;;  %v4114_v51 = vadd.f32 %v3683_v30, %v1192_v47  ;;  %v5390_v61 = vld [vmem:[#allocation53_spill] sm:$0xff]  ;;  %v5392_v17 = vmax.f32 %v5391_v62, 0.0  ;;  %v5393_v24 = vld [vmem:[#allocation10_spill] sm:$0xff]  ;;  %v5399_v62 = vld [vmem:[#allocation47_spill] sm:$0xff] }
 0x1e2   :  { %v527_v38 = vadd.f32 %v526_v1, %v503_v26  ;;  %v548_v44 = vadd.f32 %v547_v12, %v504_v49  ;;  %v909_v3 = vadd.f32 %v5390_v61, %v3742_v2  ;;  %v910_v13 = vadd.f32 %v5390_v61, %v3745_v0  ;;  %v4127_v37 = vld [vmem:[%s4742_s1 + $0x1e0] sm:$0xff]  ;;  %v5397_v12 = vld [vmem:[#allocation39_spill] sm:$0xff] }
 0x1e3   :  { %v507_v19 = vmul.f32 %v463_v56, %v5392_v17  ;;  %v5394_v63 = vmax.f32 %v5393_v24, 0.0  ;;  %5395 = vst [vmem:[#allocation121_spill] sm:$0xff] %v4127_v37  ;;  %2046 = vperm.xlu0 %2203, %v4127_v37   ;;  %v937_v30 = vmax.f32 %v905_v33, 0.0  ;;  %v938_v49 = vmax.f32 %v906_v15, 0.0  ;;  %v5396_v0 = vld [vmem:[#allocation17_spill] sm:$0xff]  ;;  %1790 = vperm.xlu1 %2200, %v4127_v37  }
 0x1e4   :  { %v528_v2 = vadd.f32 %v527_v38, %v3964_v25  ;;  %v549_v31 = vadd.f32 %v548_v44, %v3967_v35  ;;  %v4133_v47 = vmul.f32 %v5396_v0, %v933_v45  ;;  %v4136_v1 = vmul.f32 %v5396_v0, %v934_v6  ;;  %v5398_v25 = vld [vmem:[#allocation50_spill] sm:$0xff]  ;;  %v471_v6 = vpop.permute.xlu0 %470 }
 0x1e5   :  { %v508_v26 = vmul.f32 %v463_v56, %v5394_v63  ;;  %v4139_v63 = vpop.permute.xlu1 %1358  ;;  %v4142_v56 = vadd.f32 %v5397_v12, %v1195_v46  ;;  %v4145_v33 = vadd.f32 %v3695_v40, %v1196_v7  ;;  %v1199_v15 = vmul.f32 %v5398_v25, %v3013_v9  ;;  %v5401_v0 = vld [vmem:[#allocation6_spill] sm:$0xff]  ;;  %v5404_v7 = vld [vmem:[#allocation19_spill] sm:$0xff] }
 0x1e6   :  { %v1200_v35 = vmul.f32 %v5398_v25, %v5359_v18  ;;  %v529_v45 = vadd.f32 %v528_v2, %v507_v19  ;;  %v941_v44 = vmax.f32 %v909_v3, 0.0  ;;  %v942_v61 = vmax.f32 %v910_v13, 0.0  ;;  %v4158_v40 = vld [vmem:[%s4742_s1 + $0x1e8] sm:$0xff] }
 0x1e7   :  { %v550_v38 = vadd.f32 %v549_v31, %v508_v26  ;;  %v5400_v17 = vmax.f32 %v5399_v62, 0.0  ;;  %v5402_v46 = vmax.f32 %v5401_v0, 0.0  ;;  %5403 = vst [vmem:[#allocation14_spill] sm:$0xff] %v4158_v40  ;;  %2050 = vperm.xlu0 %2203, %v4158_v40   ;;  %v4162_v25 = vmul.f32 %v5404_v7, %v937_v30  ;;  %v5405_v26 = vld [vmem:[#allocation79_spill] sm:$0xff]  ;;  %v5412_v40 = vld [vmem:[#allocation12_spill] sm:$0xff] }
 0x1e8   :  { %v4165_v19 = vmul.f32 %v5404_v7, %v938_v49  ;;  %v530_v3 = vadd.f32 %v529_v45, %v3975_v59  ;;  %v1203_v2 = vmul.f32 %v5405_v26, %v3013_v9  ;;  %v1204_v31 = vmul.f32 %v5405_v26, %v5359_v18  ;;  %v4180_v49 = vld [vmem:[%s4742_s1 + $0x1f0] sm:$0xff] }
 0x1e9   :  { %v511_v24 = vmul.f32 %v471_v6, %v5400_v17  ;;  %v512_v12 = vmul.f32 %v471_v6, %v5402_v46  ;;  %v551_v13 = vadd.f32 %v550_v38, %v3978_v55  ;;  %v5406_v6 = vld [vmem:[#allocation36_spill] sm:$0xff]  ;;  %5407 = vst [vmem:[#allocation127_spill] sm:$0xff] %v4180_v49  ;;  %1798 = vperm.xlu1 %2200, %v4180_v49   ;;  %v4183_v59 = vpop.permute.xlu1 %1366  ;;  %v479_v38 = vpop.permute.xlu0 %478  ;;  %v5408_v17 = vld [vmem:[#allocation85_spill] sm:$0xff]  ;;  %v5409_v46 = vld [vmem:[#allocation23_spill] sm:$0xff]  ;;  %v5413_v37 = vmax.f32 %v5412_v40, 0.0 }
 0x1ea   :  { %v913_v62 = vadd.f32 %v5406_v6, %v3808_v50  ;;  %v914_v30 = vadd.f32 %v5406_v6, %v3811_v42  ;;  %v4186_v0 = vadd.f32 %v5408_v17, %v1199_v15  ;;  %v4189_v50 = vadd.f32 %v3710_v23, %v1200_v35  ;;  %v5410_v26 = vld [vmem:[#allocation11_spill] sm:$0xff]  ;;  %v5415_v40 = vld [vmem:[#allocation80_spill] sm:$0xff] }
 0x1eb   :  { %v531_v55 = vadd.f32 %v530_v3, %v511_v24  ;;  %v552_v45 = vadd.f32 %v551_v13, %v512_v12  ;;  %v4192_v42 = vmul.f32 %v5409_v46, %v941_v44  ;;  %v4195_v7 = vmul.f32 %v5409_v46, %v942_v61  ;;  %2058 = vperm.xlu0 %2203, %v3885_v39   ;;  %v5425_v39 = vld [vmem:[#allocation27_spill] sm:$0xff] }
 0x1ec   :  { %v5411_v6 = vmax.f32 %v5410_v26, 0.0  ;;  %v516_v24 = vmul.f32 %v479_v38, %v5413_v37  ;;  %v1283_v15 = vmul.f32 %v3719_v52, %v3030_v8  ;;  %v1284_v23 = vmul.f32 %v3719_v52, %v3032_v5  ;;  %v5421_v26 = vld [vmem:[#allocation75_spill] sm:$0xff] }
 0x1ed   :  { %v532_v35 = vadd.f32 %v531_v55, %v4002_v11  ;;  %v553_v44 = vadd.f32 %v552_v45, %v4005_v36  ;;  %v945_v61 = vmax.f32 %v913_v62, 0.0  ;;  %v946_v12 = vmax.f32 %v914_v30, 0.0  ;;  %v4209_v13 = vpop.permute.xlu1 %1374  ;;  %v2220_v62 = vld [vmem:[%s4742_s1 + $0x180] sm:$0xff]  ;;  %v487_v30 = vpop.permute.xlu0 %486 }
 0x1ee   :  { %v515_v49 = vmul.f32 %v479_v38, %v5411_v6  ;;  %v5414_v3 = vmov 2   ;;  %v4212_v37 = vadd.f32 %v5415_v40, %v1203_v2  ;;  %v4215_v38 = vadd.f32 %v3727_v29, %v1204_v31  ;;  %v5418_v2 = vld [vmem:[#allocation48_spill] sm:$0xff]  ;;  %v5419_v31 = vld [vmem:[#allocation74_spill] sm:$0xff] }
 0x1ef   :  { %2202 = vset.pattern.permute.xlu1 %v5414_v3  ;;  %v1289_v17 = vmul.f32 %v3832_v32, %v3030_v8  ;;  %v1290_v52 = vmul.f32 %v3832_v32, %v3032_v5  ;;  %v554_v36 = vadd.f32 %v553_v44, %v516_v24  ;;  %v1207_v55 = vmul.f32 %v5418_v2, %v3013_v9 }
 0x1f0   :  { %5416 = vst [vmem:[#allocation123_spill] sm:$0xff] %v4212_v37  ;;  %5417 = vst [vmem:[#allocation131_spill] sm:$0xff] %v4215_v38  ;;  %v533_v11 = vadd.f32 %v532_v35, %v515_v49  ;;  %1870 = vperm.xlu1 %2202, %v2220_v62   ;;  %v1208_v29 = vmul.f32 %v5418_v2, %v5359_v18  ;;  %v5420_v45 = vmax.f32 %v5419_v31, 0.0  ;;  %v5422_v6 = vmax.f32 %v5421_v26, 0.0  ;;  %v5423_v49 = vld [vmem:[#allocation18_spill] sm:$0xff]  ;;  %v5424_v35 = vld [vmem:[#allocation25_spill] sm:$0xff] }
 0x1f1   :  { %v1315_v24 = vadd.f32 %v1283_v15, %v5423_v49  ;;  %v1316_v44 = vadd.f32 %v1284_v23, %v5424_v35  ;;  %v555_v62 = vadd.f32 %v554_v36, %v4025_v58  ;;  %v4237_v38 = vmul.f32 %v5425_v39, %v945_v61  ;;  %v4246_v31 = vpop.permute.xlu1 %1382  ;;  %v5427_v15 = vld [vmem:[#allocation31_spill] sm:$0xff]  ;;  %v5429_v61 = vld [vmem:[#allocation42_spill] sm:$0xff]  ;;  %v5431_v26 = vld [vmem:[#allocation89_spill] sm:$0xff] }
 0x1f2   :  { %v519_v46 = vmul.f32 %v487_v30, %v5420_v45  ;;  %v520_v32 = vmul.f32 %v487_v30, %v5422_v6  ;;  %v534_v40 = vadd.f32 %v533_v11, %v4022_v60  ;;  %v4240_v37 = vmul.f32 %v5425_v39, %v946_v12  ;;  %5426 = vst [vmem:[#allocation24_spill] sm:$0xff] %v4246_v31  ;;  %v5428_v45 = vld [vmem:[#allocation137_spill] sm:$0xff]  ;;  %v951_v39 = vpop.permute.xlu0 %950  ;;  %v5434_v31 = vld [vmem:[#allocation87_spill] sm:$0xff] }
 0x1f3   :  { %v1285_v2 = vmul.f32 %v3779_v57, %v3030_v8  ;;  %v1286_v30 = vmul.f32 %v3779_v57, %v3032_v5  ;;  %v1321_v23 = vadd.f32 %v1289_v17, %v5427_v15  ;;  %v1322_v60 = vadd.f32 %v1290_v52, %v5428_v45  ;;  %v5433_v57 = vld [vmem:[#allocation84_spill] sm:$0xff] }
 0x1f4   :  { %v4250_v11 = vadd.f32 %v534_v40, %v519_v46  ;;  %v4252_v58 = vadd.f32 %v555_v62, %v520_v32  ;;  %1878 = vperm.xlu1 %2202, %v3521_v41   ;;  %v5430_v12 = vmax.f32 %v5429_v61, 0.0  ;;  %v5432_v6 = vmax.f32 %v5431_v26, 0.0  ;;  %v5436_v52 = vld [vmem:[#allocation76_spill] sm:$0xff]  ;;  %v5442_v26 = vld [vmem:[#allocation81_spill] sm:$0xff] }
 0x1f5   :  { %v4260_v35 = vadd.f32 %v5433_v57, %v1207_v55  ;;  %v4263_v17 = vadd.f32 %v5434_v31, %v1208_v29  ;;  %v4267_v46 = vmul.f32 %v5436_v52, %v3013_v9  ;;  %v4271_v41 = vmul.f32 %v5436_v52, %v5359_v18  ;;  %v5439_v32 = vld [vmem:[#allocation56_spill] sm:$0xff]  ;;  %v5440_v55 = vld [vmem:[#allocation101_spill] sm:$0xff]  ;;  %v5448_v52 = vld [vmem:[#allocation111_spill] sm:$0xff] }
 0x1f6   :  { %v1013_v36 = vmul.f32 %v951_v39, %v5430_v12  ;;  %v1014_v49 = vmul.f32 %v951_v39, %v5432_v6  ;;  %v4274_v40 = vadd.f32 %v5439_v32, %v1315_v24  ;;  %v4277_v62 = vadd.f32 %v5439_v32, %v1316_v44  ;;  %v4285_v39 = vpop.permute.xlu1 %1390  ;;  %v2221_v44 = vld [vmem:[%s4742_s1 + $0x198] sm:$0xff]  ;;  %v963_v12 = vpop.permute.xlu0 %962 }
 0x1f7   :  { %5435 = vst [vmem:[#allocation21_spill] sm:$0xff] %v4263_v17  ;;  %5437 = vst [vmem:[#allocation134_spill] sm:$0xff] %v4267_v46  ;;  %v1293_v15 = vmul.f32 %v5440_v55, %v3030_v8  ;;  %v1294_v29 = vmul.f32 %v5440_v55, %v3032_v5  ;;  %v4288_v61 = vadd.f32 %v1285_v2, %v4056_v14  ;;  %v5445_v14 = vld [vmem:[#allocation86_spill] sm:$0xff]  ;;  %v5449_v55 = vld [vmem:[#allocation104_spill] sm:$0xff] }
 0x1f8   :  { %5438 = vst [vmem:[#allocation26_spill] sm:$0xff] %v4271_v41  ;;  %v1045_v31 = vadd.f32 %v4039_v54, %v1013_v36  ;;  %v1066_v45 = vadd.f32 %v4042_v10, %v1014_v49  ;;  %5441 = vst [vmem:[#allocation28_spill] sm:$0xff] %v4285_v39  ;;  %v4291_v24 = vadd.f32 %v1286_v30, %v4060_v43  ;;  %1882 = vperm.xlu1 %2202, %v2221_v44   ;;  %v5443_v10 = vld [vmem:[#allocation51_spill] sm:$0xff]  ;;  %v5447_v43 = vld [vmem:[#allocation109_spill] sm:$0xff] }
 0x1f9   :  { %v4297_v6 = vadd.f32 %v5442_v26, %v1321_v23  ;;  %v4300_v54 = vadd.f32 %v5442_v26, %v1322_v60  ;;  %v5444_v36 = vmax.f32 %v5443_v10, 0.0  ;;  %v5446_v2 = vmax.f32 %v5445_v14, 0.0  ;;  %v5450_v26 = vld [vmem:[#allocation34_spill] sm:$0xff]  ;;  %v5468_v39 = vld [vmem:[#allocation93_spill] sm:$0xff] }
 0x1fa   :  { %v1046_v30 = vadd.f32 %v1045_v31, %v5447_v43  ;;  %v1067_v32 = vadd.f32 %v1066_v45, %v5448_v52  ;;  %v1297_v44 = vmul.f32 %v5449_v55, %v3030_v8  ;;  %v1298_v23 = vmul.f32 %v5449_v55, %v3032_v5  ;;  %v5453_v31 = vld [vmem:[#allocation113_spill] sm:$0xff]  ;;  %v971_v55 = vpop.permute.xlu0 %970 }
 0x1fb   :  { %v1019_v49 = vmul.f32 %v963_v12, %v5444_v36  ;;  %v1020_v57 = vmul.f32 %v963_v12, %v5446_v2  ;;  %v1443_v18 = vmax.f32 %v4274_v40, 0.0  ;;  %v1444_v60 = vmax.f32 %v4277_v62, 0.0  ;;  %v5451_v36 = vld [vmem:[#allocation69_spill] sm:$0xff]  ;;  %v4316_v2 = vpop.permute.xlu1 %1398  ;;  %v5462_v40 = vld [vmem:[#allocation106_spill] sm:$0xff] }
 0x1fc   :  { %v1325_v10 = vadd.f32 %v1293_v15, %v5450_v26  ;;  %v1326_v9 = vadd.f32 %v1294_v29, %v5451_v36  ;;  %5452 = vst [vmem:[#allocation15_spill] sm:$0xff] %v4316_v2  ;;  %v1301_v45 = vmul.f32 %v5453_v31, %v3030_v8  ;;  %v1302_v43 = vmul.f32 %v5453_v31, %v3032_v5  ;;  %v5455_v15 = vld [vmem:[#allocation91_spill] sm:$0xff]  ;;  %v5459_v2 = vld [vmem:[#allocation105_spill] sm:$0xff] }
 0x1fd   :  { %v1047_v14 = vadd.f32 %v1046_v30, %v1019_v49  ;;  %v1068_v12 = vadd.f32 %v1067_v32, %v1020_v57  ;;  %v5454_v52 = vmov 3   ;;  %v5456_v26 = vmax.f32 %v5455_v15, 0.0  ;;  %v5457_v49 = vld [vmem:[#allocation90_spill] sm:$0xff]  ;;  %v5460_v31 = vld [vmem:[#allocation37_spill] sm:$0xff] }
 0x1fe   :  { %2204 = vset.pattern.permute.xlu1 %v5454_v52  ;;  %v5458_v57 = vmax.f32 %v5457_v49, 0.0  ;;  %v1329_v41 = vadd.f32 %v1297_v44, %v5460_v31  ;;  %v5461_v52 = vld [vmem:[#allocation139_spill] sm:$0xff]  ;;  %v1305_v17 = vmul.f32 %v5462_v40, %v3030_v8  ;;  %v1306_v15 = vmul.f32 %v5462_v40, %v3032_v5  ;;  %v5465_v49 = vld [vmem:[#allocation78_spill] sm:$0xff]  ;;  %v5466_v31 = vld [vmem:[#allocation92_spill] sm:$0xff] }
 0x1ff   :  { %v1023_v29 = vmul.f32 %v971_v55, %v5456_v26  ;;  %v1048_v32 = vadd.f32 %v1047_v14, %v4065_v48  ;;  %v1069_v36 = vadd.f32 %v1068_v12, %v4068_v34  ;;  %2002 = vperm.xlu1 %2204, %v5459_v2   ;;  %v1330_v46 = vadd.f32 %v1298_v23, %v5461_v52  ;;  %v4342_v12 = vpop.permute.xlu1 %1406  ;;  %v5463_v2 = vld [vmem:[#allocation40_spill] sm:$0xff]  ;;  %v979_v52 = vpop.permute.xlu0 %978 }
 0x200   :  { %v1024_v30 = vmul.f32 %v971_v55, %v5458_v57  ;;  %v1309_v26 = vmul.f32 %v4029_v4, %v3030_v8  ;;  %v1310_v48 = vmul.f32 %v4029_v4, %v3032_v5  ;;  %v1333_v44 = vadd.f32 %v1301_v45, %v5463_v2  ;;  %v5464_v55 = vld [vmem:[#allocation140_spill] sm:$0xff]  ;;  %v5470_v45 = vld [vmem:[#allocation43_spill] sm:$0xff] }
 0x201   :  { %v1049_v14 = vadd.f32 %v1048_v32, %v1023_v29  ;;  %v1334_v23 = vadd.f32 %v1302_v43, %v5464_v55  ;;  %v4347_v57 = vadd.f32 %v5465_v49, %v1325_v10  ;;  %v4350_v40 = vadd.f32 %v5465_v49, %v1326_v9  ;;  %v5472_v2 = vld [vmem:[#allocation20_spill] sm:$0xff]  ;;  %v5473_v9 = vld [vmem:[#allocation82_spill] sm:$0xff] }
 0x202   :  { %v1070_v34 = vadd.f32 %v1069_v36, %v1024_v30  ;;  %v5467_v62 = vmax.f32 %v5466_v31, 0.0  ;;  %v5469_v4 = vmax.f32 %v5468_v39, 0.0  ;;  %v1337_v43 = vadd.f32 %v1305_v17, %v5470_v45  ;;  %v5471_v36 = vld [vmem:[#allocation142_spill] sm:$0xff]  ;;  %v5475_v49 = vld [vmem:[#allocation144_spill] sm:$0xff]  ;;  %v5476_v31 = vld [vmem:[#allocation45_spill] sm:$0xff] }
 0x203   :  { %v1050_v30 = vadd.f32 %v1049_v14, %v4082_v16  ;;  %2205 = vset.pattern.permute.xlu1 %v5414_v3  ;;  %v1338_v10 = vadd.f32 %v1306_v15, %v5471_v36  ;;  %v4363_v55 = vadd.f32 %v5473_v9, %v1329_v41  ;;  %v5474_v39 = vld [vmem:[#allocation46_spill] sm:$0xff]  ;;  %v1342_v16 = vadd.f32 %v1310_v48, %v5475_v49  ;;  %v987_v3 = vpop.permute.xlu0 %986  ;;  %v5481_v36 = vld [vmem:[#allocation16_spill] sm:$0xff] }
 0x204   :  { %v1027_v8 = vmul.f32 %v979_v52, %v5467_v62  ;;  %v1028_v29 = vmul.f32 %v979_v52, %v5469_v4  ;;  %v1071_v32 = vadd.f32 %v1070_v34, %v4085_v20  ;;  %1886 = vperm.xlu1 %2205, %v5472_v2   ;;  %v4366_v62 = vadd.f32 %v5473_v9, %v1330_v46  ;;  %v1479_v34 = vpop.permute.xlu1 %1478  ;;  %v5483_v9 = vld [vmem:[#allocation60_spill] sm:$0xff] }
 0x205   :  { %v1341_v52 = vadd.f32 %v1309_v26, %v5474_v39  ;;  %v1453_v17 = vmax.f32 %v4347_v57, 0.0  ;;  %v1454_v15 = vmax.f32 %v4350_v40, 0.0  ;;  %v4373_v4 = vadd.f32 %v5476_v31, %v1333_v44  ;;  %v5477_v26 = vld [vmem:[#allocation94_spill] sm:$0xff]  ;;  %v5482_v44 = vld [vmem:[#allocation96_spill] sm:$0xff] }
 0x206   :  { %v1051_v14 = vadd.f32 %v1050_v30, %v1027_v8  ;;  %v1072_v20 = vadd.f32 %v1071_v32, %v1028_v29  ;;  %v4376_v41 = vadd.f32 %v5476_v31, %v1334_v23  ;;  %v4378_v46 = vmul.f32 %v1479_v34, %v1443_v18  ;;  %v5479_v29 = vld [vmem:[#allocation13_spill] sm:$0xff] }
 0x207   :  { %v4380_v45 = vmul.f32 %v1479_v34, %v1444_v60  ;;  %v5478_v48 = vmax.f32 %v5477_v26, 0.0  ;;  %v5480_v30 = vmax.f32 %v5479_v29, 0.0  ;;  %v4390_v2 = vadd.f32 %v5482_v44, %v1337_v43  ;;  %v995_v34 = vpop.permute.xlu0 %994  ;;  %v5487_v26 = vld [vmem:[#allocation98_spill] sm:$0xff] }
 0x208   :  { %v1052_v57 = vadd.f32 %v1051_v14, %v4133_v47  ;;  %v1073_v40 = vadd.f32 %v1072_v20, %v4136_v1  ;;  %1890 = vperm.xlu1 %2205, %v5481_v36   ;;  %v4393_v18 = vadd.f32 %v5482_v44, %v1338_v10  ;;  %v1457_v60 = vmax.f32 %v4363_v55, 0.0  ;;  %v5484_v1 = vld [vmem:[#allocation66_spill] sm:$0xff]  ;;  %v4411_v20 = vpop.permute.xlu1 %1482  ;;  %v5489_v36 = vld [vmem:[#allocation103_spill] sm:$0xff] }
 0x209   :  { %v1031_v8 = vmul.f32 %v987_v3, %v5478_v48  ;;  %v1032_v32 = vmul.f32 %v987_v3, %v5480_v30  ;;  %v1458_v23 = vmax.f32 %v4366_v62, 0.0  ;;  %v4398_v39 = vadd.f32 %v5483_v9, %v1341_v52  ;;  %v5485_v3 = vld [vmem:[#allocation95_spill] sm:$0xff] }
 0x20a   :  { %v4401_v49 = vadd.f32 %v5483_v9, %v1342_v16  ;;  %v4405_v47 = vadd.f32 %v4075_v27, %v4033_v53  ;;  %v4409_v43 = vadd.f32 %v4075_v27, %v5484_v1  ;;  %v5486_v31 = vmax.f32 %v5485_v3, 0.0  ;;  %v5494_v9 = vld [vmem:[#allocation100_spill] sm:$0xff] }
 0x20b   :  { %v1053_v10 = vadd.f32 %v1052_v57, %v1031_v8  ;;  %v1074_v14 = vadd.f32 %v1073_v40, %v1032_v32  ;;  %v5488_v48 = vmax.f32 %v5487_v26, 0.0  ;;  %v1461_v29 = vmax.f32 %v4373_v4, 0.0 }
 0x20c   :  { %v1035_v52 = vmul.f32 %v995_v34, %v5486_v31  ;;  %v1462_v53 = vmax.f32 %v4376_v41, 0.0  ;;  %1894 = vperm.xlu1 %2205, %v5489_v36   ;;  %v1465_v8 = vmax.f32 %v4390_v2, 0.0  ;;  %v536_v57 = vrot.slane %v4250_v11, 4  ;;  %v1491_v3 = vpop.permute.xlu1 %1490  ;;  %v5492_v36 = vld [vmem:[#allocation57_spill] sm:$0xff]  ;;  %v5506_v2 = vld [vmem:[#allocation24_spill] sm:$0xff] }
 0x20d   :  { %v1036_v16 = vmul.f32 %v995_v34, %v5488_v48  ;;  %v1054_v30 = vadd.f32 %v1053_v10, %v4162_v25  ;;  %v1075_v27 = vadd.f32 %v1074_v14, %v4165_v19  ;;  %v557_v40 = vrot.slane %v4252_v58, 4  ;;  %v1003_v25 = vpop.permute.xlu0 %1002 }
 0x20e   :  { %v1441_v19 = vmax.f32 %v4405_v47, 0.0  ;;  %v1442_v10 = vmax.f32 %v4409_v43, 0.0  ;;  %v5490_v14 = vmax.f32 %v4297_v6, 0.0  ;;  %v5491_v26 = vmax.f32 %v4300_v54, 0.0 }
 0x20f   :  { %v1055_v1 = vadd.f32 %v1054_v30, %v1035_v52  ;;  %v1076_v34 = vadd.f32 %v1075_v27, %v1036_v16  ;;  %v5493_v44 = vmax.f32 %v5492_v36, 0.0  ;;  %v5495_v52 = vmax.f32 %v5494_v9, 0.0  ;;  %v5496_v27 = vld [vmem:[#allocation63_spill] sm:$0xff] }
 0x210   :  { %v4432_v31 = vmul.f32 %v1491_v3, %v5490_v14  ;;  %v4436_v48 = vmul.f32 %v1491_v3, %v5491_v26  ;;  %v1413_v30 = vadd.f32 %v4108_v21, %v4288_v61  ;;  %v1414_v47 = vadd.f32 %v4108_v21, %v4291_v24  ;;  %1898 = vperm.xlu1 %2205, %v5496_v27   ;;  %v1499_v24 = vpop.permute.xlu1 %1498 }
 0x211   :  { %v1039_v32 = vmul.f32 %v1003_v25, %v5493_v44  ;;  %v1040_v16 = vmul.f32 %v1003_v25, %v5495_v52  ;;  %v1056_v6 = vadd.f32 %v1055_v1, %v4192_v42  ;;  %v1077_v43 = vadd.f32 %v1076_v34, %v4195_v7  ;;  %v1011_v1 = vpop.permute.xlu0 %1010 }
 0x212   :  { %v1415_v54 = vadd.f32 %v4139_v63, %v4111_v22  ;;  %v1416_v44 = vadd.f32 %v4139_v63, %v4114_v51  ;;  %v537_v9 = vadd.f32 %v536_v57, %v4250_v11  ;;  %v558_v3 = vadd.f32 %v557_v40, %v4252_v58  ;;  %v5497_v51 = vld [vmem:[#allocation97_spill] sm:$0xff]  ;;  %v5499_v58 = vld [vmem:[#allocation102_spill] sm:$0xff] }
 0x213   :  { %v4457_v61 = vadd.f32 %v4183_v59, %v4142_v56  ;;  %v4461_v21 = vadd.f32 %v4183_v59, %v4145_v33  ;;  %v1057_v42 = vadd.f32 %v1056_v6, %v1039_v32  ;;  %v1078_v7 = vadd.f32 %v1077_v43, %v1040_v16  ;;  %v5501_v59 = vld [vmem:[#allocation115_spill] sm:$0xff] }
 0x214   :  { %v4463_v22 = vmul.f32 %v1499_v24, %v1453_v17  ;;  %v4465_v34 = vmul.f32 %v1499_v24, %v1454_v15  ;;  %v5498_v63 = vmax.f32 %v5497_v51, 0.0  ;;  %v5500_v57 = vmax.f32 %v5499_v58, 0.0  ;;  %1902 = vperm.xlu1 %2205, %v5501_v59   ;;  %v1507_v43 = vpop.permute.xlu1 %1506 }
 0x215   :  { %v1445_v56 = vmax.f32 %v1413_v30, 0.0  ;;  %v1446_v25 = vmax.f32 %v1414_v47, 0.0  ;;  %v1058_v14 = vadd.f32 %v1057_v42, %v4237_v38  ;;  %v1079_v33 = vadd.f32 %v1078_v7, %v4240_v37  ;;  %v1475_v27 = vpop.permute.xlu0 %1474  ;;  %v5502_v42 = vld [vmem:[#allocation117_spill] sm:$0xff] }
 0x216   :  { %v1043_v11 = vmul.f32 %v1011_v1, %v5498_v63  ;;  %v1044_v40 = vmul.f32 %v1011_v1, %v5500_v57  ;;  %v1447_v32 = vmax.f32 %v1415_v54, 0.0  ;;  %v1448_v26 = vmax.f32 %v1416_v44, 0.0 }
 0x217   :  { %v538_v17 = vrot.slane %v537_v9, 2  ;;  %v559_v36 = vrot.slane %v558_v3, 2  ;;  %v1451_v15 = vmax.f32 %v4457_v61, 0.0  ;;  %v1452_v52 = vmax.f32 %v4461_v21, 0.0 }
 0x218   :  { %v1059_v16 = vadd.f32 %v1058_v14, %v1043_v11  ;;  %v1080_v6 = vadd.f32 %v1079_v33, %v1044_v40  ;;  %v4478_v30 = vmul.f32 %v1507_v43, %v1457_v60  ;;  %v4482_v37 = vmul.f32 %v1507_v43, %v1458_v23  ;;  %1906 = vperm.xlu1 %2205, %v5502_v42  }
 0x219   :  { %v1537_v38 = vmul.f32 %v1475_v27, %v1441_v19  ;;  %v1538_v47 = vmul.f32 %v1475_v27, %v1442_v10  ;;  %v1423_v54 = vadd.f32 %v4209_v13, %v4186_v0  ;;  %v1424_v44 = vadd.f32 %v4209_v13, %v4189_v50  ;;  %v1515_v0 = vpop.permute.xlu1 %1514  ;;  %v1487_v1 = vpop.permute.xlu0 %1486  ;;  %v5505_v27 = vld [vmem:[#allocation123_spill] sm:$0xff] }
 0x21a   :  { %v1060_v61 = vrot.slane %v1059_v16, 4  ;;  %v1081_v21 = vrot.slane %v1080_v6, 4  ;;  %v539_v7 = vadd.f32 %v538_v17, %v537_v9  ;;  %v560_v55 = vadd.f32 %v559_v36, %v558_v3 }
 0x21b   :  { %v1569_v60 = vadd.f32 %v4378_v46, %v1537_v38  ;;  %v1590_v62 = vadd.f32 %v4380_v45, %v1538_v47  ;;  %v1541_v23 = vmul.f32 %v4411_v20, %v1445_v56  ;;  %v1542_v19 = vmul.f32 %v4411_v20, %v1446_v25  ;;  %v5507_v38 = vld [vmem:[#allocation131_spill] sm:$0xff] }
 0x21c   :  { %v1061_v10 = vadd.f32 %v1060_v61, %v1059_v16  ;;  %v1082_v24 = vadd.f32 %v1081_v21, %v1080_v6  ;;  %v4495_v50 = vmul.f32 %v1515_v0, %v1461_v29  ;;  %v4499_v13 = vmul.f32 %v1515_v0, %v1462_v53  ;;  %1910 = vperm.xlu1 %2205, %v4051_v28   ;;  %v5504_v16 = vld [vmem:[#allocation119_spill] sm:$0xff]  ;;  %v5511_v0 = vld [vmem:[#allocation28_spill] sm:$0xff] }
 0x21d   :  { %v1543_v9 = vmul.f32 %v1487_v1, %v1447_v32  ;;  %v1544_v46 = vmul.f32 %v1487_v1, %v1448_v26  ;;  %v1570_v51 = vadd.f32 %v1569_v60, %v1541_v23  ;;  %v1591_v63 = vadd.f32 %v1590_v62, %v1542_v19  ;;  %v1523_v25 = vpop.permute.xlu1 %1522  ;;  %v1495_v41 = vpop.permute.xlu0 %1494 }
 0x21e   :  { %v1062_v3 = vrot.slane %v1061_v10, 2  ;;  %v1083_v45 = vrot.slane %v1082_v24, 2  ;;  %v1455_v20 = vmax.f32 %v1423_v54, 0.0  ;;  %v1456_v11 = vmax.f32 %v1424_v44, 0.0 }
 0x21f   :  { %v540_v58 = vrot.slane %v539_v7, 1  ;;  %v561_v57 = vrot.slane %v560_v55, 1  ;;  %v1571_v29 = vadd.f32 %v1570_v51, %v1543_v9  ;;  %v1592_v56 = vadd.f32 %v1591_v63, %v1544_v46  ;;  %v5513_v46 = vld [vmem:[#allocation134_spill] sm:$0xff] }
 0x220   :  { %v1063_v40 = vadd.f32 %v1062_v3, %v1061_v10  ;;  %v1084_v4 = vadd.f32 %v1083_v45, %v1082_v24  ;;  %v4504_v53 = vmul.f32 %v1523_v25, %v1465_v8  ;;  %v5503_v14 = vmax.f32 %v4393_v18, 0.0  ;;  %1914 = vperm.xlu1 %2205, %v5504_v16   ;;  %v5510_v10 = vld [vmem:[#allocation121_spill] sm:$0xff]  ;;  %v5514_v3 = vld [vmem:[#allocation88_spill] sm:$0xff]  ;;  %v5515_v51 = vld [vmem:[#allocation26_spill] sm:$0xff] }
 0x221   :  { %v1547_v59 = vmul.f32 %v1495_v41, %v1451_v15  ;;  %v1548_v28 = vmul.f32 %v1495_v41, %v1452_v52  ;;  %v1572_v17 = vadd.f32 %v1571_v29, %v4432_v31  ;;  %v1593_v36 = vadd.f32 %v1592_v56, %v4436_v48  ;;  %v1531_v44 = vpop.permute.xlu1 %1530  ;;  %v1503_v61 = vpop.permute.xlu0 %1502  ;;  %v5516_v63 = vld [vmem:[#allocation54_spill] sm:$0xff]  ;;  %v5520_v41 = vld [vmem:[#allocation132_spill] sm:$0xff] }
 0x222   :  { %v4508_v33 = vmul.f32 %v1523_v25, %v5503_v14  ;;  %v1064_v32 = vrot.slane %v1063_v40, 1  ;;  %v1085_v26 = vrot.slane %v1084_v4, 1  ;;  %v541_v6 = vadd.f32 %v540_v58, %v539_v7  ;;  %v5521_v14 = vld [vmem:[#allocation108_spill] sm:$0xff] }
 0x223   :  { %v562_v43 = vadd.f32 %v561_v57, %v560_v55  ;;  %v1427_v8 = vadd.f32 %v5506_v2, %v5505_v27  ;;  %v1428_v18 = vadd.f32 %v5506_v2, %v5507_v38  ;;  %v1573_v15 = vadd.f32 %v1572_v17, %v1547_v59  ;;  %v5518_v57 = vld [vmem:[#allocation83_spill] sm:$0xff]  ;;  %v5522_v17 = vld [vmem:[#allocation14_spill] sm:$0xff] }
 0x224   :  { %v1065_v47 = vadd.f32 %v1064_v32, %v1063_v40  ;;  %v1086_v54 = vadd.f32 %v1085_v26, %v1084_v4  ;;  %v1594_v52 = vadd.f32 %v1593_v36, %v1548_v28  ;;  %v5508_v31 = vmax.f32 %v4398_v39, 0.0  ;;  %1918 = vperm.xlu1 %2205, %v5510_v10   ;;  %v5519_v4 = vld [vmem:[#allocation129_spill] sm:$0xff] }
 0x225   :  { %v5509_v48 = vmax.f32 %v4401_v49, 0.0  ;;  %v1551_v7 = vmul.f32 %v1503_v61, %v1455_v20  ;;  %v1552_v55 = vmul.f32 %v1503_v61, %v1456_v11  ;;  %v1574_v23 = vadd.f32 %v1573_v15, %v4463_v22  ;;  %v5512_v49 = vld [vmem:[#allocation21_spill] sm:$0xff]  ;;  %v1511_v58 = vpop.permute.xlu0 %1510  ;;  %v4544_v25 = vpop.permute.xlu1 %1631 }
 0x226   :  { %v4519_v21 = vmul.f32 %v1531_v44, %v5508_v31  ;;  %v4525_v60 = vadd.f32 %v1065_v47, %v541_v6  ;;  %v4527_v62 = vadd.f32 %v1086_v54, %v562_v43  ;;  %v1595_v19 = vadd.f32 %v1594_v52, %v4465_v34  ;;  %v5517_v34 = vld [vmem:[#allocation128_spill] sm:$0xff]  ;;  %v5523_v6 = vld [vmem:[#allocation15_spill] sm:$0xff] }
 0x227   :  { %v4523_v42 = vmul.f32 %v1531_v44, %v5509_v48  ;;  %v1459_v24 = vmax.f32 %v1427_v8, 0.0  ;;  %v1460_v39 = vmax.f32 %v1428_v18, 0.0  ;;  %v1431_v1 = vadd.f32 %v5511_v0, %v4260_v35  ;;  %v5524_v44 = vld [vmem:[#allocation127_spill] sm:$0xff] }
 0x228   :  { %v1432_v9 = vadd.f32 %v5511_v0, %v5512_v49  ;;  %v1339_v45 = vadd.f32 %v5514_v3, %v5513_v46  ;;  %v1340_v20 = vadd.f32 %v5516_v63, %v5515_v51  ;;  %v1575_v11 = vadd.f32 %v1574_v23, %v1551_v7  ;;  %1922 = vperm.xlu1 %2205, %v5522_v17  }
 0x229   :  { %v1596_v22 = vadd.f32 %v1595_v19, %v1552_v55  ;;  %v1215_v40 = vmul.f32 %v5518_v57, %v5517_v34  ;;  %v1216_v29 = vmul.f32 %v5518_v57, %v5519_v4  ;;  %v1555_v56 = vmul.f32 %v1511_v58, %v1459_v24  ;;  %v1519_v38 = vpop.permute.xlu0 %1518  ;;  %v4555_v52 = vpop.permute.xlu1 %1641 }
 0x22a   :  { %v1556_v35 = vmul.f32 %v1511_v58, %v1460_v39  ;;  %v1311_v59 = vmul.f32 %v5521_v14, %v5520_v41  ;;  %v1312_v28 = vmul.f32 %v5521_v14, %v3032_v5  ;;  %v1576_v32 = vadd.f32 %v1575_v11, %v4478_v30 }
 0x22b   :  { %v1597_v26 = vadd.f32 %v1596_v22, %v4482_v37  ;;  %v1463_v36 = vmax.f32 %v1431_v1, 0.0  ;;  %v1464_v16 = vmax.f32 %v1432_v9, 0.0  ;;  %v1435_v43 = vadd.f32 %v5523_v6, %v1339_v45  ;;  %v5525_v1 = vld [vmem:[#allocation99_spill] sm:$0xff] }
 0x22c   :  { %v1436_v27 = vadd.f32 %v5523_v6, %v1340_v20  ;;  %v1577_v2 = vadd.f32 %v1576_v32, %v1555_v56  ;;  %v1343_v18 = vadd.f32 %v1311_v59, %v1215_v40  ;;  %v1344_v47 = vadd.f32 %v1312_v28, %v1216_v29  ;;  %1926 = vperm.xlu1 %2205, %v5524_v44  }
 0x22d   :  { %v1598_v8 = vadd.f32 %v1597_v26, %v1556_v35  ;;  %v1559_v54 = vmul.f32 %v1519_v38, %v1463_v36  ;;  %v1560_v15 = vmul.f32 %v1519_v38, %v1464_v16  ;;  %v1467_v61 = vmax.f32 %v1435_v43, 0.0  ;;  %v1527_v19 = vpop.permute.xlu0 %1526  ;;  %v1647_v39 = vpop.permute.xlu1 %1646 }
 0x22e   :  { %v1578_v30 = vadd.f32 %v1577_v2, %v4495_v50  ;;  %v1468_v31 = vmax.f32 %v1436_v27, 0.0  ;;  %v1439_v48 = vadd.f32 %v4342_v12, %v1343_v18  ;;  %v1440_v7 = vadd.f32 %v4342_v12, %v1344_v47 }
 0x22f   :  { %v1599_v37 = vadd.f32 %v1598_v8, %v4499_v13  ;;  %v1563_v10 = vmul.f32 %v1527_v19, %v1467_v61  ;;  %v5526_v11 = vmov 3  }
 0x230   :  { %v1579_v55 = vadd.f32 %v1578_v30, %v1559_v54  ;;  %v1564_v24 = vmul.f32 %v1527_v19, %v1468_v31  ;;  %1930 = vperm.xlu1 %2205, %v5525_v1   ;;  %v1471_v13 = vmax.f32 %v1439_v48, 0.0  ;;  %v1472_v49 = vmax.f32 %v1440_v7, 0.0  ;;  %v5527_v7 = vld [vmem:[#allocation110_spill] sm:$0xff]  ;;  %v5528_v19 = vld [vmem:[#allocation49_spill] sm:$0xff] }
 0x231   :  { %v1600_v23 = vadd.f32 %v1599_v37, %v1560_v15  ;;  %v1535_v3 = vpop.permute.xlu0 %1534  ;;  %v4565_v12 = vpop.permute.xlu1 %1656  ;;  %v1716_v1 = vmul.f32 %v1647_v39, %v5519_v4 }
 0x232   :  { %v1580_v0 = vadd.f32 %v1579_v55, %v4504_v53  ;;  %v1567_v45 = vmul.f32 %v1535_v3, %v1471_v13  ;;  %v1568_v51 = vmul.f32 %v1535_v3, %v1472_v49  ;;  %v1805_v55 = vmul.f32 %v5527_v7, %v5520_v41 }
 0x233   :  { %v1601_v50 = vadd.f32 %v1600_v23, %v4508_v33  ;;  %v1806_v23 = vmul.f32 %v5527_v7, %v3032_v5 }
 0x234   :  { %v1581_v9 = vadd.f32 %v1580_v0, %v1563_v10  ;;  %2206 = vset.pattern.permute.xlu1 %v5526_v11  ;;  %v1711_v10 = vmul.f32 %v5528_v19, %v5517_v34 }
 0x235   :  { %v1602_v46 = vadd.f32 %v1601_v50, %v1564_v24  ;;  %2054 = vperm.xlu1 %2206, %v5524_v44   ;;  %v4571_v22 = vpop.permute.xlu1 %1666  ;;  %v1999_v47 = vpop.permute.xlu0 %1998  ;;  %v1710_v44 = vmul.f32 %v4544_v25, %v5519_v4  ;;  %v1712_v24 = vmul.f32 %v5528_v19, %v5519_v4  ;;  %v1715_v50 = vmul.f32 %v1647_v39, %v5517_v34 }
 0x236   :  { %v1582_v63 = vadd.f32 %v1581_v9, %v4519_v21  ;;  %v1713_v9 = vmul.f32 %v4555_v52, %v5517_v34 }
 0x237   :  { %v1603_v20 = vadd.f32 %v1602_v46, %v4523_v42  ;;  %v1838_v49 = vadd.f32 %v1806_v23, %v1710_v44  ;;  %v1714_v46 = vmul.f32 %v4555_v52, %v5519_v4 }
 0x238   :  { %v1583_v53 = vadd.f32 %v1582_v63, %v1567_v45 }
 0x239   :  { %v1604_v33 = vadd.f32 %v1603_v20, %v1568_v51  ;;  %v4573_v56 = vpop.permute.xlu1 %1676  ;;  %v2007_v30 = vpop.permute.xlu0 %2006  ;;  %v5529_v20 = vld [vmem:[#allocation112_spill] sm:$0xff] }
 0x23a   :  { %v1584_v58 = vrot.slane %v1583_v53, 4  ;;  %v1811_v11 = vmul.f32 %v5529_v20, %v5520_v41 }
 0x23b   :  { %v1605_v57 = vrot.slane %v1604_v33, 4 }
 0x23c   :  { %v1585_v40 = vadd.f32 %v1584_v58, %v1583_v53  ;;  %v1812_v53 = vmul.f32 %v5529_v20, %v3032_v5 }
 0x23d   :  { %v1606_v29 = vadd.f32 %v1605_v57, %v1604_v33  ;;  %v4575_v28 = vpop.permute.xlu1 %1686  ;;  %v4597_v37 = vpop.permute.xlu0 %2010 }
 0x23e   :  { %v1586_v35 = vrot.slane %v1585_v40, 2 }
 0x23f   :  { %v1607_v14 = vrot.slane %v1606_v29, 2 }
 0x240   :  { %v1587_v59 = vadd.f32 %v1586_v35, %v1585_v40  ;;  %v1843_v40 = vadd.f32 %v1811_v11, %v1715_v50  ;;  %v5531_v50 = vld [vmem:[#allocation52_spill] sm:$0xff] }
 0x241   :  { %v1608_v21 = vadd.f32 %v1607_v14, %v1606_v29  ;;  %v4577_v36 = vpop.permute.xlu1 %1696  ;;  %v4621_v3 = vpop.permute.xlu0 %2014  ;;  %v1844_v29 = vadd.f32 %v1812_v53, %v1716_v1  ;;  %v1717_v1 = vmul.f32 %v5531_v50, %v5517_v34 }
 0x242   :  { %v1588_v42 = vrot.slane %v1587_v59, 1 }
 0x243   :  { %v1609_v32 = vrot.slane %v1608_v21, 1 }
 0x244   :  { %v1589_v26 = vadd.f32 %v1588_v42, %v1587_v59  ;;  %v5530_v59 = vld [vmem:[#allocation107_spill] sm:$0xff] }
 0x245   :  { %v1610_v17 = vadd.f32 %v1609_v32, %v1608_v21  ;;  %v4585_v43 = vpop.permute.xlu1 %1706 }
 0x246   :  { %v4580_v16 = vadd.f32 %v1589_v26, %v4525_v60 }
 0x247   :  { %v4583_v6 = vadd.f32 %v1610_v17, %v4527_v62  ;;  %v1709_v62 = vmul.f32 %v4544_v25, %v5517_v34  ;;  %v4629_v17 = vpop.permute.xlu0 %2018 }
 0x249   :  { %v1747_v27 = vpop.permute.xlu1 %1746  ;;  %v1837_v13 = vadd.f32 %v1805_v55, %v1709_v62 }
 0x24a   :  { %v1807_v61 = vmul.f32 %v1747_v27, %v5520_v41  ;;  %v1808_v31 = vmul.f32 %v1747_v27, %v3032_v5 }
 0x24c   :  { %v1839_v45 = vadd.f32 %v1807_v61, %v1711_v10  ;;  %v1840_v51 = vadd.f32 %v1808_v31, %v1712_v24 }
 0x24d   :  { %v1751_v2 = vpop.permute.xlu1 %1750 }
 0x24e   :  { %v1809_v0 = vmul.f32 %v1751_v2, %v5520_v41  ;;  %v1810_v25 = vmul.f32 %v1751_v2, %v3032_v5  ;;  %v1935_v21 = vadd.f32 %v5530_v59, %v1839_v45  ;;  %v1936_v42 = vadd.f32 %v5530_v59, %v1840_v51 }
 0x250   :  { %v1841_v58 = vadd.f32 %v1809_v0, %v1713_v9  ;;  %v1842_v57 = vadd.f32 %v1810_v25, %v1714_v46  ;;  %v1967_v61 = vmax.f32 %v1935_v21, 0.0  ;;  %v1968_v31 = vmax.f32 %v1936_v42, 0.0 }
 0x251   :  { %v1759_v8 = vpop.permute.xlu1 %1758  ;;  %v1720_v9 = vmul.f32 %v4565_v12, %v5519_v4 }
 0x252   :  { %v1814_v7 = vmul.f32 %v1759_v8, %v3032_v5 }
 0x255   :  { %v4587_v38 = vpop.permute.xlu1 %1766 }
 0x256   :  { %v1817_v21 = vmul.f32 %v4587_v38, %v5520_v41  ;;  %v1818_v42 = vmul.f32 %v4587_v38, %v3032_v5  ;;  %v1724_v38 = vmul.f32 %v4571_v22, %v5519_v4 }
 0x259   :  { %v4589_v18 = vpop.permute.xlu1 %1774 }
 0x25d   :  { %v4591_v54 = vpop.permute.xlu1 %1782 }
 0x261   :  { %v4593_v15 = vpop.permute.xlu1 %1790 }
 0x265   :  { %v4595_v60 = vpop.permute.xlu1 %1798 }
 0x26b   :  { %v1871_v48 = vpop.permute.xlu1 %1870 }
 0x26c   :  { %v1933_v39 = vadd.f32 %v1871_v48, %v1837_v13  ;;  %v1934_v33 = vadd.f32 %v1871_v48, %v1838_v49  ;;  %v1813_v48 = vmul.f32 %v1759_v8, %v5520_v41  ;;  %v1718_v13 = vmul.f32 %v5531_v50, %v5519_v4  ;;  %v2023_v8 = vpop.permute.xlu0 %2022 }
 0x26d   :  { %v1719_v49 = vmul.f32 %v4565_v12, %v5517_v34 }
 0x26e   :  { %v1965_v32 = vmax.f32 %v1933_v39, 0.0  ;;  %v1966_v26 = vmax.f32 %v1934_v33, 0.0  ;;  %v1845_v53 = vadd.f32 %v1813_v48, %v1717_v1  ;;  %v1846_v39 = vadd.f32 %v1814_v7, %v1718_v13 }
 0x26f   :  { %v1879_v63 = vpop.permute.xlu1 %1878 }
 0x270   :  { %v1937_v35 = vadd.f32 %v1879_v63, %v1841_v58  ;;  %v1938_v14 = vadd.f32 %v1879_v63, %v1842_v57  ;;  %v2061_v55 = vmul.f32 %v1999_v47, %v1965_v32  ;;  %v2062_v23 = vmul.f32 %v1999_v47, %v1966_v26  ;;  %v5532_v63 = vld [vmem:[#allocation114_spill] sm:$0xff] }
 0x271   :  { %v1815_v20 = vmul.f32 %v5532_v63, %v5520_v41  ;;  %v1816_v11 = vmul.f32 %v5532_v63, %v3032_v5 }
 0x272   :  { %v1969_v62 = vmax.f32 %v1937_v35, 0.0  ;;  %v1970_v44 = vmax.f32 %v1938_v14, 0.0 }
 0x273   :  { %v1883_v52 = vpop.permute.xlu1 %1882  ;;  %v1848_v59 = vadd.f32 %v1816_v11, %v1720_v9 }
 0x274   :  { %v1939_v27 = vadd.f32 %v1883_v52, %v1843_v40  ;;  %v1940_v2 = vadd.f32 %v1883_v52, %v1844_v29  ;;  %v2065_v46 = vmul.f32 %v2007_v30, %v1969_v62  ;;  %v2066_v47 = vmul.f32 %v2007_v30, %v1970_v44  ;;  %v2027_v62 = vpop.permute.xlu0 %2026 }
 0x275   :  { %v1847_v52 = vadd.f32 %v1815_v20, %v1719_v49 }
 0x276   :  { %v1971_v10 = vmax.f32 %v1939_v27, 0.0  ;;  %v1972_v24 = vmax.f32 %v1940_v2, 0.0  ;;  %v5533_v27 = vld [vmem:[#allocation55_spill] sm:$0xff] }
 0x277   :  { %v1722_v2 = vmul.f32 %v5533_v27, %v5519_v4 }
 0x278   :  { %v2067_v33 = vmul.f32 %v4597_v37, %v1971_v10  ;;  %v2068_v58 = vmul.f32 %v4597_v37, %v1972_v24  ;;  %v1721_v37 = vmul.f32 %v5533_v27, %v5517_v34 }
 0x279   :  { %v1850_v24 = vadd.f32 %v1818_v42, %v1722_v2 }
 0x27a   :  { %v2003_v19 = vpop.permute.xlu1 %2002  ;;  %v1849_v10 = vadd.f32 %v1817_v21, %v1721_v37 }
 0x27b   :  { %v2063_v0 = vmul.f32 %v2003_v19, %v1967_v61  ;;  %v2064_v25 = vmul.f32 %v2003_v19, %v1968_v31 }
 0x27d   :  { %v2093_v45 = vadd.f32 %v2063_v0, %v2061_v55  ;;  %v2114_v51 = vadd.f32 %v2064_v25, %v2062_v23  ;;  %v1723_v55 = vmul.f32 %v4571_v22, %v5517_v34  ;;  %v5534_v0 = vld [vmem:[#allocation116_spill] sm:$0xff]  ;;  %v2031_v22 = vpop.permute.xlu0 %2030 }
 0x27e   :  { %v1819_v25 = vmul.f32 %v5534_v0, %v5520_v41  ;;  %v1820_v50 = vmul.f32 %v5534_v0, %v3032_v5 }
 0x27f   :  { %v2094_v57 = vadd.f32 %v2093_v45, %v2065_v46  ;;  %v2115_v40 = vadd.f32 %v2114_v51, %v2066_v47  ;;  %v1887_v12 = vpop.permute.xlu1 %1886  ;;  %v1821_v45 = vmul.f32 %v4589_v18, %v5520_v41  ;;  %v1822_v51 = vmul.f32 %v4589_v18, %v3032_v5 }
 0x280   :  { %v1941_v29 = vadd.f32 %v1887_v12, %v1845_v53  ;;  %v1942_v35 = vadd.f32 %v1887_v12, %v1846_v39  ;;  %v1851_v63 = vadd.f32 %v1819_v25, %v1723_v55  ;;  %v1852_v20 = vadd.f32 %v1820_v50, %v1724_v38  ;;  %v5537_v25 = vld [vmem:[#allocation61_spill] sm:$0xff] }
 0x281   :  { %v2095_v30 = vadd.f32 %v2094_v57, %v2067_v33  ;;  %v2116_v14 = vadd.f32 %v2115_v40, %v2068_v58  ;;  %v5535_v58 = vld [vmem:[#allocation58_spill] sm:$0xff]  ;;  %v1727_v18 = vmul.f32 %v4573_v56, %v5517_v34  ;;  %v2035_v37 = vpop.permute.xlu0 %2034  ;;  %v1826_v55 = vmul.f32 %v4591_v54, %v3032_v5 }
 0x282   :  { %v1973_v32 = vmax.f32 %v1941_v29, 0.0  ;;  %v1974_v26 = vmax.f32 %v1942_v35, 0.0  ;;  %v1725_v57 = vmul.f32 %v5535_v58, %v5517_v34  ;;  %v1729_v50 = vmul.f32 %v5537_v25, %v5517_v34 }
 0x283   :  { %v1891_v44 = vpop.permute.xlu1 %1890 }
 0x284   :  { %v2069_v61 = vmul.f32 %v4621_v3, %v1973_v32  ;;  %v2070_v31 = vmul.f32 %v4621_v3, %v1974_v26  ;;  %v1943_v48 = vadd.f32 %v1891_v44, %v1847_v52  ;;  %v1944_v7 = vadd.f32 %v1891_v44, %v1848_v59  ;;  %v5536_v32 = vld [vmem:[#allocation118_spill] sm:$0xff] }
 0x285   :  { %v1853_v21 = vadd.f32 %v1821_v45, %v1725_v57  ;;  %v1823_v26 = vmul.f32 %v5536_v32, %v5520_v41  ;;  %v1824_v27 = vmul.f32 %v5536_v32, %v3032_v5 }
 0x286   :  { %v1975_v23 = vmax.f32 %v1943_v48, 0.0  ;;  %v1976_v19 = vmax.f32 %v1944_v7, 0.0  ;;  %v2096_v1 = vadd.f32 %v2095_v30, %v2069_v61  ;;  %v2117_v3 = vadd.f32 %v2116_v14, %v2070_v31 }
 0x287   :  { %v1895_v13 = vpop.permute.xlu1 %1894  ;;  %v1728_v14 = vmul.f32 %v4573_v56, %v5519_v4  ;;  %v1825_v56 = vmul.f32 %v4591_v54, %v5520_v41  ;;  %v1855_v38 = vadd.f32 %v1823_v26, %v1727_v18  ;;  %v1731_v54 = vmul.f32 %v4575_v28, %v5517_v34 }
 0x288   :  { %v2071_v49 = vmul.f32 %v4629_v17, %v1975_v23  ;;  %v2072_v9 = vmul.f32 %v4629_v17, %v1976_v19  ;;  %v1945_v46 = vadd.f32 %v1895_v13, %v1849_v10  ;;  %v1946_v47 = vadd.f32 %v1895_v13, %v1850_v24 }
 0x289   :  { %v1726_v17 = vmul.f32 %v5535_v58, %v5519_v4  ;;  %v1856_v23 = vadd.f32 %v1824_v27, %v1728_v14 }
 0x28a   :  { %v2097_v11 = vadd.f32 %v2096_v1, %v2071_v49  ;;  %v2118_v53 = vadd.f32 %v2117_v3, %v2072_v9  ;;  %v1977_v39 = vmax.f32 %v1945_v46, 0.0  ;;  %v1978_v33 = vmax.f32 %v1946_v47, 0.0  ;;  %v2039_v47 = vpop.permute.xlu0 %2038 }
 0x28b   :  { %v1899_v40 = vpop.permute.xlu1 %1898  ;;  %v1854_v42 = vadd.f32 %v1822_v51, %v1726_v17  ;;  %v1732_v46 = vmul.f32 %v4575_v28, %v5519_v4  ;;  %v1829_v28 = vmul.f32 %v4593_v15, %v5520_v41 }
 0x28c   :  { %v2073_v12 = vmul.f32 %v2023_v8, %v1977_v39  ;;  %v2074_v29 = vmul.f32 %v2023_v8, %v1978_v33  ;;  %v1947_v35 = vadd.f32 %v1899_v40, %v1851_v63  ;;  %v1948_v30 = vadd.f32 %v1899_v40, %v1852_v20 }
 0x28d   :  { %v1857_v63 = vadd.f32 %v1825_v56, %v1729_v50 }
 0x28e   :  { %v1979_v52 = vmax.f32 %v1947_v35, 0.0  ;;  %v1980_v59 = vmax.f32 %v1948_v30, 0.0  ;;  %v2098_v8 = vadd.f32 %v2097_v11, %v2073_v12  ;;  %v2119_v2 = vadd.f32 %v2118_v53, %v2074_v29  ;;  %v5538_v11 = vld [vmem:[#allocation120_spill] sm:$0xff]  ;;  %v2043_v26 = vpop.permute.xlu0 %2042 }
 0x28f   :  { %v1903_v44 = vpop.permute.xlu1 %1902  ;;  %v1827_v53 = vmul.f32 %v5538_v11, %v5520_v41  ;;  %v1828_v39 = vmul.f32 %v5538_v11, %v3032_v5  ;;  %v1830_v29 = vmul.f32 %v4593_v15, %v3032_v5  ;;  %v1735_v15 = vmul.f32 %v4577_v36, %v5517_v34 }
 0x290   :  { %v2075_v61 = vmul.f32 %v2027_v62, %v1979_v52  ;;  %v2076_v31 = vmul.f32 %v2027_v62, %v1980_v59  ;;  %v1949_v48 = vadd.f32 %v1903_v44, %v1853_v21  ;;  %v1950_v7 = vadd.f32 %v1903_v44, %v1854_v42  ;;  %v5539_v21 = vld [vmem:[#allocation64_spill] sm:$0xff] }
 0x291   :  { %v1730_v62 = vmul.f32 %v5537_v25, %v5519_v4  ;;  %v1859_v35 = vadd.f32 %v1827_v53, %v1731_v54  ;;  %v1860_v30 = vadd.f32 %v1828_v39, %v1732_v46  ;;  %v1733_v42 = vmul.f32 %v5539_v21, %v5517_v34 }
 0x292   :  { %v2099_v19 = vadd.f32 %v2098_v8, %v2075_v61  ;;  %v2120_v10 = vadd.f32 %v2119_v2, %v2076_v31  ;;  %v1981_v24 = vmax.f32 %v1949_v48, 0.0  ;;  %v1982_v0 = vmax.f32 %v1950_v7, 0.0 }
 0x293   :  { %v1907_v1 = vpop.permute.xlu1 %1906  ;;  %v1858_v20 = vadd.f32 %v1826_v55, %v1730_v62  ;;  %v1734_v32 = vmul.f32 %v5539_v21, %v5519_v4  ;;  %v1736_v61 = vmul.f32 %v4577_v36, %v5519_v4  ;;  %v1861_v7 = vadd.f32 %v1829_v28, %v1733_v42  ;;  %v5540_v55 = vld [vmem:[#allocation122_spill] sm:$0xff] }
 0x294   :  { %v2077_v3 = vmul.f32 %v2031_v22, %v1981_v24  ;;  %v2078_v13 = vmul.f32 %v2031_v22, %v1982_v0  ;;  %v1951_v49 = vadd.f32 %v1907_v1, %v1855_v38  ;;  %v1952_v9 = vadd.f32 %v1907_v1, %v1856_v23  ;;  %v2047_v1 = vpop.permute.xlu0 %2046 }
 0x295   :  { %v1862_v56 = vadd.f32 %v1830_v29, %v1734_v32  ;;  %v1831_v38 = vmul.f32 %v5540_v55, %v5520_v41  ;;  %v1832_v23 = vmul.f32 %v5540_v55, %v3032_v5  ;;  %v1834_v11 = vmul.f32 %v4595_v60, %v3032_v5 }
 0x296   :  { %v1983_v45 = vmax.f32 %v1951_v49, 0.0  ;;  %v1984_v51 = vmax.f32 %v1952_v9, 0.0  ;;  %v2100_v22 = vadd.f32 %v2099_v19, %v2077_v3  ;;  %v2121_v33 = vadd.f32 %v2120_v10, %v2078_v13 }
 0x297   :  { %v1911_v58 = vpop.permute.xlu1 %1910  ;;  %v1863_v3 = vadd.f32 %v1831_v38, %v1735_v15  ;;  %v1864_v36 = vadd.f32 %v1832_v23, %v1736_v61  ;;  %v1739_v53 = vmul.f32 %v4585_v43, %v5517_v34  ;;  %v1740_v39 = vmul.f32 %v4585_v43, %v5519_v4 }
 0x298   :  { %v2079_v57 = vmul.f32 %v2035_v37, %v1983_v45  ;;  %v2080_v17 = vmul.f32 %v2035_v37, %v1984_v51  ;;  %v1953_v40 = vadd.f32 %v1911_v58, %v1857_v63  ;;  %v1954_v12 = vadd.f32 %v1911_v58, %v1858_v20  ;;  %v5541_v58 = vld [vmem:[#allocation67_spill] sm:$0xff]  ;;  %v2051_v28 = vpop.permute.xlu0 %2050 }
 0x299   :  { %v1833_v20 = vmul.f32 %v4595_v60, %v5520_v41 }
 0x29a   :  { %v2101_v18 = vadd.f32 %v2100_v22, %v2079_v57  ;;  %v2122_v14 = vadd.f32 %v2121_v33, %v2080_v17  ;;  %v1985_v52 = vmax.f32 %v1953_v40, 0.0  ;;  %v1986_v59 = vmax.f32 %v1954_v12, 0.0  ;;  %v5542_v40 = vld [vmem:[#allocation125_spill] sm:$0xff] }
 0x29b   :  { %v1915_v27 = vpop.permute.xlu1 %1914  ;;  %v1737_v57 = vmul.f32 %v5541_v58, %v5517_v34  ;;  %v1738_v17 = vmul.f32 %v5541_v58, %v5519_v4  ;;  %v1835_v12 = vmul.f32 %v5542_v40, %v5520_v41  ;;  %v1836_v60 = vmul.f32 %v5542_v40, %v3032_v5 }
 0x29c   :  { %v2081_v37 = vmul.f32 %v2039_v47, %v1985_v52  ;;  %v2082_v8 = vmul.f32 %v2039_v47, %v1986_v59  ;;  %v1955_v2 = vadd.f32 %v1915_v27, %v1859_v35  ;;  %v1956_v44 = vadd.f32 %v1915_v27, %v1860_v30 }
 0x29d   :  { %v1866_v52 = vadd.f32 %v1834_v11, %v1738_v17  ;;  %v1867_v59 = vadd.f32 %v1835_v12, %v1739_v53  ;;  %v1868_v21 = vadd.f32 %v1836_v60, %v1740_v39  ;;  %v5543_v11 = vld [vmem:[#allocation124_spill] sm:$0xff] }
 0x29e   :  { %v1987_v31 = vmax.f32 %v1955_v2, 0.0  ;;  %v1988_v48 = vmax.f32 %v1956_v44, 0.0  ;;  %v2102_v19 = vadd.f32 %v2101_v18, %v2081_v37  ;;  %v2123_v10 = vadd.f32 %v2122_v14, %v2082_v8 }
 0x29f   :  { %v1919_v24 = vpop.permute.xlu1 %1918  ;;  %v1865_v14 = vadd.f32 %v1833_v20, %v1737_v57 }
 0x2a0   :  { %v2083_v0 = vmul.f32 %v2043_v26, %v1987_v31  ;;  %v2084_v25 = vmul.f32 %v2043_v26, %v1988_v48  ;;  %v1957_v50 = vadd.f32 %v1919_v24, %v1861_v7  ;;  %v1958_v62 = vadd.f32 %v1919_v24, %v1862_v56  ;;  %v2059_v31 = vpop.permute.xlu0 %2058 }
 0x2a2   :  { %v2103_v13 = vadd.f32 %v2102_v19, %v2083_v0  ;;  %v2124_v49 = vadd.f32 %v2123_v10, %v2084_v25  ;;  %v1989_v9 = vmax.f32 %v1957_v50, 0.0  ;;  %v1990_v54 = vmax.f32 %v1958_v62, 0.0 }
 0x2a3   :  { %v1923_v46 = vpop.permute.xlu1 %1922 }
 0x2a4   :  { %v2085_v47 = vmul.f32 %v2047_v1, %v1989_v9  ;;  %v2086_v45 = vmul.f32 %v2047_v1, %v1990_v54  ;;  %v1959_v51 = vadd.f32 %v1923_v46, %v1863_v3  ;;  %v1960_v63 = vadd.f32 %v1923_v46, %v1864_v36 }
 0x2a5   :  { %v2248_v3 = vmov 1966171168  }
 0x2a6   :  { %v1991_v22 = vmax.f32 %v1959_v51, 0.0  ;;  %v1992_v33 = vmax.f32 %v1960_v63, 0.0  ;;  %v2104_v35 = vadd.f32 %v2103_v13, %v2085_v47  ;;  %v2125_v30 = vadd.f32 %v2124_v49, %v2086_v45 }
 0x2a7   :  { %v1927_v29 = vpop.permute.xlu1 %1926  ;;  %v2145_v36 = vunpack.c.l.s4 %v2248_v3  ;;  %v2138_v47 = vstv %s4743_s2 }
 0x2a8   :  { %v2087_v18 = vmul.f32 %v2051_v28, %v1991_v22  ;;  %v2088_v43 = vmul.f32 %v2051_v28, %v1992_v33  ;;  %v1961_v32 = vadd.f32 %v1927_v29, %v1865_v14  ;;  %v1962_v4 = vadd.f32 %v1927_v29, %v1866_v52 }
 0x2a9   :  { %v2146_v46 = vunpack.c.0.s8 %v2145_v36  ;;  %v5544_v33 = vlaneseq }
 0x2aa   :  { %v2105_v34 = vadd.f32 %v2104_v35, %v2087_v18  ;;  %v2126_v42 = vadd.f32 %v2125_v30, %v2088_v43  ;;  %v1993_v37 = vmax.f32 %v1961_v32, 0.0  ;;  %v1994_v8 = vmax.f32 %v1962_v4, 0.0 }
 0x2ab   :  { %v1931_v26 = vpop.permute.xlu1 %1930  ;;  %v2149_v53 = vsub.s32 %v2146_v46, %v5543_v11  ;;  %vm2161_vm0 = vcmp.lt.s32.totalorder %v5544_v33, 256 }
 0x2ac   :  { %v1963_v27 = vadd.f32 %v1931_v26, %v1867_v59  ;;  %v1964_v41 = vadd.f32 %v1931_v26, %v1868_v21 }
 0x2ae   :  { %v1995_v5 = vmax.f32 %v1963_v27, 0.0  ;;  %v1996_v2 = vmax.f32 %v1964_v41, 0.0 }
 0x2b0   :  { %v2055_v44 = vpop.permute.xlu1 %2054  ;;  %v2091_v48 = vmul.f32 %v2059_v31, %v1995_v5  ;;  %v2092_v7 = vmul.f32 %v2059_v31, %v1996_v2 }
 0x2b1   :  { %v2089_v15 = vmul.f32 %v2055_v44, %v1993_v37  ;;  %v2090_v61 = vmul.f32 %v2055_v44, %v1994_v8 }
 0x2b3   :  { %v2106_v56 = vadd.f32 %v2105_v34, %v2089_v15  ;;  %v2127_v55 = vadd.f32 %v2126_v42, %v2090_v61 }
 0x2b5   :  { %v2107_v38 = vadd.f32 %v2106_v56, %v2091_v48  ;;  %v2128_v23 = vadd.f32 %v2127_v55, %v2092_v7 }
 0x2b7   :  { %v2108_v19 = vrot.slane %v2107_v38, 4  ;;  %v2129_v10 = vrot.slane %v2128_v23, 4 }
 0x2b9   :  { %v2109_v24 = vadd.f32 %v2108_v19, %v2107_v38  ;;  %v2130_v0 = vadd.f32 %v2129_v10, %v2128_v23 }
 0x2bb   :  { %v2110_v25 = vrot.slane %v2109_v24, 2  ;;  %v2131_v50 = vrot.slane %v2130_v0, 2 }
 0x2bd   :  { %v2111_v62 = vadd.f32 %v2110_v25, %v2109_v24  ;;  %v2132_v1 = vadd.f32 %v2131_v50, %v2130_v0 }
 0x2bf   :  { %v2112_v13 = vrot.slane %v2111_v62, 1  ;;  %v2133_v49 = vrot.slane %v2132_v1, 1 }
 0x2c1   :  { %v2113_v9 = vadd.f32 %v2112_v13, %v2111_v62  ;;  %v2134_v54 = vadd.f32 %v2133_v49, %v2132_v1 }
 0x2c3   :  { %v2135_v45 = vadd.f32 %v2113_v9, %v4580_v16  ;;  %v2136_v51 = vadd.f32 %v2134_v54, %v4583_v6 }
 0x2c5   :  { %v2139_v63 = vadd.f32 %v2138_v47, %v2135_v45  ;;  %v2140_v20 = vadd.f32 %v2138_v47, %v2136_v51 }
 0x2c7   :  { %v2143_v39 = vcombine.low %v2139_v63, %v2140_v20 }
 0x2c9   :  { %v2150_v22 = vrot.slane %v2143_v39, %v2149_v53 }
 0x2cb   :  { %v2157_v58 = vrot.slane %v2150_v22, %v2149_v53 }
 0x2cd   :  { %2163 = vst.msk [vmem:[#allocation3] sm:$0x3] %vm2161_vm0, %v2157_v58 }
 0x2ce   :  { %2233 = shalt.err (!%p2230_p4)
}
 0x2cf   :  { %2173 = dma.vmem_to_hbm [thread:$0]  %s2171_s12, 32, %s4744_s3, [#allocation4]  }
 0x2d0   :  { %2242 = dma.done.wait [#allocation4], 32  }
 0x2d1   :  { %2243 = vsyncadd [#allocation4], 4294967264 }
 0x2d2   :  { %2177 = vsyncpa [#allocation4], 1 }

</bundles_post_ra>
